<compile_context>
chip_gen: v7x
topology: tpu7x:2x2x1
jax: 0.10.0
libtpu: 0.0.40
codegen_flags: <defaults>
</compile_context>

<pallas_src>
import functools

import jax
import jax.numpy as jnp
from jax.experimental import pallas as pl
from jax.experimental.pallas import tpu as pltpu


def _treelstm_cell_kernel(
    x_ref,        # [BN, X]      bf16   (block constant along j)
    chh_ref,      # [BN, BK, H]  bf16   (zero-padded children, chunk j)
    chc_ref,      # [BN, BK, H]  caller dtype (f32 exact / bf16 for fewer bytes)
    w_x_ref,      # [X, 4H]      bf16   ([W_iou | W_f])
    u_iou_ref,    # [H, 3H]      bf16
    u_f_ref,      # [H, H]       bf16
    b_x_ref,      # [1, 4H]      f32    ([b_iou | b_f])
    hc_out_ref,   # [BN, 2H]     f32    ([h | c], written at last j)
    xw_acc,       # [BN, 4H]     f32 scratch: x_iou | x_f
    ht_acc,       # [BN, H]      f32 scratch: sum_k child_h
    fc_acc,       # [BN, H]      f32 scratch: sum_k f_k * child_c_k
):
    j = pl.program_id(1)
    bn, bk, hsz = chh_ref.shape

    @pl.when(j == 0)
    def _init():
        # forward(): x_iou = W_iou(x)+b_iou ; x_f = W_f(x)+b_f  (fused [X,4H] MXU pass)
        xw_acc[...] = (
            jnp.dot(x_ref[...], w_x_ref[...], preferred_element_type=jnp.float32)
            + b_x_ref[...]
        )
        ht_acc[...] = jnp.zeros_like(ht_acc)
        fc_acc[...] = jnp.zeros_like(fc_acc)

    ch_h = chh_ref[...]                         # bf16 [BN, BK, H]
    node_f = xw_acc[:, 3 * hsz:]                # [BN, H] f32

    # reduce_func: running child-sum of h (U_iou applied once at the end, by linearity;
    # f32-accumulated sublane reduce, no full f32 copy of the chunk materialized).
    ht_acc[...] += jnp.sum(ch_h, axis=1, dtype=jnp.float32)

    # message_func for this chunk: f_k = sigmoid(x_f + U_f(h_k)); fc_k = f_k * c_k.
    # BK is a multiple of 16, so the bf16 reshapes are sublane-tile aligned (free).
    uf = jnp.dot(
        ch_h.reshape(bn * bk, hsz), u_f_ref[...],
        preferred_element_type=jnp.float32,
    ).reshape(bn, bk, hsz)
    f = jax.nn.sigmoid(uf + node_f[:, None, :])
    fc_acc[...] += jnp.sum(f * chc_ref[...].astype(jnp.float32), axis=1)

    @pl.when(j == pl.num_programs(1) - 1)
    def _finalize():
        # apply_node_func()
        uh_sum = jnp.dot(
            ht_acc[...].astype(jnp.bfloat16), u_iou_ref[...],
            preferred_element_type=jnp.float32,
        )
        iou = xw_acc[:, : 3 * hsz] + uh_sum
        i = jax.nn.sigmoid(iou[:, :hsz])
        o = jax.nn.sigmoid(iou[:, hsz:2 * hsz])
        u = jnp.tanh(iou[:, 2 * hsz:])
        c = i * u + fc_acc[...]
        h = o * jnp.tanh(c)
        # Write the two halves of the lane-dense [BN, 2H] slab directly (no concat).
        hc_out_ref[:, :hsz] = h.astype(hc_out_ref.dtype)
        hc_out_ref[:, hsz:] = c.astype(hc_out_ref.dtype)


def prepare_params(params):
    """One-time per-tree weight prep (hoisted out of the per-level kernel call):
    fuse [W_iou|W_f] / [b_iou|b_f] and cast MXU operands to bf16."""
    return {
        "w_x": jnp.concatenate([params["w_iou"], params["w_f"]], axis=1).astype(jnp.bfloat16),
        "b_x": jnp.concatenate([params["b_iou"], params["b_f"]], axis=1).astype(jnp.float32),
        "u_iou": params["u_iou"].astype(jnp.bfloat16),
        "u_f": params["u_f"].astype(jnp.bfloat16),
    }


def _tpu_vmem_capacity_bytes():
    try:
        return int(pltpu.get_tpu_info().vmem_capacity_bytes)
    except Exception:
        return 64 * 1024 * 1024   # conservative lower bound (v7x per-core VMEM)


def _choose_tiles(n, kp, x_size, h_size, chc_itemsize, weight_bytes, weight_bufs, budget):
    """Largest 16-multiple row tile with >=4 grid steps (else >=2, else 1) and the
    largest child chunk, both capped by an explicit VMEM estimate."""
    bn_cands = [c for c in (512, 256, 128, 64, 32, 16) if n % c == 0] or [n]
    bk_cands = [c for c in (512, 256, 128, 64, 32, 16) if kp % c == 0] or [kp]

    def vmem_bytes(bn, bk):
        stream = 2 * bn * (2 * x_size + bk * h_size * (2 + chc_itemsize))   # dbl-buffered inputs
        out = 2 * bn * 2 * h_size * 4                                       # dbl-buffered output slab
        scratch = bn * h_size * 6 * 4                                       # xw + h_tilda + fc accumulators
        return stream + out + scratch + weight_bufs * weight_bytes

    for min_steps in (4, 2, 1):
        for bn in bn_cands:
            if n // bn < min_steps or vmem_bytes(bn, bk_cands[-1]) > budget:
                continue
            for bk in bk_cands:
                if vmem_bytes(bn, bk) <= budget:
                    return bn, bk
    return bn_cands[-1], bk_cands[-1]


@functools.partial(
    jax.jit,
    static_argnames=("block_n", "block_k", "vmem_limit_bytes", "single_buffer_weights"),
)
def treelstm_cell(x, child_h, child_c, params, *, block_n=None, block_k=None,
                  vmem_limit_bytes=None, single_buffer_weights=True):
    """One propagation level over a dense, zero-padded child mailbox.
    child_h / child_c: [N, K, H] with missing children zero-filled (h=c=0)."""
    if "w_x" not in params:               # accept raw module params too
        params = prepare_params(params)

    n, x_size = x.shape
    _, k, h_size = child_h.shape

    # Pad child axis and node axis to multiples of 16 (bf16 sublane tile): layout-free
    # in-kernel reshapes and full sublane tiles for the row blocks. Zero padding is
    # semantically safe (U_iou(0)=0, f*0=0; padded rows are sliced off).
    kp = max(16, -(-k // 16) * 16)
    n_pad = max(16, -(-n // 16) * 16)
    if (kp, n_pad) != (k, n):
        x = jnp.pad(x, ((0, n_pad - n), (0, 0)))
        child_h = jnp.pad(child_h, ((0, n_pad - n), (0, kp - k), (0, 0)))
        child_c = jnp.pad(child_c, ((0, n_pad - n), (0, kp - k), (0, 0)))

    x_bf = x.astype(jnp.bfloat16)
    chh_bf = child_h.astype(jnp.bfloat16)
    chc = child_c                          # streamed at caller dtype; upcast per chunk in-kernel

    w_x, b_x = params["w_x"], params["b_x"]
    u_iou, u_f = params["u_iou"], params["u_f"]
    weight_bytes = (w_x.size + u_iou.size + u_f.size) * 2 + b_x.size * 4
    weight_bufs = 1 if single_buffer_weights else 2

    if vmem_limit_bytes is None:
        # Raise the scoped-VMEM default (16/32 MiB on v5e/v6e) while keeping headroom
        # on v7x's 64 MiB physical VMEM.
        vmem_limit_bytes = int(0.8 * _tpu_vmem_capacity_bytes())

    if block_n is None or block_k is None:
        bn, bk = _choose_tiles(n_pad, kp, x_size, h_size, chc.dtype.itemsize,
                               weight_bytes, weight_bufs,
                               budget=int(0.7 * vmem_limit_bytes))
        block_n = bn if block_n is None else block_n
        block_k = bk if block_k is None else block_k
    assert n_pad % block_n == 0 and kp % block_k == 0, (n_pad, block_n, kp, block_k)

    grid = (n_pad // block_n, kp // block_k)   # row tiles (parallel) x child chunks (reduction)

    def invariant(shape):
        zeros = (0,) * len(shape)
        if single_buffer_weights:
            # Block index never changes -> one VMEM buffer suffices (saves VMEM at large H).
            return pl.BlockSpec(shape, lambda i, j: zeros, pipeline_mode=pl.Buffered(1))
        return pl.BlockSpec(shape, lambda i, j: zeros)

    flops = 2 * n_pad * (x_size * 4 * h_size + 3 * h_size * h_size + kp * h_size * h_size)
    transcendentals = n_pad * h_size * (kp + 4)
    bytes_accessed = (n_pad * (2 * x_size + kp * h_size * (2 + chc.dtype.itemsize))
                      + weight_bytes + n_pad * 2 * h_size * 4)

    hc = pl.pallas_call(
        _treelstm_cell_kernel,
        out_shape=jax.ShapeDtypeStruct((n_pad, 2 * h_size), jnp.float32),
        grid_spec=pltpu.PrefetchScalarGridSpec(
            num_scalar_prefetch=0,
            grid=grid,
            in_specs=[
                pl.BlockSpec((block_n, x_size), lambda i, j: (i, 0)),
                pl.BlockSpec((block_n, block_k, h_size), lambda i, j: (i, j, 0)),
                pl.BlockSpec((block_n, block_k, h_size), lambda i, j: (i, j, 0)),
                invariant(w_x.shape),
                invariant(u_iou.shape),
                invariant(u_f.shape),
                invariant(b_x.shape),
            ],
            out_specs=pl.BlockSpec((block_n, 2 * h_size), lambda i, j: (i, 0)),
            scratch_shapes=[
                pltpu.VMEM((block_n, 4 * h_size), jnp.float32),   # xw (x_iou | x_f)
                pltpu.VMEM((block_n, h_size), jnp.float32),       # h_tilda accumulator
                pltpu.VMEM((block_n, h_size), jnp.float32),       # fc_sum accumulator
            ],
        ),
        compiler_params=pltpu.CompilerParams(
            dimension_semantics=("parallel", "arbitrary"),
            vmem_limit_bytes=vmem_limit_bytes,
        ),
        cost_estimate=pl.CostEstimate(
            flops=flops, transcendentals=transcendentals, bytes_accessed=bytes_accessed,
        ),
    )(x_bf, chh_bf, chc, w_x, u_iou, u_f, b_x)

    return hc[:n, :h_size], hc[:n, h_size:]


def treelstm_cell_ref(x, child_h, child_c, params):
    """Pure-JAX f32 reference mirroring the PyTorch edge/reduce/apply semantics."""
    node_iou = x @ params["w_iou"] + params["b_iou"]
    node_f = x @ params["w_f"] + params["b_f"]
    # message_func: Uh = U_iou(child_h); f = sigmoid(x_f + U_f(child_h)); fc = f*child_c
    uh = jnp.einsum("nkh,hj->nkj", child_h, params["u_iou"])
    f = jax.nn.sigmoid(jnp.einsum("nkh,hj->nkj", child_h, params["u_f"])
                       + node_f[:, None, :])
    # reduce_func: builtin sums
    uh_sum = uh.sum(axis=1)
    fc_sum = jnp.sum(f * child_c, axis=1)
    # apply_node_func
    iou = node_iou + uh_sum
    hs = params["u_f"].shape[0]
    i, o, u = iou[:, :hs], iou[:, hs:2 * hs], iou[:, 2 * hs:]
    c = jax.nn.sigmoid(i) * jnp.tanh(u) + fc_sum
    h = jax.nn.sigmoid(o) * jnp.tanh(c)
    return h, c


def init_params(key, x_size, h_size):
    """Deterministic synthetic parameters (module __init__ gives the shapes).
    Stored in (in_features, out_features) layout (= torch weight.T)."""
    k1, k2, k3, k4 = jax.random.split(key, 4)
    scale = 0.1
    return {
        "w_iou": scale * jax.random.normal(k1, (x_size, 3 * h_size), jnp.float32),
        "u_iou": scale * jax.random.normal(k2, (h_size, 3 * h_size), jnp.float32),
        "b_iou": jnp.zeros((1, 3 * h_size), jnp.float32),
        "w_f":   scale * jax.random.normal(k3, (x_size, h_size), jnp.float32),
        "u_f":   scale * jax.random.normal(k4, (h_size, h_size), jnp.float32),
        "b_f":   jnp.zeros((1, h_size), jnp.float32),
    }


if __name__ == "__main__":
    key = jax.random.PRNGKey(0)
    k_x, k_h, k_c, k_p = jax.random.split(key, 4)

    # nodes, max children per node, x_size, h_size.
    # H a multiple of 128 keeps all gate slices / output stores lane-aligned;
    # N=64 -> 4 row-tile grid steps (pipelined; shards across v7x TensorCores).
    N, K, X, H = 64, 3, 64, 128

    x = jax.random.normal(k_x, (N, X), jnp.float32)
    child_h = jax.random.normal(k_h, (N, K, H), jnp.float32)
    child_c = jax.random.normal(k_c, (N, K, H), jnp.float32)
    params = init_params(k_p, X, H)
    prep = prepare_params(params)   # hoisted once; reused across all tree levels

    try:
        h, c = treelstm_cell(x, child_h, child_c, prep)
    except Exception:
        # pl.Buffered(1) (single-buffered invariant weights) is not available on every
        # jax release; retry with default double-buffering.
        h, c = treelstm_cell(x, child_h, child_c, prep, single_buffer_weights=False)
    jax.block_until_ready((h, c))

    h_ref, c_ref = treelstm_cell_ref(x, child_h, child_c, params)
    assert h.shape == (N, H) and c.shape == (N, H)
    # bf16 MXU operands (f32 accumulation) -> loosened tolerance vs. the all-f32 reference.
    assert jnp.allclose(h, h_ref, atol=5e-2, rtol=5e-2), float(jnp.max(jnp.abs(h - h_ref)))
    assert jnp.allclose(c, c_ref, atol=5e-2, rtol=5e-2), float(jnp.max(jnp.abs(c - c_ref)))

    print("KERNEL_OK")
</pallas_src>

<mosaic_0001>
module attributes {stable_mosaic.version = 11 : i64} {
  func.func @_treelstm_cell_kernel(%arg0: i32, %arg1: i32, %arg2: memref<16x64xbf16, #tpu.memory_space<vmem>>, %arg3: memref<16x16x128xbf16, #tpu.memory_space<vmem>>, %arg4: memref<16x16x128xf32, #tpu.memory_space<vmem>>, %arg5: memref<64x512xbf16, #tpu.memory_space<vmem>>, %arg6: memref<128x384xbf16, #tpu.memory_space<vmem>>, %arg7: memref<128x128xbf16, #tpu.memory_space<vmem>>, %arg8: memref<1x512xf32, #tpu.memory_space<vmem>>, %arg9: memref<16x256xf32, #tpu.memory_space<vmem>>, %arg10: memref<16x512xf32, #tpu.memory_space<vmem>>, %arg11: memref<16x128xf32, #tpu.memory_space<vmem>>, %arg12: memref<16x128xf32, #tpu.memory_space<vmem>>) attributes {dimension_semantics = [#tpu.dimension_semantics<parallel>, #tpu.dimension_semantics<arbitrary>], iteration_bounds = array<i64: 4, 1>, scalar_prefetch = 0 : i64, scratch_operands = 3 : i64, tpu.core_type = #tpu.core_type<tc>, window_params = [{transform_indices = @transform_0, window_bounds = array<i64: 16, 64>}, {transform_indices = @transform_1, window_bounds = array<i64: 16, 16, 128>}, {transform_indices = @transform_2, window_bounds = array<i64: 16, 16, 128>}, {pipeline_mode = #tpu.pipeline_mode<synchronous>, transform_indices = @transform_3, window_bounds = array<i64: 64, 512>}, {pipeline_mode = #tpu.pipeline_mode<synchronous>, transform_indices = @transform_4, window_bounds = array<i64: 128, 384>}, {pipeline_mode = #tpu.pipeline_mode<synchronous>, transform_indices = @transform_5, window_bounds = array<i64: 128, 128>}, {pipeline_mode = #tpu.pipeline_mode<synchronous>, transform_indices = @transform_6, window_bounds = array<i64: 1, 512>}, {transform_indices = @transform_7, window_bounds = array<i64: 16, 256>}]} {
    %c0_i32 = arith.constant 0 : i32
    %0 = arith.cmpi eq, %arg1, %c0_i32 : i32
    %1 = arith.extui %0 : i1 to i32
    %c0_i32_0 = arith.constant 0 : i32
    %2 = arith.cmpi ne, %1, %c0_i32_0 : i32
    scf.if %2 {
      %c0_22 = arith.constant 0 : index
      %c0_23 = arith.constant 0 : index
      %31 = vector.load %arg2[%c0_22, %c0_23] : memref<16x64xbf16, #tpu.memory_space<vmem>>, vector<16x64xbf16>
      %c0_24 = arith.constant 0 : index
      %c0_25 = arith.constant 0 : index
      %32 = vector.load %arg5[%c0_24, %c0_25] : memref<64x512xbf16, #tpu.memory_space<vmem>>, vector<64x512xbf16>
      %cst_26 = arith.constant dense<0.000000e+00> : vector<16x512xf32>
      %33 = tpu.matmul %31, %32, %cst_26 {dimension_numbers = #tpu.dot_dimension_numbers<[1], [0], [0], [1], [0, 0, 1, 1], [], []>} : vector<16x64xbf16>, vector<64x512xbf16>, vector<16x512xf32> -> vector<16x512xf32>
      %c0_27 = arith.constant 0 : index
      %c0_28 = arith.constant 0 : index
      %34 = vector.load %arg8[%c0_27, %c0_28] : memref<1x512xf32, #tpu.memory_space<vmem>>, vector<1x512xf32>
      %35 = vector.broadcast %34 : vector<1x512xf32> to vector<16x512xf32>
      %36 = arith.addf %33, %35 : vector<16x512xf32>
      %c0_29 = arith.constant 0 : index
      %c0_30 = arith.constant 0 : index
      %37 = vector.load %arg10[%c0_29, %c0_30] : memref<16x512xf32, #tpu.memory_space<vmem>>, vector<16x512xf32>
      tpu.vector_store %arg10[%c0_29, %c0_30], %36 {strides = array<i32>} : memref<16x512xf32, #tpu.memory_space<vmem>>, vector<16x512xf32>,
      %cst_31 = arith.constant 0.000000e+00 : f32
      %38 = vector.broadcast %cst_31 : f32 to vector<16x128xf32>
      %c0_32 = arith.constant 0 : index
      %c0_33 = arith.constant 0 : index
      %39 = vector.load %arg11[%c0_32, %c0_33] : memref<16x128xf32, #tpu.memory_space<vmem>>, vector<16x128xf32>
      tpu.vector_store %arg11[%c0_32, %c0_33], %38 {strides = array<i32>} : memref<16x128xf32, #tpu.memory_space<vmem>>, vector<16x128xf32>,
      %cst_34 = arith.constant 0.000000e+00 : f32
      %40 = vector.broadcast %cst_34 : f32 to vector<16x128xf32>
      %c0_35 = arith.constant 0 : index
      %c0_36 = arith.constant 0 : index
      %41 = vector.load %arg12[%c0_35, %c0_36] : memref<16x128xf32, #tpu.memory_space<vmem>>, vector<16x128xf32>
      tpu.vector_store %arg12[%c0_35, %c0_36], %40 {strides = array<i32>} : memref<16x128xf32, #tpu.memory_space<vmem>>, vector<16x128xf32>,
    } else {
    }
    %c0 = arith.constant 0 : index
    %c0_1 = arith.constant 0 : index
    %c0_2 = arith.constant 0 : index
    %3 = vector.load %arg3[%c0, %c0_1, %c0_2] : memref<16x16x128xbf16, #tpu.memory_space<vmem>>, vector<16x16x128xbf16>
    %c0_3 = arith.constant 0 : index
    %c384 = arith.constant 384 : index
    %4 = vector.load %arg10[%c0_3, %c384] : memref<16x512xf32, #tpu.memory_space<vmem>>, vector<16x128xf32>
    %c0_4 = arith.constant 0 : index
    %c0_5 = arith.constant 0 : index
    %5 = vector.load %arg11[%c0_4, %c0_5] : memref<16x128xf32, #tpu.memory_space<vmem>>, vector<16x128xf32>
    %6 = arith.extf %3 : vector<16x16x128xbf16> to vector<16x16x128xf32>
    %cst = arith.constant dense<0.000000e+00> : vector<16x128xf32>
    %7 = vector.multi_reduction <add>, %6, %cst [1] : vector<16x16x128xf32> to vector<16x128xf32>
    %8 = arith.addf %5, %7 : vector<16x128xf32>
    %c0_6 = arith.constant 0 : index
    %c0_7 = arith.constant 0 : index
    %9 = vector.load %arg11[%c0_6, %c0_7] : memref<16x128xf32, #tpu.memory_space<vmem>>, vector<16x128xf32>
    tpu.vector_store %arg11[%c0_6, %c0_7], %8 {strides = array<i32>} : memref<16x128xf32, #tpu.memory_space<vmem>>, vector<16x128xf32>,
    %10 = vector.shape_cast %3 : vector<16x16x128xbf16> to vector<256x128xbf16>
    %c0_8 = arith.constant 0 : index
    %c0_9 = arith.constant 0 : index
    %11 = vector.load %arg7[%c0_8, %c0_9] : memref<128x128xbf16, #tpu.memory_space<vmem>>, vector<128x128xbf16>
    %cst_10 = arith.constant dense<0.000000e+00> : vector<256x128xf32>
    %12 = tpu.matmul %10, %11, %cst_10 {dimension_numbers = #tpu.dot_dimension_numbers<[1], [0], [0], [1], [0, 0, 1, 1], [], []>} : vector<256x128xbf16>, vector<128x128xbf16>, vector<256x128xf32> -> vector<256x128xf32>
    %13 = vector.shape_cast %12 : vector<256x128xf32> to vector<16x16x128xf32>
    %14 = vector.shape_cast %4 : vector<16x128xf32> to vector<16x1x128xf32>
    %15 = vector.broadcast %14 : vector<16x1x128xf32> to vector<16x16x128xf32>
    %16 = arith.addf %13, %15 : vector<16x16x128xf32>
    %17 = arith.negf %16 : vector<16x16x128xf32>
    %18 = math.exp %17 : vector<16x16x128xf32>
    %cst_11 = arith.constant 1.000000e+00 : f32
    %19 = vector.broadcast %cst_11 : f32 to vector<16x16x128xf32>
    %20 = arith.addf %19, %18 : vector<16x16x128xf32>
    %21 = arith.divf %19, %20 : vector<16x16x128xf32>
    %c0_12 = arith.constant 0 : index
    %c0_13 = arith.constant 0 : index
    %22 = vector.load %arg12[%c0_12, %c0_13] : memref<16x128xf32, #tpu.memory_space<vmem>>, vector<16x128xf32>
    %c0_14 = arith.constant 0 : index
    %c0_15 = arith.constant 0 : index
    %c0_16 = arith.constant 0 : index
    %23 = vector.load %arg4[%c0_14, %c0_15, %c0_16] : memref<16x16x128xf32, #tpu.memory_space<vmem>>, vector<16x16x128xf32>
    %24 = arith.mulf %21, %23 : vector<16x16x128xf32>
    %cst_17 = arith.constant dense<0.000000e+00> : vector<16x128xf32>
    %25 = vector.multi_reduction <add>, %24, %cst_17 [1] : vector<16x16x128xf32> to vector<16x128xf32>
    %26 = arith.addf %22, %25 : vector<16x128xf32>
    %c0_18 = arith.constant 0 : index
    %c0_19 = arith.constant 0 : index
    %27 = vector.load %arg12[%c0_18, %c0_19] : memref<16x128xf32, #tpu.memory_space<vmem>>, vector<16x128xf32>
    tpu.vector_store %arg12[%c0_18, %c0_19], %26 {strides = array<i32>} : memref<16x128xf32, #tpu.memory_space<vmem>>, vector<16x128xf32>,
    %c0_i32_20 = arith.constant 0 : i32
    %28 = arith.cmpi eq, %arg1, %c0_i32_20 : i32
    %29 = arith.extui %28 : i1 to i32
    %c0_i32_21 = arith.constant 0 : i32
    %30 = arith.cmpi ne, %29, %c0_i32_21 : i32
    scf.if %30 {
      %c0_22 = arith.constant 0 : index
      %c0_23 = arith.constant 0 : index
      %31 = vector.load %arg11[%c0_22, %c0_23] : memref<16x128xf32, #tpu.memory_space<vmem>>, vector<16x128xf32>
      %32 = arith.truncf %31 : vector<16x128xf32> to vector<16x128xbf16>
      %c0_24 = arith.constant 0 : index
      %c0_25 = arith.constant 0 : index
      %33 = vector.load %arg6[%c0_24, %c0_25] : memref<128x384xbf16, #tpu.memory_space<vmem>>, vector<128x384xbf16>
      %cst_26 = arith.constant dense<0.000000e+00> : vector<16x384xf32>
      %34 = tpu.matmul %32, %33, %cst_26 {dimension_numbers = #tpu.dot_dimension_numbers<[1], [0], [0], [1], [0, 0, 1, 1], [], []>} : vector<16x128xbf16>, vector<128x384xbf16>, vector<16x384xf32> -> vector<16x384xf32>
      %c0_27 = arith.constant 0 : index
      %c0_28 = arith.constant 0 : index
      %35 = vector.load %arg10[%c0_27, %c0_28] : memref<16x512xf32, #tpu.memory_space<vmem>>, vector<16x384xf32>
      %36 = arith.addf %35, %34 : vector<16x384xf32>
      %37 = vector.extract_strided_slice %36 {offsets = [0, 0], sizes = [16, 128], strides = [1, 1]} : vector<16x384xf32> to vector<16x128xf32>
      %38 = arith.negf %37 : vector<16x128xf32>
      %39 = math.exp %38 : vector<16x128xf32>
      %cst_29 = arith.constant 1.000000e+00 : f32
      %40 = vector.broadcast %cst_29 : f32 to vector<16x128xf32>
      %41 = arith.addf %40, %39 : vector<16x128xf32>
      %42 = arith.divf %40, %41 : vector<16x128xf32>
      %43 = vector.extract_strided_slice %36 {offsets = [0, 128], sizes = [16, 128], strides = [1, 1]} : vector<16x384xf32> to vector<16x128xf32>
      %44 = arith.negf %43 : vector<16x128xf32>
      %45 = math.exp %44 : vector<16x128xf32>
      %cst_30 = arith.constant 1.000000e+00 : f32
      %46 = vector.broadcast %cst_30 : f32 to vector<16x128xf32>
      %47 = arith.addf %46, %45 : vector<16x128xf32>
      %48 = arith.divf %46, %47 : vector<16x128xf32>
      %49 = vector.extract_strided_slice %36 {offsets = [0, 256], sizes = [16, 128], strides = [1, 1]} : vector<16x384xf32> to vector<16x128xf32>
      %50 = math.tanh %49 : vector<16x128xf32>
      %51 = arith.mulf %42, %50 : vector<16x128xf32>
      %c0_31 = arith.constant 0 : index
      %c0_32 = arith.constant 0 : index
      %52 = vector.load %arg12[%c0_31, %c0_32] : memref<16x128xf32, #tpu.memory_space<vmem>>, vector<16x128xf32>
      %53 = arith.addf %51, %52 : vector<16x128xf32>
      %54 = math.tanh %53 : vector<16x128xf32>
      %55 = arith.mulf %48, %54 : vector<16x128xf32>
      %c0_33 = arith.constant 0 : index
      %c0_34 = arith.constant 0 : index
      %56 = vector.load %arg9[%c0_33, %c0_34] : memref<16x256xf32, #tpu.memory_space<vmem>>, vector<16x128xf32>
      tpu.vector_store %arg9[%c0_33, %c0_34], %55 {strides = array<i32>} : memref<16x256xf32, #tpu.memory_space<vmem>>, vector<16x128xf32>,
      %c0_35 = arith.constant 0 : index
      %c128 = arith.constant 128 : index
      %57 = vector.load %arg9[%c0_35, %c128] : memref<16x256xf32, #tpu.memory_space<vmem>>, vector<16x128xf32>
      tpu.vector_store %arg9[%c0_35, %c128], %53 {strides = array<i32>} : memref<16x256xf32, #tpu.memory_space<vmem>>, vector<16x128xf32>,
    } else {
    }
    return
  }
  func.func @transform_0(%arg0: i32, %arg1: i32) -> (i32, i32) {
    %c0_i32 = arith.constant 0 : i32
    %c0_i32_0 = arith.constant 0 : i32
    return %arg0, %c0_i32 : i32, i32
  }
  func.func @transform_1(%arg0: i32, %arg1: i32) -> (i32, i32, i32) {
    %c0_i32 = arith.constant 0 : i32
    %c0_i32_0 = arith.constant 0 : i32
    return %arg0, %arg1, %c0_i32 : i32, i32, i32
  }
  func.func @transform_2(%arg0: i32, %arg1: i32) -> (i32, i32, i32) {
    %c0_i32 = arith.constant 0 : i32
    %c0_i32_0 = arith.constant 0 : i32
    return %arg0, %arg1, %c0_i32 : i32, i32, i32
  }
  func.func @transform_3(%arg0: i32, %arg1: i32) -> (i32, i32) {
    %c0_i32 = arith.constant 0 : i32
    %c0_i32_0 = arith.constant 0 : i32
    %c0_i32_1 = arith.constant 0 : i32
    return %c0_i32, %c0_i32_0 : i32, i32
  }
  func.func @transform_4(%arg0: i32, %arg1: i32) -> (i32, i32) {
    %c0_i32 = arith.constant 0 : i32
    %c0_i32_0 = arith.constant 0 : i32
    %c0_i32_1 = arith.constant 0 : i32
    return %c0_i32, %c0_i32_0 : i32, i32
  }
  func.func @transform_5(%arg0: i32, %arg1: i32) -> (i32, i32) {
    %c0_i32 = arith.constant 0 : i32
    %c0_i32_0 = arith.constant 0 : i32
    %c0_i32_1 = arith.constant 0 : i32
    return %c0_i32, %c0_i32_0 : i32, i32
  }
  func.func @transform_6(%arg0: i32, %arg1: i32) -> (i32, i32) {
    %c0_i32 = arith.constant 0 : i32
    %c0_i32_0 = arith.constant 0 : i32
    %c0_i32_1 = arith.constant 0 : i32
    return %c0_i32, %c0_i32_0 : i32, i32
  }
  func.func @transform_7(%arg0: i32, %arg1: i32) -> (i32, i32) {
    %c0_i32 = arith.constant 0 : i32
    %c0_i32_0 = arith.constant 0 : i32
    return %arg0, %c0_i32 : i32, i32
  }
}

module attributes {stable_mosaic.version = 11 : i64} {
  func.func @_treelstm_cell_kernel(%arg0: i32, %arg1: i32, %arg2: memref<16x64xbf16, #tpu.memory_space<vmem>>, %arg3: memref<16x16x128xbf16, #tpu.memory_space<vmem>>, %arg4: memref<16x16x128xf32, #tpu.memory_space<vmem>>, %arg5: memref<64x512xbf16, #tpu.memory_space<vmem>>, %arg6: memref<128x384xbf16, #tpu.memory_space<vmem>>, %arg7: memref<128x128xbf16, #tpu.memory_space<vmem>>, %arg8: memref<1x512xf32, #tpu.memory_space<vmem>>, %arg9: memref<16x256xf32, #tpu.memory_space<vmem>>, %arg10: memref<16x512xf32, #tpu.memory_space<vmem>>, %arg11: memref<16x128xf32, #tpu.memory_space<vmem>>, %arg12: memref<16x128xf32, #tpu.memory_space<vmem>>) attributes {dimension_semantics = [#tpu.dimension_semantics<parallel>, #tpu.dimension_semantics<arbitrary>], iteration_bounds = array<i64: 4, 1>, scalar_prefetch = 0 : i64, scratch_operands = 3 : i64, tpu.core_type = #tpu.core_type<tc>, window_params = [{transform_indices = @transform_0, window_bounds = array<i64: 16, 64>}, {transform_indices = @transform_1, window_bounds = array<i64: 16, 16, 128>}, {transform_indices = @transform_2, window_bounds = array<i64: 16, 16, 128>}, {pipeline_mode = #tpu.pipeline_mode<synchronous>, transform_indices = @transform_3, window_bounds = array<i64: 64, 512>}, {pipeline_mode = #tpu.pipeline_mode<synchronous>, transform_indices = @transform_4, window_bounds = array<i64: 128, 384>}, {pipeline_mode = #tpu.pipeline_mode<synchronous>, transform_indices = @transform_5, window_bounds = array<i64: 128, 128>}, {pipeline_mode = #tpu.pipeline_mode<synchronous>, transform_indices = @transform_6, window_bounds = array<i64: 1, 512>}, {transform_indices = @transform_7, window_bounds = array<i64: 16, 256>}]} {
    %c0_i32 = arith.constant 0 : i32
    %0 = arith.cmpi eq, %arg1, %c0_i32 : i32
    %1 = arith.extui %0 : i1 to i32
    %c0_i32_0 = arith.constant 0 : i32
    %2 = arith.cmpi ne, %1, %c0_i32_0 : i32
    scf.if %2 {
      %c0_22 = arith.constant 0 : index
      %c0_23 = arith.constant 0 : index
      %31 = vector.load %arg2[%c0_22, %c0_23] : memref<16x64xbf16, #tpu.memory_space<vmem>>, vector<16x64xbf16>
      %c0_24 = arith.constant 0 : index
      %c0_25 = arith.constant 0 : index
      %32 = vector.load %arg5[%c0_24, %c0_25] : memref<64x512xbf16, #tpu.memory_space<vmem>>, vector<64x512xbf16>
      %cst_26 = arith.constant dense<0.000000e+00> : vector<16x512xf32>
      %33 = tpu.matmul %31, %32, %cst_26 {dimension_numbers = #tpu.dot_dimension_numbers<[1], [0], [0], [1], [0, 0, 1, 1], [], []>} : vector<16x64xbf16>, vector<64x512xbf16>, vector<16x512xf32> -> vector<16x512xf32>
      %c0_27 = arith.constant 0 : index
      %c0_28 = arith.constant 0 : index
      %34 = vector.load %arg8[%c0_27, %c0_28] : memref<1x512xf32, #tpu.memory_space<vmem>>, vector<1x512xf32>
      %35 = vector.broadcast %34 : vector<1x512xf32> to vector<16x512xf32>
      %36 = arith.addf %33, %35 : vector<16x512xf32>
      %c0_29 = arith.constant 0 : index
      %c0_30 = arith.constant 0 : index
      %37 = vector.load %arg10[%c0_29, %c0_30] : memref<16x512xf32, #tpu.memory_space<vmem>>, vector<16x512xf32>
      tpu.vector_store %arg10[%c0_29, %c0_30], %36 {strides = array<i32>} : memref<16x512xf32, #tpu.memory_space<vmem>>, vector<16x512xf32>,
      %cst_31 = arith.constant 0.000000e+00 : f32
      %38 = vector.broadcast %cst_31 : f32 to vector<16x128xf32>
      %c0_32 = arith.constant 0 : index
      %c0_33 = arith.constant 0 : index
      %39 = vector.load %arg11[%c0_32, %c0_33] : memref<16x128xf32, #tpu.memory_space<vmem>>, vector<16x128xf32>
      tpu.vector_store %arg11[%c0_32, %c0_33], %38 {strides = array<i32>} : memref<16x128xf32, #tpu.memory_space<vmem>>, vector<16x128xf32>,
      %cst_34 = arith.constant 0.000000e+00 : f32
      %40 = vector.broadcast %cst_34 : f32 to vector<16x128xf32>
      %c0_35 = arith.constant 0 : index
      %c0_36 = arith.constant 0 : index
      %41 = vector.load %arg12[%c0_35, %c0_36] : memref<16x128xf32, #tpu.memory_space<vmem>>, vector<16x128xf32>
      tpu.vector_store %arg12[%c0_35, %c0_36], %40 {strides = array<i32>} : memref<16x128xf32, #tpu.memory_space<vmem>>, vector<16x128xf32>,
    } else {
    }
    %c0 = arith.constant 0 : index
    %c0_1 = arith.constant 0 : index
    %c0_2 = arith.constant 0 : index
    %3 = vector.load %arg3[%c0, %c0_1, %c0_2] : memref<16x16x128xbf16, #tpu.memory_space<vmem>>, vector<16x16x128xbf16>
    %c0_3 = arith.constant 0 : index
    %c384 = arith.constant 384 : index
    %4 = vector.load %arg10[%c0_3, %c384] : memref<16x512xf32, #tpu.memory_space<vmem>>, vector<16x128xf32>
    %c0_4 = arith.constant 0 : index
    %c0_5 = arith.constant 0 : index
    %5 = vector.load %arg11[%c0_4, %c0_5] : memref<16x128xf32, #tpu.memory_space<vmem>>, vector<16x128xf32>
    %6 = arith.extf %3 : vector<16x16x128xbf16> to vector<16x16x128xf32>
    %cst = arith.constant dense<0.000000e+00> : vector<16x128xf32>
    %7 = vector.multi_reduction <add>, %6, %cst [1] : vector<16x16x128xf32> to vector<16x128xf32>
    %8 = arith.addf %5, %7 : vector<16x128xf32>
    %c0_6 = arith.constant 0 : index
    %c0_7 = arith.constant 0 : index
    %9 = vector.load %arg11[%c0_6, %c0_7] : memref<16x128xf32, #tpu.memory_space<vmem>>, vector<16x128xf32>
    tpu.vector_store %arg11[%c0_6, %c0_7], %8 {strides = array<i32>} : memref<16x128xf32, #tpu.memory_space<vmem>>, vector<16x128xf32>,
    %10 = vector.shape_cast %3 : vector<16x16x128xbf16> to vector<256x128xbf16>
    %c0_8 = arith.constant 0 : index
    %c0_9 = arith.constant 0 : index
    %11 = vector.load %arg7[%c0_8, %c0_9] : memref<128x128xbf16, #tpu.memory_space<vmem>>, vector<128x128xbf16>
    %cst_10 = arith.constant dense<0.000000e+00> : vector<256x128xf32>
    %12 = tpu.matmul %10, %11, %cst_10 {dimension_numbers = #tpu.dot_dimension_numbers<[1], [0], [0], [1], [0, 0, 1, 1], [], []>} : vector<256x128xbf16>, vector<128x128xbf16>, vector<256x128xf32> -> vector<256x128xf32>
    %13 = vector.shape_cast %12 : vector<256x128xf32> to vector<16x16x128xf32>
    %14 = vector.shape_cast %4 : vector<16x128xf32> to vector<16x1x128xf32>
    %15 = vector.broadcast %14 : vector<16x1x128xf32> to vector<16x16x128xf32>
    %16 = arith.addf %13, %15 : vector<16x16x128xf32>
    %17 = arith.negf %16 : vector<16x16x128xf32>
    %18 = math.exp %17 : vector<16x16x128xf32>
    %cst_11 = arith.constant 1.000000e+00 : f32
    %19 = vector.broadcast %cst_11 : f32 to vector<16x16x128xf32>
    %20 = arith.addf %19, %18 : vector<16x16x128xf32>
    %21 = arith.divf %19, %20 : vector<16x16x128xf32>
    %c0_12 = arith.constant 0 : index
    %c0_13 = arith.constant 0 : index
    %22 = vector.load %arg12[%c0_12, %c0_13] : memref<16x128xf32, #tpu.memory_space<vmem>>, vector<16x128xf32>
    %c0_14 = arith.constant 0 : index
    %c0_15 = arith.constant 0 : index
    %c0_16 = arith.constant 0 : index
    %23 = vector.load %arg4[%c0_14, %c0_15, %c0_16] : memref<16x16x128xf32, #tpu.memory_space<vmem>>, vector<16x16x128xf32>
    %24 = arith.mulf %21, %23 : vector<16x16x128xf32>
    %cst_17 = arith.constant dense<0.000000e+00> : vector<16x128xf32>
    %25 = vector.multi_reduction <add>, %24, %cst_17 [1] : vector<16x16x128xf32> to vector<16x128xf32>
    %26 = arith.addf %22, %25 : vector<16x128xf32>
    %c0_18 = arith.constant 0 : index
    %c0_19 = arith.constant 0 : index
    %27 = vector.load %arg12[%c0_18, %c0_19] : memref<16x128xf32, #tpu.memory_space<vmem>>, vector<16x128xf32>
    tpu.vector_store %arg12[%c0_18, %c0_19], %26 {strides = array<i32>} : memref<16x128xf32, #tpu.memory_space<vmem>>, vector<16x128xf32>,
    %c0_i32_20 = arith.constant 0 : i32
    %28 = arith.cmpi eq, %arg1, %c0_i32_20 : i32
    %29 = arith.extui %28 : i1 to i32
    %c0_i32_21 = arith.constant 0 : i32
    %30 = arith.cmpi ne, %29, %c0_i32_21 : i32
    scf.if %30 {
      %c0_22 = arith.constant 0 : index
      %c0_23 = arith.constant 0 : index
      %31 = vector.load %arg11[%c0_22, %c0_23] : memref<16x128xf32, #tpu.memory_space<vmem>>, vector<16x128xf32>
      %32 = arith.truncf %31 : vector<16x128xf32> to vector<16x128xbf16>
      %c0_24 = arith.constant 0 : index
      %c0_25 = arith.constant 0 : index
      %33 = vector.load %arg6[%c0_24, %c0_25] : memref<128x384xbf16, #tpu.memory_space<vmem>>, vector<128x384xbf16>
      %cst_26 = arith.constant dense<0.000000e+00> : vector<16x384xf32>
      %34 = tpu.matmul %32, %33, %cst_26 {dimension_numbers = #tpu.dot_dimension_numbers<[1], [0], [0], [1], [0, 0, 1, 1], [], []>} : vector<16x128xbf16>, vector<128x384xbf16>, vector<16x384xf32> -> vector<16x384xf32>
      %c0_27 = arith.constant 0 : index
      %c0_28 = arith.constant 0 : index
      %35 = vector.load %arg10[%c0_27, %c0_28] : memref<16x512xf32, #tpu.memory_space<vmem>>, vector<16x384xf32>
      %36 = arith.addf %35, %34 : vector<16x384xf32>
      %37 = vector.extract_strided_slice %36 {offsets = [0, 0], sizes = [16, 128], strides = [1, 1]} : vector<16x384xf32> to vector<16x128xf32>
      %38 = arith.negf %37 : vector<16x128xf32>
      %39 = math.exp %38 : vector<16x128xf32>
      %cst_29 = arith.constant 1.000000e+00 : f32
      %40 = vector.broadcast %cst_29 : f32 to vector<16x128xf32>
      %41 = arith.addf %40, %39 : vector<16x128xf32>
      %42 = arith.divf %40, %41 : vector<16x128xf32>
      %43 = vector.extract_strided_slice %36 {offsets = [0, 128], sizes = [16, 128], strides = [1, 1]} : vector<16x384xf32> to vector<16x128xf32>
      %44 = arith.negf %43 : vector<16x128xf32>
      %45 = math.exp %44 : vector<16x128xf32>
      %cst_30 = arith.constant 1.000000e+00 : f32
      %46 = vector.broadcast %cst_30 : f32 to vector<16x128xf32>
      %47 = arith.addf %46, %45 : vector<16x128xf32>
      %48 = arith.divf %46, %47 : vector<16x128xf32>
      %49 = vector.extract_strided_slice %36 {offsets = [0, 256], sizes = [16, 128], strides = [1, 1]} : vector<16x384xf32> to vector<16x128xf32>
      %50 = math.tanh %49 : vector<16x128xf32>
      %51 = arith.mulf %42, %50 : vector<16x128xf32>
      %c0_31 = arith.constant 0 : index
      %c0_32 = arith.constant 0 : index
      %52 = vector.load %arg12[%c0_31, %c0_32] : memref<16x128xf32, #tpu.memory_space<vmem>>, vector<16x128xf32>
      %53 = arith.addf %51, %52 : vector<16x128xf32>
      %54 = math.tanh %53 : vector<16x128xf32>
      %55 = arith.mulf %48, %54 : vector<16x128xf32>
      %c0_33 = arith.constant 0 : index
      %c0_34 = arith.constant 0 : index
      %56 = vector.load %arg9[%c0_33, %c0_34] : memref<16x256xf32, #tpu.memory_space<vmem>>, vector<16x128xf32>
      tpu.vector_store %arg9[%c0_33, %c0_34], %55 {strides = array<i32>} : memref<16x256xf32, #tpu.memory_space<vmem>>, vector<16x128xf32>,
      %c0_35 = arith.constant 0 : index
      %c128 = arith.constant 128 : index
      %57 = vector.load %arg9[%c0_35, %c128] : memref<16x256xf32, #tpu.memory_space<vmem>>, vector<16x128xf32>
      tpu.vector_store %arg9[%c0_35, %c128], %53 {strides = array<i32>} : memref<16x256xf32, #tpu.memory_space<vmem>>, vector<16x128xf32>,
    } else {
    }
    return
  }
  func.func @transform_0(%arg0: i32, %arg1: i32) -> (i32, i32) {
    %c0_i32 = arith.constant 0 : i32
    %c0_i32_0 = arith.constant 0 : i32
    return %arg0, %c0_i32 : i32, i32
  }
  func.func @transform_1(%arg0: i32, %arg1: i32) -> (i32, i32, i32) {
    %c0_i32 = arith.constant 0 : i32
    %c0_i32_0 = arith.constant 0 : i32
    return %arg0, %arg1, %c0_i32 : i32, i32, i32
  }
  func.func @transform_2(%arg0: i32, %arg1: i32) -> (i32, i32, i32) {
    %c0_i32 = arith.constant 0 : i32
    %c0_i32_0 = arith.constant 0 : i32
    return %arg0, %arg1, %c0_i32 : i32, i32, i32
  }
  func.func @transform_3(%arg0: i32, %arg1: i32) -> (i32, i32) {
    %c0_i32 = arith.constant 0 : i32
    %c0_i32_0 = arith.constant 0 : i32
    %c0_i32_1 = arith.constant 0 : i32
    return %c0_i32, %c0_i32_0 : i32, i32
  }
  func.func @transform_4(%arg0: i32, %arg1: i32) -> (i32, i32) {
    %c0_i32 = arith.constant 0 : i32
    %c0_i32_0 = arith.constant 0 : i32
    %c0_i32_1 = arith.constant 0 : i32
    return %c0_i32, %c0_i32_0 : i32, i32
  }
  func.func @transform_5(%arg0: i32, %arg1: i32) -> (i32, i32) {
    %c0_i32 = arith.constant 0 : i32
    %c0_i32_0 = arith.constant 0 : i32
    %c0_i32_1 = arith.constant 0 : i32
    return %c0_i32, %c0_i32_0 : i32, i32
  }
  func.func @transform_6(%arg0: i32, %arg1: i32) -> (i32, i32) {
    %c0_i32 = arith.constant 0 : i32
    %c0_i32_0 = arith.constant 0 : i32
    %c0_i32_1 = arith.constant 0 : i32
    return %c0_i32, %c0_i32_0 : i32, i32
  }
  func.func @transform_7(%arg0: i32, %arg1: i32) -> (i32, i32) {
    %c0_i32 = arith.constant 0 : i32
    %c0_i32_0 = arith.constant 0 : i32
    return %arg0, %c0_i32 : i32, i32
  }
}

</mosaic_0001>

<bundles_post_ra>
// kernel: treelstm_cell.1
= control target key start
LH: loop header
LB: loop body
LE: loop exit
PB: predicated region body
PF: predicated region fallthrough
CT: control target
= control target key end

     0   :  { %s2771_s24 = smov 0   ;;  %s2773_s25 = smov 0   ;;  %s3328_s0 = inlined_call_operand.vmem [shape: bf16[64,64], index: 0, kind: input, shape index: {}]   ;;  %s3329_s1 = inlined_call_operand.vmem [shape: bf16[64,16,128], index: 1, kind: input, shape index: {}]   ;;  %s3330_s2 = inlined_call_operand.vmem [shape: f32[64,16,128], index: 2, kind: input, shape index: {}]   ;;  %s3331_s3 = inlined_call_operand.vmem [shape: bf16[64,512], index: 3, kind: input, shape index: {}]   ;;  %s3332_s4 = inlined_call_operand.vmem [shape: bf16[128,384], index: 4, kind: input, shape index: {}]   ;;  %s3333_s5 = inlined_call_operand.vmem [shape: bf16[128,128], index: 5, kind: input, shape index: {}]   ;;  %s3334_s6 = inlined_call_operand.vmem [shape: f32[1,512], index: 6, kind: input, shape index: {}]   ;;  %s3335_s7 = inlined_call_operand.vmem [shape: f32[64,256], index: 7, kind: output, shape index: {}]  }
   0x1   :  { %s2775_s26 = smov 0  }
   0x2 LB: > { %s29_s27 = sadd.s32 1, %s2721_s25  ;;  %p2181_p0 = scmp.ge.s32.totalorder %s2725_s26, 1  ;;  %s2725_s26 = sphi %s2775_s26, %s17_s26   ;;  %s2721_s25 = sphi %s2773_s25, %s3337_s25   ;;  %s2717_s24 = sphi %s2771_s24, %s3336_s24  }
   0x3   : > { %p31_p1 = scmp.ge.s32.totalorder %s29_s27, 4  ;;  %p288_p2 = scmp.lt.s32.totalorder %s2725_s26, 5 }
   0x5   : > { %s3339_s27 = smov (%p31_p1, %s29_s27), 0  ;;  %p289_p3 = pnand %p2181_p0, %p288_p2 }
   0x6   : > { %v2454_v0 = vld [vmem:[%s3331_s3 + $0x4] ss:$16 sps:$4 sm:$0xff] (!%p289_p3)   ;;  %s2182_s30 = sshll.u32 (!%p289_p3), %s2717_s24, 1  ;;  %v2456_v1 = vld [vmem:[%s3331_s3 + $0xc] ss:$16 sps:$4 sm:$0xff] (!%p289_p3)   ;;  %v2727_v2 = vmov (!%p289_p3), 0  }
   0x7   : > { %292 = sbr.rel (%p289_p3) target bundleno = 393 (0x189), region = 48  ;;  %587 = vmatprep.mubr.bf16.mxu1 (!%p289_p3), %v2727_v2  ;;  %544 = vmatprep.mubr.bf16.mxu0 (!%p289_p3), %v2727_v2  ;;  %p342_p4 = scmp.lt.s32.totalorder (!%p289_p3), %s2182_s30, 7  ;;  %v2458_v3 = vld [vmem:[%s3331_s3] ss:$16 sps:$4 sm:$0xff] (!%p289_p3)   ;;  %v2459_v4 = vld [vmem:[%s3331_s3 + $0x8] ss:$16 sps:$4 sm:$0xff] (!%p289_p3)  }
   0x8   : > { %512 = vmatprep.subr.bf16.mxu0 (!%p289_p3), %v2454_v0  ;;  %s2184_s14 = sshll.u32 (!%p289_p3), %s2717_s24, 4  ;;  %555 = vmatprep.subr.bf16.mxu1 (!%p289_p3), %v2456_v1  ;;  %v2460_v5 = vld [vmem:[%s3331_s3 + $0x24] ss:$16 sps:$4 sm:$0xff] (!%p289_p3)   ;;  %v2462_v6 = vld [vmem:[%s3331_s3 + $0x2c] ss:$16 sps:$4 sm:$0xff] (!%p289_p3)   ;;  %vm508_vm0 = vcmask (!%p289_p3), 523264  }
   0x9   : > { %513 = vmatpush1.bf16.msra.mxu0 (!%p289_p3), %v2458_v3  ;;  %556 = vmatpush1.bf16.msra.mxu1 (!%p289_p3), %v2459_v4  ;;  %v2464_v7 = vld [vmem:[%s3331_s3 + $0x20] ss:$16 sps:$4 sm:$0xff] (!%p289_p3)   ;;  %v2465_v8 = vld [vmem:[%s3331_s3 + $0x28] ss:$16 sps:$4 sm:$0xff] (!%p289_p3)   ;;  %p349_p5 = scmp.lt.s32.totalorder (!%p289_p3), %s2184_s14, 63  ;;  %vm806_vm1 = vcmask (!%p289_p3), 1041409  }
   0xa   : > { %514 = vmatprep.subr.bf16.mxu0 (!%p289_p3), %v2460_v5  ;;  %557 = vmatprep.subr.bf16.mxu1 (!%p289_p3), %v2462_v6  ;;  %v2466_v9 = vld [vmem:[%s3331_s3 + $0x44] ss:$16 sps:$4 sm:$0xff] (!%p289_p3)   ;;  %v2468_v10 = vld [vmem:[%s3331_s3 + $0x4c] ss:$16 sps:$4 sm:$0xff] (!%p289_p3)   ;;  %v2470_v11 = vld [vmem:[%s3331_s3 + $0x40] ss:$16 sps:$4 sm:$0xff] (!%p289_p3)  }
   0xb   : > { %v2471_v12 = vld [vmem:[%s3331_s3 + $0x48] ss:$16 sps:$4 sm:$0xff] (!%p289_p3)   ;;  %v2472_v13 = vld [vmem:[%s3331_s3 + $0x64] ss:$16 sps:$4 sm:$0xff] (!%p289_p3)   ;;  %v2474_v14 = vld [vmem:[%s3331_s3 + $0x6c] ss:$16 sps:$4 sm:$0xff] (!%p289_p3)  }
   0xc   : > { %v2476_v15 = vld [vmem:[%s3331_s3 + $0x60] ss:$16 sps:$4 sm:$0xff] (!%p289_p3)   ;;  %v2477_v16 = vld [vmem:[%s3331_s3 + $0x68] ss:$16 sps:$4 sm:$0xff] (!%p289_p3)   ;;  %vm808_vm2 = vcmask (!%p289_p3), 1042434   ;;  %vm810_vm3 = vcmask (!%p289_p3), 1043459  }
   0xd   : > { %515 = vmatpush1.bf16.msra.mxu0 (!%p289_p3), %v2464_v7  ;;  %558 = vmatpush1.bf16.msra.mxu1 (!%p289_p3), %v2465_v8  ;;  %v2479_v17 = vld [vmem:[%s3333_s5] sm:$0xff] (!%p289_p3)   ;;  %v2480_v19 = vld [vmem:[%s3333_s5 + $0x8] sm:$0xff] (!%p289_p3)   ;;  %v2481_v21 = vld [vmem:[%s3333_s5 + $0x10] sm:$0xff] (!%p289_p3)   ;;  %vm812_vm4 = vcmask (!%p289_p3), 1044484   ;;  %vm814_vm5 = vcmask (!%p289_p3), 1045509   ;;  %vm816_vm6 = vcmask (!%p289_p3), 1046534  }
   0xe   : > { %s3341_s30 = smov (!%p342_p4, %s2182_s30), 7  ;;  %516 = vmatprep.subr.bf16.mxu0 %v2466_v9  ;;  %559 = vmatprep.subr.bf16.mxu1 %v2468_v10  ;;  %s3343_s14 = smov (!%p349_p5, %s2184_s14), 63  ;;  %v2482_v38 = vld [vmem:[%s3333_s5 + $0x18] sm:$0xff]   ;;  %v2483_v51 = vld [vmem:[%s3333_s5 + $0x20] sm:$0xff]   ;;  %v2484_v63 = vld [vmem:[%s3333_s5 + $0x28] sm:$0xff]   ;;  %vm818_vm7 = vcmask 1047559  }
   0xf   : > { %s2183_s23 = sshll.u32 %s3341_s30, 2  ;;  %s2298_s8 = sshll.u32 %s3343_s14, 3  ;;  %vm2729_vm8 = vmmov 0  }
  0x10   : > { %s345_s18 = scalar_lea.vmem %s3328_s0, %s2183_s23  ;;  %s2858_s11 = scalar_lea.vmem %s3329_s1, %s2298_s8 }
  0x11   : > { %517 = vmatpush1.bf16.msra.mxu0 %v2470_v11  ;;  %560 = vmatpush1.bf16.msra.mxu1 %v2471_v12  ;;  %v2478_v18 = vld [vmem:[%s345_s18] sm:$0xff]   ;;  %v2869_v25 = vld [vmem:[%s2858_s11 + $0x8] sm:$0xff]   ;;  %v2879_v37 = vld [vmem:[%s2858_s11 + $0x10] sm:$0xff]   ;;  %s2299_s28 = sshll.u32 %s3343_s14, 4 }
  0x12   : > { %518 = vmatprep.subr.bf16.mxu0 %v2472_v13  ;;  %561 = vmatprep.subr.bf16.mxu1 %v2474_v14  ;;  %v610_v20 = vld [vmem:[%s2858_s11] sm:$0xff]   ;;  %v648_v28 = vunpack.c.l.bf16 %v2869_v25  ;;  %v2873_v29 = vld [vmem:[%s2858_s11 + $0x48] sm:$0xff]   ;;  %v649_v31 = vunpack.c.h.bf16 %v2869_v25  ;;  %v650_v41 = vunpack.c.l.bf16 %v2879_v37  ;;  %v651_v42 = vunpack.c.h.bf16 %v2879_v37  ;;  %v2887_v47 = vld [vmem:[%s2858_s11 + $0x50] sm:$0xff]   ;;  %s3159_s29 = scalar_lea.vmem %s3330_s2, %s2299_s28 }
  0x13   : > { %v646_v22 = vunpack.c.l.bf16 %v610_v20  ;;  %v647_v23 = vunpack.c.h.bf16 %v610_v20  ;;  %v626_v24 = vld [vmem:[%s2858_s11 + $0x40] sm:$0xff]   ;;  %v664_v32 = vunpack.c.l.bf16 %v2873_v29  ;;  %v665_v34 = vunpack.c.h.bf16 %v2873_v29  ;;  %v2895_v53 = vld [vmem:[%s2858_s11 + $0x18] sm:$0xff]   ;;  %v2485_v11 = vld [vmem:[%s3333_s5 + $0x30] sm:$0xff]  }
  0x14   : > { %v662_v26 = vunpack.c.l.bf16 %v626_v24  ;;  %v663_v27 = vunpack.c.h.bf16 %v626_v24  ;;  %v685_v36 = vadd.f32 %v649_v31, %v648_v28  ;;  %v692_v48 = vadd.f32 %v651_v42, %v650_v41  ;;  %v2900_v56 = vld [vmem:[%s2858_s11 + $0x58] sm:$0xff]   ;;  %v2908_v4 = vld [vmem:[%s2858_s11 + $0x20] sm:$0xff]   ;;  %v2927_v31 = vld [vmem:[%s2858_s11 + $0x68] sm:$0xff]  }
  0x15   : > { %519 = vmatpush1.bf16.msra.mxu0 %v2476_v15  ;;  %562 = vmatpush1.bf16.msra.mxu1 %v2477_v16  ;;  %v678_v30 = vadd.f32 %v647_v23, %v646_v22  ;;  %v741_v40 = vadd.f32 %v665_v34, %v664_v32  ;;  %v666_v49 = vunpack.c.l.bf16 %v2887_v47  ;;  %v667_v50 = vunpack.c.h.bf16 %v2887_v47  ;;  %v2915_v14 = vld [vmem:[%s2858_s11 + $0x60] sm:$0xff]   ;;  %v2934_v41 = vld [vmem:[%s2858_s11 + $0x30] sm:$0xff]  }
  0x16   : > { %2334 = vmatprep.subr.bf16.mxu0 %v2479_v17  ;;  %2402 = vmatprep.subr.bf16.mxu1 %v2479_v17  ;;  %v734_v33 = vadd.f32 %v663_v27, %v662_v26  ;;  %v686_v43 = vrot.slane %v685_v36, 4  ;;  %v652_v54 = vunpack.c.l.bf16 %v2895_v53  ;;  %v653_v55 = vunpack.c.h.bf16 %v2895_v53  ;;  %v2486_v27 = vld [vmem:[%s3333_s5 + $0x38] sm:$0xff]  }
  0x17   : > { %v679_v35 = vrot.slane %v678_v30, 4  ;;  %v742_v46 = vrot.slane %v741_v40, 4  ;;  %v693_v60 = vrot.slane %v692_v48, 4  ;;  %v748_v61 = vadd.f32 %v667_v50, %v666_v49 }
  0x18   : > { %2211 = vmatmul.mubr.msk.bf16.vlgmr.msra.gmra.mrb[0].mxu1 %vm508_vm0, %v2478_v18  ;;  %2210 = vmatmul.mubr.msk.bf16.vlgmr.msra.gmra.mrb[0].mxu0 %vm508_vm0, %v2478_v18  ;;  %v735_v39 = vrot.slane %v734_v33, 4  ;;  %v687_v52 = vadd.f32 %v686_v43, %v685_v36  ;;  %v668_v62 = vunpack.c.l.bf16 %v2900_v56  ;;  %v699_v1 = vadd.f32 %v653_v55, %v652_v54 }
  0x19   : > { %2335 = vmatpush3.bf16.msra.mxu0 %v2479_v17  ;;  %2410 = vmatpush3.bf16.msra.mxu1 %v2479_v17  ;;  %v680_v44 = vadd.f32 %v679_v35, %v678_v30  ;;  %v743_v59 = vadd.f32 %v742_v46, %v741_v40  ;;  %v669_v3 = vunpack.c.h.bf16 %v2900_v56  ;;  %v694_v8 = vadd.f32 %v693_v60, %v692_v48  ;;  %v2493_v48 = vld [vmem:[%s3332_s4 + $0x4] ss:$12 sps:$4 sm:$0xff]  }
  0x1a   : > { %2336 = vmatprep.subr.bf16.mxu0 %v2480_v19  ;;  %2403 = vmatprep.subr.bf16.mxu1 %v2480_v19  ;;  %v736_v45 = vadd.f32 %v735_v39, %v734_v33  ;;  %v688_v0 = vrot.slane %v687_v52, 2  ;;  %v749_v9 = vrot.slane %v748_v61, 4  ;;  %v654_v13 = vunpack.c.l.bf16 %v2908_v4 }
  0x1b   : > { %2350 = vmatprep.mubr.bf16.mxu0 %v610_v20  ;;  %2366 = vmatprep.mubr.bf16.mxu1 %v626_v24  ;;  %v681_v57 = vrot.slane %v680_v44, 2  ;;  %v744_v7 = vrot.slane %v743_v59, 2  ;;  %v755_v10 = vadd.f32 %v669_v3, %v668_v62  ;;  %v700_v15 = vrot.slane %v699_v1, 4 }
  0x1c   : > { %v737_v58 = vrot.slane %v736_v45, 2  ;;  %v689_v12 = vadd.f32 %v688_v0, %v687_v52  ;;  %v655_v17 = vunpack.c.h.bf16 %v2908_v4  ;;  %v695_v22 = vrot.slane %v694_v8, 2  ;;  %v2942_v52 = vld [vmem:[%s2858_s11 + $0x70] sm:$0xff]   ;;  %v2491_v0 = vld [vmem:[%s3332_s4] ss:$12 sps:$4 sm:$0xff]  }
  0x1d   : > { %2337 = vmatpush3.bf16.msra.mxu0 %v2480_v19  ;;  %2411 = vmatpush3.bf16.msra.mxu1 %v2480_v19  ;;  %v682_v5 = vadd.f32 %v681_v57, %v680_v44  ;;  %v756_v16 = vrot.slane %v755_v10, 4  ;;  %v745_v20 = vadd.f32 %v744_v7, %v743_v59  ;;  %v750_v23 = vadd.f32 %v749_v9, %v748_v61  ;;  %v2497_v7 = vld [vmem:[%s3332_s4 + $0x1c] ss:$12 sps:$4 sm:$0xff]  }
  0x1e   : > { %2338 = vmatprep.subr.bf16.mxu0 %v2481_v21  ;;  %2404 = vmatprep.subr.bf16.mxu1 %v2481_v21  ;;  %v738_v6 = vadd.f32 %v737_v58, %v736_v45  ;;  %v706_v24 = vadd.f32 %v655_v17, %v654_v13  ;;  %v670_v26 = vunpack.c.l.bf16 %v2915_v14  ;;  %v690_v28 = vrot.slane %v689_v12, 1 }
  0x1f   : > { %v683_v18 = vrot.slane %v682_v5, 1  ;;  %v671_v30 = vunpack.c.h.bf16 %v2915_v14  ;;  %v701_v32 = vadd.f32 %v700_v15, %v699_v1  ;;  %v757_v33 = vadd.f32 %v756_v16, %v755_v10  ;;  %v2494_v1 = vld [vmem:[%s3332_s4 + $0x8] ss:$12 sps:$4 sm:$0xff]  }
  0x20   : > { %v739_v19 = vrot.slane %v738_v6, 1  ;;  %v707_v34 = vrot.slane %v706_v24, 4  ;;  %v746_v42 = vrot.slane %v745_v20, 1  ;;  %v696_v43 = vadd.f32 %v695_v22, %v694_v8 }
  0x21   : > { %2339 = vmatpush3.bf16.msra.mxu0 %v2481_v21  ;;  %2412 = vmatpush3.bf16.msra.mxu1 %v2481_v21  ;;  %v2919_v21 = vld [vmem:[%s2858_s11 + $0x28] sm:$0xff]   ;;  %v684_v36 = vadd.f32 %v683_v18, %v682_v5  ;;  %v762_v39 = vadd.f32 %v671_v30, %v670_v26  ;;  %v751_v44 = vrot.slane %v750_v23, 2  ;;  %v672_v45 = vunpack.c.l.bf16 %v2927_v31 }
  0x22   : > { %2340 = vmatprep.subr.bf16.mxu0 %v2482_v38  ;;  %2405 = vmatprep.subr.bf16.mxu1 %v2482_v38  ;;  %v656_v35 = vunpack.c.l.bf16 %v2919_v21  ;;  %v657_v40 = vunpack.c.h.bf16 %v2919_v21  ;;  %v691_v46 = vadd.f32 %v690_v28, %v689_v12  ;;  %v702_v54 = vrot.slane %v701_v32, 2  ;;  %v2958_v12 = vld [vmem:[%s2858_s11 + $0x38] sm:$0xff]  }
  0x23   : > { %v763_v49 = vrot.slane %v762_v39, 4  ;;  %v758_v55 = vrot.slane %v757_v33, 2  ;;  %v708_v57 = vadd.f32 %v707_v34, %v706_v24  ;;  %v658_v58 = vunpack.c.l.bf16 %v2934_v41  ;;  %v2498_v24 = vld [vmem:[%s3332_s4 + $0x20] ss:$12 sps:$4 sm:$0xff]  }
  0x24   : > { %v713_v50 = vadd.f32 %v657_v40, %v656_v35  ;;  %v659_v62 = vunpack.c.h.bf16 %v2934_v41  ;;  %v697_v3 = vrot.slane %v696_v43, 1  ;;  %v674_v5 = vunpack.c.l.bf16 %v2942_v52  ;;  %v2979_v35 = vld [vmem:[%s2858_s11 + $0x78] sm:$0xff]   ;;  %s2300_s11 = sshll.u32 %s3341_s30, 4 }
  0x25   : > { %2341 = vmatpush3.bf16.msra.mxu0 %v2482_v38  ;;  %2413 = vmatpush3.bf16.msra.mxu1 %v2482_v38  ;;  %v2930_v38 = vadd.f32 %v739_v19, %v738_v6  ;;  %v764_v59 = vadd.f32 %v763_v49, %v762_v39  ;;  %v2728_v6 = vmov 0.0   ;;  %v752_v8 = vadd.f32 %v751_v44, %v750_v23  ;;  %v2495_v23 = vld [vmem:[%s3332_s4 + $0x18] ss:$12 sps:$4 sm:$0xff]   ;;  %s376_s10 = scalar_lea.vmem %s3335_s7, %s2300_s11 }
  0x26   : > { %2342 = vmatprep.subr.bf16.mxu0 %v2483_v51  ;;  %2406 = vmatprep.subr.bf16.mxu1 %v2483_v51  ;;  %v714_v60 = vrot.slane %v713_v50, 4  ;;  %v807_v13 = vsel %vm806_vm1, %v691_v46, %v684_v36  ;;  %v703_v15 = vadd.f32 %v702_v54, %v701_v32  ;;  %v759_v16 = vadd.f32 %v758_v55, %v757_v33  ;;  %v2505_v32 = vld [vmem:[%s3332_s4 + $0x34] ss:$12 sps:$4 sm:$0xff]   ;;  %v2506_v46 = vld [vmem:[%s3332_s4 + $0x38] ss:$12 sps:$4 sm:$0xff]  }
  0x27   : > { %v675_v17 = vunpack.c.h.bf16 %v2942_v52  ;;  %v709_v18 = vrot.slane %v708_v57, 2  ;;  %v765_v19 = vrot.slane %v764_v59, 2  ;;  %v698_v26 = vadd.f32 %v697_v3, %v696_v43  ;;  %v2507_v3 = vld [vmem:[%s3332_s4 + $0x48] ss:$12 sps:$4 sm:$0xff]  }
  0x28   : > { %v715_v9 = vadd.f32 %v714_v60, %v713_v50  ;;  %v753_v28 = vrot.slane %v752_v8, 1  ;;  %v760_v43 = vrot.slane %v759_v16, 1  ;;  %v677_v49 = vunpack.c.h.bf16 %v2979_v35 }
  0x29   : > { %2343 = vmatpush3.bf16.msra.mxu0 %v2483_v51  ;;  %2414 = vmatpush3.bf16.msra.mxu1 %v2483_v51  ;;  %v673_v51 = vunpack.c.h.bf16 %v2927_v31  ;;  %v710_v44 = vadd.f32 %v709_v18, %v708_v57 }
  0x2a   : > { %2344 = vmatprep.subr.bf16.mxu0 %v2484_v63  ;;  %2407 = vmatprep.subr.bf16.mxu1 %v2484_v63  ;;  %v716_v33 = vrot.slane %v715_v9, 2  ;;  %v754_v50 = vadd.f32 %v753_v28, %v752_v8 }
  0x2b   : > { %v769_v61 = vadd.f32 %v673_v51, %v672_v45  ;;  %v766_v45 = vadd.f32 %v765_v19, %v764_v59  ;;  %v2509_v51 = vld [vmem:[%s3332_s4 + $0x4c] ss:$12 sps:$4 sm:$0xff]  }
  0x2c   : > { %v717_v54 = vadd.f32 %v716_v33, %v715_v9  ;;  %v2522_v33 = vld [vmem:[%s3332_s4 + $0x80] ss:$12 sps:$4 sm:$0xff]  }
  0x2d   : > { %2345 = vmatpush3.bf16.msra.mxu0 %v2484_v63  ;;  %2415 = vmatpush3.bf16.msra.mxu1 %v2484_v63  ;;  %v747_v63 = vadd.f32 %v746_v42, %v745_v20  ;;  %v770_v10 = vrot.slane %v769_v61, 4  ;;  %v704_v42 = vrot.slane %v703_v15, 1 }
  0x2e   : > { %2346 = vmatprep.subr.bf16.mxu0 %v2485_v11  ;;  %2408 = vmatprep.subr.bf16.mxu1 %v2485_v11 }
  0x2f   : > { %v771_v20 = vadd.f32 %v770_v10, %v769_v61  ;;  %v820_v30 = vsel %vm806_vm1, %v747_v63, %v2930_v38  ;;  %v2503_v38 = vld [vmem:[%s3332_s4 + $0x30] ss:$12 sps:$4 sm:$0xff]   ;;  %v809_v61 = vsel %vm808_vm2, %v698_v26, %v807_v13  ;;  %v767_v63 = vrot.slane %v766_v45, 1 }
  0x31   : > { %2347 = vmatpush3.bf16.msra.mxu0 %v2485_v11  ;;  %2416 = vmatpush3.bf16.msra.mxu1 %v2485_v11  ;;  %v720_v11 = vadd.f32 %v659_v62, %v658_v58  ;;  %v772_v36 = vrot.slane %v771_v20, 2  ;;  %v711_v62 = vrot.slane %v710_v44, 1 }
  0x32   : > { %2348 = vmatprep.subr.bf16.mxu0 %v2486_v27  ;;  %2409 = vmatprep.subr.bf16.mxu1 %v2486_v27 }
  0x33   : > { %v721_v22 = vrot.slane %v720_v11, 4  ;;  %v773_v57 = vadd.f32 %v772_v36, %v771_v20  ;;  %v2515_v20 = vld [vmem:[%s3332_s4 + $0x60] ss:$12 sps:$4 sm:$0xff]  }
  0x35   : > { %2349 = vmatpush3.bf16.msra.mxu0 %v2486_v27  ;;  %2417 = vmatpush3.bf16.msra.mxu1 %v2486_v27  ;;  %v776_v27 = vadd.f32 %v675_v17, %v674_v5  ;;  %v722_v34 = vadd.f32 %v721_v22, %v720_v11  ;;  %v2510_v5 = vld [vmem:[%s3332_s4 + $0x50] ss:$12 sps:$4 sm:$0xff]   ;;  %v718_v11 = vrot.slane %v717_v54, 1  ;;  %v774_v13 = vrot.slane %v773_v57, 1 }
  0x36   : > { %1938 = vmatprep.subr.bf16.mxu0 %v2493_v48  ;;  %2382 = vmatprep.subr.bf16.mxu1 %v2728_v6  ;;  %v768_v17 = vadd.f32 %v767_v63, %v766_v45  ;;  %v2527_v45 = vld [vmem:[%s3332_s4 + $0x90] ss:$12 sps:$4 sm:$0xff]  }
  0x37   : > { %v777_v39 = vrot.slane %v776_v27, 4  ;;  %v723_v55 = vrot.slane %v722_v34, 2 }
  0x38   : > { %2351 = vmatmul.mubr.bf16.vlgmr.msra.gmra.mrb[4].mxu0 %v2869_v25  ;;  %2367 = vmatmul.mubr.bf16.vlgmr.msra.gmra.mrb[4].mxu1 %v2873_v29  ;;  %v660_v25 = vunpack.c.l.bf16 %v2958_v12  ;;  %v661_v29 = vunpack.c.h.bf16 %v2958_v12 }
  0x39   : > { %1939 = vmatpush1.bf16.msra.mxu0 %v2491_v0  ;;  %2383 = vmatpush3.bf16.msra.mxu1 %v2494_v1  ;;  %v705_v0 = vadd.f32 %v704_v42, %v703_v15  ;;  %v761_v1 = vadd.f32 %v760_v43, %v759_v16  ;;  %v724_v9 = vadd.f32 %v723_v55, %v722_v34 }
  0x3a   : > { %1940 = vmatprep.subr.bf16.mxu0 %v2497_v7  ;;  %2384 = vmatprep.subr.bf16.mxu1 %v2728_v6  ;;  %v727_v40 = vadd.f32 %v661_v29, %v660_v25  ;;  %v712_v16 = vadd.f32 %v711_v62, %v710_v44  ;;  %v775_v25 = vadd.f32 %v774_v13, %v773_v57 }
  0x3b   : > { %2354 = vmatprep.mubr.bf16.mxu0 %v2879_v37  ;;  %2370 = vmatprep.mubr.bf16.mxu1 %v2887_v47  ;;  %v778_v37 = vadd.f32 %v777_v39, %v776_v27  ;;  %v676_v47 = vunpack.c.l.bf16 %v2979_v35  ;;  %v811_v18 = vsel %vm810_vm3, %v705_v0, %v809_v61  ;;  %v719_v27 = vadd.f32 %v718_v11, %v717_v54 }
  0x3c   : > { %v728_v48 = vrot.slane %v727_v40, 4  ;;  %v813_v28 = vsel %vm812_vm4, %v712_v16, %v811_v18 }
  0x3d   : > { %1941 = vmatpush1.bf16.msra.mxu0 %v2495_v23  ;;  %2385 = vmatpush3.bf16.msra.mxu1 %v2498_v24  ;;  %v779_v58 = vrot.slane %v778_v37, 2  ;;  %v783_v60 = vadd.f32 %v677_v49, %v676_v47  ;;  %v2521_v23 = vld [vmem:[%s3332_s4 + $0x7c] ss:$12 sps:$4 sm:$0xff]   ;;  %v725_v24 = vrot.slane %v724_v9, 1 }
  0x3e   : > { %1942 = vmatprep.subr.bf16.mxu0 %v2505_v32  ;;  %2386 = vmatprep.subr.bf16.mxu1 %v2728_v6  ;;  %v729_v59 = vadd.f32 %v728_v48, %v727_v40  ;;  %v2519_v32 = vld [vmem:[%s3332_s4 + $0x78] ss:$12 sps:$4 sm:$0xff]   ;;  %v815_v40 = vsel %vm814_vm5, %v719_v27, %v813_v28  ;;  %v2534_v48 = vld [vmem:[%s3332_s4 + $0xb0] ss:$12 sps:$4 sm:$0xff]  }
  0x3f   : > { %v784_v8 = vrot.slane %v783_v60, 4  ;;  %v780_v10 = vadd.f32 %v779_v58, %v778_v37  ;;  %v726_v39 = vadd.f32 %v725_v24, %v724_v9  ;;  %v2531_v37 = vld [vmem:[%s3332_s4 + $0xa8] ss:$12 sps:$4 sm:$0xff]  }
  0x40   : > { %2355 = vmatmul.mubr.bf16.gmra.mrb[8].mxu0 %v2895_v53  ;;  %2371 = vmatmul.mubr.bf16.gmra.mrb[8].mxu1 %v2900_v56  ;;  %v730_v7 = vrot.slane %v729_v59, 2  ;;  %v821_v53 = vsel %vm808_vm2, %v754_v50, %v820_v30  ;;  %v2517_v56 = vld [vmem:[%s3332_s4 + $0x64] ss:$12 sps:$4 sm:$0xff]  }
  0x41   : > { %1943 = vmatpush1.bf16.msra.mxu0 %v2503_v38  ;;  %2387 = vmatpush3.bf16.msra.mxu1 %v2506_v46  ;;  %v785_v15 = vadd.f32 %v784_v8, %v783_v60  ;;  %v822_v19 = vsel %vm810_vm3, %v761_v1, %v821_v53  ;;  %v781_v26 = vrot.slane %v780_v10, 1  ;;  %v2530_v38 = vld [vmem:[%s3332_s4 + $0x98] ss:$12 sps:$4 sm:$0xff]  }
  0x42   : > { %1944 = vmatprep.subr.bf16.mxu0 %v2509_v51  ;;  %2388 = vmatprep.subr.bf16.mxu1 %v2728_v6  ;;  %v823_v30 = vsel %vm812_vm4, %v768_v17, %v822_v19 }
  0x43   : > { %2358 = vmatprep.mubr.bf16.mxu0 %v2908_v4  ;;  %2374 = vmatprep.mubr.bf16.mxu1 %v2915_v14  ;;  %v2518_v4 = vld [vmem:[%s3332_s4 + $0x68] ss:$12 sps:$4 sm:$0xff]   ;;  %v731_v14 = vadd.f32 %v730_v7, %v729_v59  ;;  %v786_v22 = vrot.slane %v785_v15, 2  ;;  %v824_v42 = vsel %vm814_vm5, %v775_v25, %v823_v30 }
  0x45   : > { %1945 = vmatpush1.bf16.msra.mxu0 %v2507_v3  ;;  %2389 = vmatpush3.bf16.msra.mxu1 %v2510_v5  ;;  %v787_v29 = vadd.f32 %v786_v22, %v785_v15  ;;  %v732_v34 = vrot.slane %v731_v14, 1 }
  0x46   : > { %1946 = vmatprep.subr.bf16.mxu0 %v2517_v56  ;;  %2390 = vmatprep.subr.bf16.mxu1 %v2728_v6 }
  0x47   : > { %v788_v36 = vrot.slane %v787_v29, 1  ;;  %v733_v43 = vadd.f32 %v732_v34, %v731_v14 }
  0x48   : > { %2359 = vmatmul.mubr.bf16.gmra.mrb[12].mxu0 %v2919_v21  ;;  %2375 = vmatmul.mubr.bf16.gmra.mrb[12].mxu1 %v2927_v31  ;;  %v782_v21 = vadd.f32 %v781_v26, %v780_v10  ;;  %v2529_v31 = vld [vmem:[%s3332_s4 + $0x94] ss:$12 sps:$4 sm:$0xff]  }
  0x49   : > { %1947 = vmatpush1.bf16.msra.mxu0 %v2515_v20  ;;  %2391 = vmatpush3.bf16.msra.mxu1 %v2518_v4  ;;  %v789_v44 = vadd.f32 %v788_v36, %v787_v29 }
  0x4a   : > { %1948 = vmatprep.subr.bf16.mxu0 %v2521_v23  ;;  %2392 = vmatprep.subr.bf16.mxu1 %v2728_v6  ;;  %v825_v46 = vsel %vm816_vm6, %v782_v21, %v824_v42 }
  0x4b   : > { %2362 = vmatprep.mubr.bf16.mxu0 %v2934_v41  ;;  %2378 = vmatprep.mubr.bf16.mxu1 %v2942_v52  ;;  %v2533_v41 = vld [vmem:[%s3332_s4 + $0xac] ss:$12 sps:$4 sm:$0xff]   ;;  %v817_v52 = vsel %vm816_vm6, %v726_v39, %v815_v40  ;;  %v826_v49 = vsel %vm818_vm7, %v789_v44, %v825_v46 }
  0x4c   : > { %v819_v47 = vsel %vm818_vm7, %v733_v43, %v817_v52 }
  0x4d   : > { %1949 = vmatpush1.bf16.msra.mxu0 %v2519_v32  ;;  %2393 = vmatpush3.bf16.msra.mxu1 %v2522_v33 }
  0x4e   : > { %1950 = vmatprep.subr.bf16.mxu0 %v2529_v31  ;;  %2394 = vmatprep.subr.bf16.mxu1 %v2728_v6 }
  0x50   : > { %2363 = vmatmul.mubr.bf16.gmra.mrb[16].mxu0 %v2958_v12  ;;  %2379 = vmatmul.mubr.bf16.gmra.mrb[16].mxu1 %v2979_v35  ;;  %v1777_v12 = vpack.c.bf16 %v826_v49, %v819_v47  ;;  %v403_v35 = vlaneseq }
  0x51   : > { %1951 = vmatpush1.bf16.msra.mxu0 %v2527_v45  ;;  %2395 = vmatpush3.bf16.msra.mxu1 %v2530_v38 }
  0x52   : > { %1952 = vmatprep.subr.bf16.mxu0 %v2533_v41  ;;  %2396 = vmatprep.subr.bf16.mxu1 %v2728_v6  ;;  %v3070_v55 = vshrl.u32 %v403_v35, 7 }
  0x53   : > { %1970 = vmatprep.mubr.bf16.mxu0 %v2727_v2  ;;  %2398 = vmatprep.mubr.msk.bf16.mxu1 %vm2729_vm8, %v2728_v6  ;;  %v2730_v2 = vmov 1966171168   ;;  %v3076_v6 = vld [vmem:[%s3334_s6] sm:$0xf] }
  0x54   : > { %v417_v58 = vsub.s32 3, %v3070_v55  ;;  %v1158_v59 = vunpack.c.l.s4 %v2730_v2  ;;  %v3087_v10 = vsub.s32 0, %v3070_v55  ;;  %v413_v52 = vsub.s32 2, %v3070_v55 }
  0x55   : > { %1953 = vmatpush1.bf16.msra.mxu0 %v2531_v37  ;;  %2397 = vmatpush3.bf16.msra.mxu1 %v2534_v48 }
  0x56   : > { %v418_v60 = vrot.slane %v3076_v6, %v417_v58  ;;  %v1159_v61 = vunpack.c.0.s8 %v1158_v59 }
  0x58   : > { %1971 = vmatmul.mubr.bf16.vlgmr.msra.gmra.mrb[0].mxu0 %v1777_v12  ;;  %2399 = vmatmul.mubr.bf16.vlgmr.msra.gmra.mrb[20].mxu1 %v1777_v12  ;;  %v3080_v63 = vsub.s32 %v1159_v61, %v3070_v55 }
  0xeb   : > { %v3066_v50 = vpop.f32.mrb[0].mxu1 }
  0xec   : > { %v591_v51 = vpop.f32.mrb[1].mxu1 }
  0xed   : > { %v3068_v54 = vpop.f32.mrb[2].mxu1  ;;  %v592_v62 = vadd.f32 %v591_v51, %v418_v60 }
  0xee   : > { %v595_v57 = vpop.f32.mrb[3].mxu1 }
  0xef   : > { %v596_v0 = vadd.f32 %v595_v57, %v418_v60  ;;  %v1163_v1 = vrot.slane %v592_v62, %v3080_v63  ;;  %v1156_v8 = vcombine.high %v592_v62, %v592_v62 }
  0xf1   : > { %v1212_v3 = vrot.slane %v596_v0, %v3080_v63  ;;  %v1171_v5 = vcombine.high %v1163_v1, %v1163_v1  ;;  %v1205_v9 = vcombine.high %v596_v0, %v596_v0  ;;  %v1179_v11 = vrot.slane %v1163_v1, %v3080_v63 }
  0xf2   : > { %v1170_v15 = vrot.slane %v1156_v8, %v3080_v63 }
  0xf3   : > { %v1220_v7 = vcombine.high %v1212_v3, %v1212_v3  ;;  %v1193_v53 = vrot.slane %v1171_v5, %v3080_v63  ;;  %v1228_v13 = vrot.slane %v1212_v3, %v3080_v63  ;;  %v1219_v18 = vrot.slane %v1205_v9, %v3080_v63 }
  0xf4   : > { %v1257_v4 = vrot.slane %v1179_v11, %v3087_v10  ;;  %v1201_v22 = vcombine.high %v1179_v11, %v1179_v11  ;;  %v1172_v29 = vcombine.high %v1170_v15, %v1170_v15  ;;  %v3100_v49 = vrot.slane %v1170_v15, %v3080_v63 }
  0xf5   : > { %v1242_v56 = vrot.slane %v1220_v7, %v3080_v63  ;;  %v1261_v16 = vrot.slane %v1193_v53, %v3087_v10  ;;  %v1289_v14 = vrot.slane %v1228_v13, %v3087_v10  ;;  %v1203_v25 = vcombine.high %v1193_v53, %v1193_v53 }
  0xf6   : > { %v1250_v36 = vcombine.high %v1228_v13, %v1228_v13  ;;  %v1221_v37 = vcombine.high %v1219_v18, %v1219_v18  ;;  %v1265_v47 = vrot.slane %v1201_v22, %v3087_v10  ;;  %v3106_v60 = vrot.slane %v1172_v29, %v3080_v63 }
  0xf7   : > { %v1293_v17 = vrot.slane %v1242_v56, %v3087_v10  ;;  %v1252_v34 = vcombine.high %v1242_v56, %v1242_v56  ;;  %v1269_v35 = vrot.slane %v1203_v25, %v3087_v10  ;;  %v3112_v56 = vrot.slane %v1219_v18, %v3080_v63 }
  0xf8   : > { %v1297_v59 = vrot.slane %v1250_v36, %v3087_v10  ;;  %v3109_v3 = vrot.slane %v1221_v37, %v3080_v63  ;;  %v3121_v18 = vrot.slane %v3076_v6, %v413_v52  ;;  %v1202_v37 = vcombine.high %v3100_v49, %v3100_v49 }
  0xf9   : > { %v1301_v51 = vrot.slane %v1252_v34, %v3087_v10 }
 0x10b   : > { %v2352_v19 = vpop.f32.mrb[4].mxu0  ;;  %v2368_v20 = vpop.f32.mrb[4].mxu1 }
 0x10c   : > { %v1336_v23 = vadd.f32 %v2352_v19, %v1261_v16  ;;  %v1352_v24 = vadd.f32 %v2368_v20, %v1293_v17  ;;  %v1027_v26 = vpop.f32.mrb[5].mxu0  ;;  %v1091_v27 = vpop.f32.mrb[5].mxu1 }
 0x10d   : > { %v1334_v28 = vadd.f32 %v1257_v4, %v1027_v26  ;;  %v1350_v30 = vadd.f32 %v1289_v14, %v1091_v27  ;;  %v2353_v32 = vpop.f32.mrb[6].mxu0  ;;  %v2369_v33 = vpop.f32.mrb[6].mxu1 }
 0x10e   : > { %v2238_v39 = vmul.f32 -1.442695, %v1336_v23  ;;  %v2254_v21 = vmul.f32 -1.442695, %v1352_v24  ;;  %v1337_v31 = vadd.f32 %v2353_v32, %v1261_v16  ;;  %v1353_v40 = vadd.f32 %v2369_v33, %v1293_v17  ;;  %v1030_v42 = vpop.f32.mrb[7].mxu0  ;;  %v1094_v43 = vpop.f32.mrb[7].mxu1 }
 0x10f   : > { %v2236_v44 = vmul.f32 -1.442695, %v1334_v28  ;;  %v2252_v45 = vmul.f32 -1.442695, %v1350_v30  ;;  %v1335_v38 = vadd.f32 %v1257_v4, %v1030_v42  ;;  %v1351_v41 = vadd.f32 %v1289_v14, %v1094_v43 }
 0x110   : > { %2551 = vpow2.f32 %v2238_v39  ;;  %v2239_v46 = vmul.f32 -1.442695, %v1337_v31  ;;  %v2255_v48 = vmul.f32 -1.442695, %v1353_v40  ;;  %v1277_v23 = vrot.slane %v3106_v60, %v3087_v10 }
 0x111   : > { %2553 = vpow2.f32 %v2254_v21  ;;  %v2237_v12 = vmul.f32 -1.442695, %v1335_v38  ;;  %v2253_v57 = vmul.f32 -1.442695, %v1351_v41  ;;  %v1309_v24 = vrot.slane %v3109_v3, %v3087_v10 }
 0x112   : > { %2555 = vpow2.f32 %v2236_v44  ;;  %v1273_v28 = vrot.slane %v3100_v49, %v3087_v10  ;;  %v1305_v30 = vrot.slane %v3112_v56, %v3087_v10 }
 0x113   : > { %2557 = vpow2.f32 %v2252_v45  ;;  %v2356_v58 = vpop.f32.mrb[8].mxu0  ;;  %v2372_v2 = vpop.f32.mrb[8].mxu1 }
 0x114   : > { %2559 = vpow2.f32 %v2239_v46  ;;  %v1340_v61 = vadd.f32 %v2356_v58, %v1269_v35  ;;  %v1356_v62 = vadd.f32 %v2372_v2, %v1301_v51  ;;  %v1043_v0 = vpop.f32.mrb[9].mxu0  ;;  %v1107_v1 = vpop.f32.mrb[9].mxu1  ;;  %v1204_v46 = vcombine.high %v3106_v60, %v3106_v60 }
 0x115   : > { %2561 = vpow2.f32 %v2255_v48  ;;  %v1338_v5 = vadd.f32 %v1265_v47, %v1043_v0  ;;  %v1354_v7 = vadd.f32 %v1297_v59, %v1107_v1  ;;  %v2357_v8 = vpop.f32.mrb[10].mxu0  ;;  %v2373_v53 = vpop.f32.mrb[10].mxu1  ;;  %v3163_v1 = vadd.f32 %v3066_v50, %v3121_v18 }
 0x116   : > { %2563 = vpow2.f32 %v2237_v12  ;;  %v2242_v9 = vmul.f32 -1.442695, %v1340_v61  ;;  %v2258_v11 = vmul.f32 -1.442695, %v1356_v62  ;;  %v1341_v13 = vadd.f32 %v2357_v8, %v1269_v35  ;;  %v1046_v15 = vpop.f32.mrb[11].mxu0  ;;  %v1110_v16 = vpop.f32.mrb[11].mxu1 }
 0x117   : > { %2565 = vpow2.f32 %v2253_v57  ;;  %v2240_v17 = vmul.f32 -1.442695, %v1338_v5  ;;  %v2256_v19 = vmul.f32 -1.442695, %v1354_v7  ;;  %v3114_v20 = vadd.f32 %v2373_v53, %v1301_v51 }
 0x118   : > { %2567 = vpow2.f32 %v2242_v9  ;;  %v2243_v4 = vmul.f32 -1.442695, %v1341_v13  ;;  %v3116_v14 = vadd.f32 %v1265_v47, %v1046_v15  ;;  %v3118_v22 = vadd.f32 %v1297_v59, %v1110_v16 }
 0x119   : > { %2569 = vpow2.f32 %v2258_v11  ;;  %v1253_v35 = vcombine.high %v3109_v3, %v3109_v3  ;;  %v1251_v51 = vcombine.high %v3112_v56, %v3112_v56  ;;  %v1285_v5 = vrot.slane %v1204_v46, %v3087_v10  ;;  %v1576_v46 = vld [vmem:[%s3159_s29 + $0x80] sm:$0xff] }
 0x11a   : > { %v2552_v63 = vpop.eup %2551  ;;  %2571 = vpow2.f32 %v2240_v17  ;;  %v1281_v9 = vrot.slane %v1202_v37, %v3087_v10 }
 0x11b   : > { %v2554_v26 = vpop.eup %2553  ;;  %v1464_v27 = vadd.f32 1.0, %v2552_v63  ;;  %2573 = vpow2.f32 %v2256_v19  ;;  %v2360_v25 = vpop.f32.mrb[12].mxu0  ;;  %v1317_v56 = vrot.slane %v1253_v35, %v3087_v10  ;;  %v1313_v17 = vrot.slane %v1251_v51, %v3087_v10  ;;  %v1578_v63 = vld [vmem:[%s3159_s29 + $0x90] sm:$0xff] }
 0x11c   : > { %v2376_v29 = vpop.f32.mrb[12].mxu1  ;;  %v2556_v32 = vpop.eup %2555  ;;  %v1480_v33 = vadd.f32 1.0, %v2554_v26  ;;  %2575 = vpow2.f32 %v2243_v4  ;;  %v3131_v34 = vadd.f32 %v2360_v25, %v1277_v23  ;;  %v1562_v4 = vld [vmem:[%s3159_s29 + $0x10] sm:$0xff] }
 0x11d   : > { %v3133_v36 = vadd.f32 %v2376_v29, %v1309_v24  ;;  %v1059_v39 = vpop.f32.mrb[13].mxu0  ;;  %v1123_v21 = vpop.f32.mrb[13].mxu1  ;;  %2577 = vrcp.f32 %v1464_v27  ;;  %v1462_v40 = vadd.f32 1.0, %v2556_v32  ;;  %v2259_v32 = vmul.f32 -1.442695, %v3114_v20 }
 0x11e   : > { %v2558_v31 = vpop.eup %2557  ;;  %v3135_v42 = vadd.f32 %v1273_v28, %v1059_v39  ;;  %v3137_v43 = vadd.f32 %v1305_v30, %v1123_v21  ;;  %v2361_v44 = vpop.f32.mrb[14].mxu0  ;;  %2579 = vrcp.f32 %v1480_v33  ;;  %v2246_v20 = vmul.f32 -1.442695, %v3131_v34 }
 0x11f   : > { %v2377_v45 = vpop.f32.mrb[14].mxu1  ;;  %v2560_v38 = vpop.eup %2559  ;;  %v1478_v41 = vadd.f32 1.0, %v2558_v31  ;;  %2581 = vrcp.f32 %v1462_v40  ;;  %v3148_v2 = vadd.f32 %v2361_v44, %v1277_v23  ;;  %v2241_v44 = vmul.f32 -1.442695, %v3116_v14 }
 0x120   : > { %v1062_v52 = vpop.f32.mrb[15].mxu0  ;;  %v2562_v48 = vpop.eup %2561  ;;  %v1465_v47 = vadd.f32 1.0, %v2560_v38  ;;  %v3150_v59 = vadd.f32 %v2377_v45, %v1309_v24  ;;  %v2257_v45 = vmul.f32 -1.442695, %v3118_v22 }
 0x121   : > { %v1126_v12 = vpop.f32.mrb[15].mxu1  ;;  %v2564_v57 = vpop.eup %2563  ;;  %2583 = vrcp.f32 %v1478_v41  ;;  %v1481_v58 = vadd.f32 1.0, %v2562_v48  ;;  %v3152_v61 = vadd.f32 %v1273_v28, %v1062_v52  ;;  %v1560_v28 = vld [vmem:[%s3159_s29] sm:$0xff] }
 0x122   : > { %v2566_v60 = vpop.eup %2565  ;;  %2585 = vrcp.f32 %v1465_v47  ;;  %v1463_v49 = vadd.f32 1.0, %v2564_v57  ;;  %v3154_v62 = vadd.f32 %v1305_v30, %v1126_v12  ;;  %v1563_v12 = vld [vmem:[%s3159_s29 + $0x18] sm:$0xff] }
 0x123   : > { %v2568_v0 = vpop.eup %2567  ;;  %2587 = vrcp.f32 %v1481_v58  ;;  %v1479_v3 = vadd.f32 1.0, %v2566_v60  ;;  %v2364_v53 = vpop.f32.mrb[16].mxu0  ;;  %v1579_v57 = vld [vmem:[%s3159_s29 + $0x98] sm:$0xff]  ;;  %v1561_v58 = vld [vmem:[%s3159_s29 + $0x8] sm:$0xff] }
 0x124   : > { %v2570_v7 = vpop.eup %2569  ;;  %2589 = vrcp.f32 %v1463_v49  ;;  %v1468_v8 = vadd.f32 1.0, %v2568_v0  ;;  %v3168_v50 = vadd.f32 %v2364_v53, %v1285_v5  ;;  %v2380_v15 = vpop.f32.mrb[16].mxu1  ;;  %v1577_v60 = vld [vmem:[%s3159_s29 + $0x88] sm:$0xff]  ;;  %v2262_v49 = vmul.f32 -1.442695, %v3133_v36 }
 0x125   : > { %v2572_v11 = vpop.eup %2571  ;;  %2591 = vrcp.f32 %v1479_v3  ;;  %v1484_v13 = vadd.f32 1.0, %v2570_v7  ;;  %v1075_v16 = vpop.f32.mrb[17].mxu0  ;;  %v3173_v24 = vadd.f32 %v2380_v15, %v1317_v56  ;;  %v2260_v7 = vmul.f32 -1.442695, %v3137_v43 }
 0x126   : > { %v2574_v19 = vpop.eup %2573  ;;  %2593 = vrcp.f32 %v1468_v8  ;;  %v1466_v23 = vadd.f32 1.0, %v2572_v11  ;;  %v3175_v26 = vadd.f32 %v1281_v9, %v1075_v16  ;;  %v1139_v27 = vpop.f32.mrb[17].mxu1  ;;  %v2247_v11 = vmul.f32 -1.442695, %v3148_v2 }
 0x127   : > { %v2365_v25 = vpop.f32.mrb[18].mxu0  ;;  %v2576_v29 = vpop.eup %2575  ;;  %2595 = vrcp.f32 %v1484_v13  ;;  %v1482_v30 = vadd.f32 1.0, %v2574_v19  ;;  %v3179_v33 = vadd.f32 %v1313_v17, %v1139_v27  ;;  %v2263_v36 = vmul.f32 -1.442695, %v3150_v59  ;;  %v1566_v19 = vld [vmem:[%s3159_s29 + $0x30] sm:$0xff] }
 0x128   : > { %v2381_v39 = vpop.f32.mrb[18].mxu1  ;;  %v1078_v21 = vpop.f32.mrb[19].mxu0  ;;  %2597 = vrcp.f32 %v1466_v23  ;;  %v1469_v40 = vadd.f32 1.0, %v2576_v29  ;;  %v3185_v37 = vadd.f32 %v2365_v25, %v1285_v5  ;;  %v2244_v5 = vmul.f32 -1.442695, %v3135_v42  ;;  %v1582_v27 = vld [vmem:[%s3159_s29 + $0xb0] sm:$0xff] }
 0x129   : > { %v2578_v31 = vpop.eup %2577  ;;  %v1142_v38 = vpop.f32.mrb[19].mxu1  ;;  %2599 = vrcp.f32 %v1482_v30  ;;  %v3188_v35 = vadd.f32 %v2381_v39, %v1317_v56  ;;  %v3190_v14 = vadd.f32 %v1281_v9, %v1078_v21  ;;  %v2245_v42 = vmul.f32 -1.442695, %v3152_v61 }
 0x12a   : > { %v2580_v41 = vpop.eup %2579  ;;  %v1594_v52 = vmul.f32 %v2578_v31, %v1562_v4  ;;  %2601 = vrcp.f32 %v1469_v40  ;;  %v3196_v0 = vadd.f32 %v1313_v17, %v1142_v38  ;;  %v2261_v25 = vmul.f32 -1.442695, %v3154_v62 }
 0x12b   : > { %v2582_v48 = vpop.eup %2581  ;;  %v1610_v47 = vmul.f32 %v2580_v41, %v1578_v63  ;;  %2603 = vpow2.f32 %v2259_v32  ;;  %v3200_v8 = vpop.f32.mrb[0].mxu0  ;;  %v1564_v32 = vld [vmem:[%s3159_s29 + $0x20] sm:$0xff]  ;;  %v2250_v39 = vmul.f32 -1.442695, %v3168_v50 }
 0x12c   : > { %v2584_v22 = vpop.eup %2583  ;;  %v1592_v51 = vmul.f32 %v2582_v48, %v1560_v28  ;;  %2605 = vpow2.f32 %v2241_v44  ;;  %v2015_v53 = vpop.f32.mrb[20].mxu1 }
 0x12d   : > { %v2586_v34 = vpop.eup %2585  ;;  %v1608_v3 = vmul.f32 %v2584_v22, %v1576_v46  ;;  %2607 = vpow2.f32 %v2257_v45  ;;  %v3204_v13 = vpop.f32.mrb[1].mxu0  ;;  %v3209_v43 = vadd.f32 %v2015_v53, %v3163_v1  ;;  %v1580_v45 = vld [vmem:[%s3159_s29 + $0xa0] sm:$0xff]  ;;  %v1567_v46 = vld [vmem:[%s3159_s29 + $0x38] sm:$0xff] }
 0x12e   : > { %v2588_v56 = vpop.eup %2587  ;;  %v1595_v9 = vmul.f32 %v2586_v34, %v1563_v12  ;;  %v2400_v15 = vpop.f32.mrb[21].mxu1  ;;  %2609 = vpow2.f32 %v2246_v20 }
 0x12f   : > { %v2590_v16 = vpop.eup %2589  ;;  %v1611_v17 = vmul.f32 %v2588_v56, %v1579_v57  ;;  %v3211_v4 = vpop.f32.mrb[2].mxu0  ;;  %2611 = vpow2.f32 %v2262_v49 }
 0x130   : > { %v3213_v63 = vpop.f32.mrb[22].mxu1  ;;  %v2592_v2 = vpop.eup %2591  ;;  %v1631_v23 = vadd.f32 %v1595_v9, %v1594_v52  ;;  %v1593_v59 = vmul.f32 %v2590_v16, %v1561_v58  ;;  %2613 = vpow2.f32 %v2244_v5 }
 0x131   : > { %v3217_v29 = vpop.f32.mrb[3].mxu0  ;;  %v2401_v28 = vpop.f32.mrb[23].mxu1  ;;  %v1687_v61 = vadd.f32 %v1611_v17, %v1610_v47  ;;  %v1609_v1 = vmul.f32 %v2592_v2, %v1577_v60  ;;  %2615 = vpow2.f32 %v2260_v7 }
 0x132   : > { %v2594_v30 = vpop.eup %2593  ;;  %v1632_v31 = vrot.slane %v1631_v23, 4  ;;  %v1624_v40 = vadd.f32 %v1593_v59, %v1592_v51  ;;  %2617 = vpow2.f32 %v2247_v11 }
 0x133   : > { %v2596_v21 = vpop.eup %2595  ;;  %v1598_v44 = vmul.f32 %v2594_v30, %v1566_v19  ;;  %v1688_v41 = vrot.slane %v1687_v61, 4  ;;  %v1680_v62 = vadd.f32 %v1609_v1, %v1608_v3  ;;  %2619 = vpow2.f32 %v2263_v36 }
 0x134   : > { %v2598_v38 = vpop.eup %2597  ;;  %v3222_v52 = vmul.f32 %v2596_v21, %v1582_v27  ;;  %v1633_v48 = vadd.f32 %v1632_v31, %v1631_v23  ;;  %v1625_v47 = vrot.slane %v1624_v40, 4  ;;  %2621 = vpow2.f32 %v2245_v42 }
 0x135   : > { %v2600_v20 = vpop.eup %2599  ;;  %v3225_v12 = vmul.f32 %v2598_v38, %v1564_v32  ;;  %v1689_v22 = vadd.f32 %v1688_v41, %v1687_v61  ;;  %v1681_v57 = vrot.slane %v1680_v62, 4  ;;  %2623 = vpow2.f32 %v2261_v25 }
 0x136   : > { %v2602_v50 = vpop.eup %2601  ;;  %v3227_v51 = vmul.f32 %v2600_v20, %v1580_v45  ;;  %v1634_v60 = vrot.slane %v1633_v48, 2  ;;  %v1626_v49 = vadd.f32 %v1625_v47, %v1624_v40  ;;  %2625 = vpow2.f32 %v2250_v39 }
 0x137   : > { %v2604_v58 = vpop.eup %2603  ;;  %v1599_v34 = vmul.f32 %v2602_v50, %v1567_v46  ;;  %v1690_v5 = vrot.slane %v1689_v22, 2  ;;  %v1682_v7 = vadd.f32 %v1681_v57, %v1680_v62  ;;  %v3231_v31 = vrot.slane %v3076_v6, %v3087_v10 }
 0x138   : > { %v2606_v3 = vpop.eup %2605  ;;  %v1485_v53 = vadd.f32 1.0, %v2604_v58  ;;  %v1635_v9 = vadd.f32 %v1634_v60, %v1633_v48  ;;  %v1627_v11 = vrot.slane %v1626_v49, 2  ;;  %v594_v10 = vadd.f32 %v3068_v54, %v3121_v18 }
 0x139   : > { %v2608_v56 = vpop.eup %2607  ;;  %v1645_v36 = vadd.f32 %v1599_v34, %v1598_v44  ;;  %v1467_v15 = vadd.f32 1.0, %v2606_v3  ;;  %v1691_v17 = vadd.f32 %v1690_v5, %v1689_v22  ;;  %v1683_v19 = vrot.slane %v1682_v7, 2  ;;  %v1583_v3 = vld [vmem:[%s3159_s29 + $0xb8] sm:$0xff] }
 0x13a   : > { %v2610_v16 = vpop.eup %2609  ;;  %2627 = vrcp.f32 %v1485_v53  ;;  %v1483_v42 = vadd.f32 1.0, %v2608_v56  ;;  %v1636_v23 = vrot.slane %v1635_v9, 1  ;;  %v1628_v59 = vadd.f32 %v1627_v11, %v1626_v49  ;;  %v1565_v53 = vld [vmem:[%s3159_s29 + $0x28] sm:$0xff] }
 0x13b   : > { %v2612_v2 = vpop.eup %2611  ;;  %v1646_v27 = vrot.slane %v1645_v36, 4  ;;  %2629 = vrcp.f32 %v1467_v15  ;;  %v1692_v28 = vrot.slane %v1691_v17, 1  ;;  %v1684_v30 = vadd.f32 %v1683_v19, %v1682_v7 }
 0x13c   : > { %v2614_v25 = vpop.eup %2613  ;;  %2631 = vrcp.f32 %v1483_v42  ;;  %v1472_v61 = vadd.f32 1.0, %v2610_v16  ;;  %v1637_v32 = vadd.f32 %v1636_v23, %v1635_v9  ;;  %v1629_v39 = vrot.slane %v1628_v59, 1  ;;  %v1570_v23 = vld [vmem:[%s3159_s29 + $0x50] sm:$0xff] }
 0x13d   : > { %v2616_v1 = vpop.eup %2615  ;;  %v1488_v21 = vadd.f32 1.0, %v2612_v2  ;;  %v1693_v44 = vadd.f32 %v1692_v28, %v1691_v17  ;;  %v1685_v45 = vrot.slane %v1684_v30, 1  ;;  %v1470_v38 = vadd.f32 1.0, %v2614_v25  ;;  %v1586_v25 = vld [vmem:[%s3159_s29 + $0xd0] sm:$0xff] }
 0x13e   : > { %v2618_v40 = vpop.eup %2617  ;;  %2633 = vrcp.f32 %v1472_v61  ;;  %v1630_v62 = vadd.f32 %v1629_v39, %v1628_v59  ;;  %v1647_v46 = vadd.f32 %v1646_v27, %v1645_v36  ;;  %v1486_v20 = vadd.f32 1.0, %v2616_v1  ;;  %v1581_v36 = vld [vmem:[%s3159_s29 + $0xa8] sm:$0xff]  ;;  %v1568_v61 = vld [vmem:[%s3159_s29 + $0x40] sm:$0xff] }
 0x13f   : > { %v2620_v41 = vpop.eup %2619  ;;  %2635 = vrcp.f32 %v1488_v21  ;;  %v1686_v47 = vadd.f32 %v1685_v45, %v1684_v30  ;;  %v1473_v50 = vadd.f32 1.0, %v2618_v40  ;;  %v409_v7 = vsub.s32 1, %v3070_v55 }
 0x140   : > { %v2622_v48 = vpop.eup %2621  ;;  %2637 = vrcp.f32 %v1470_v38  ;;  %v1489_v22 = vadd.f32 1.0, %v2620_v41  ;;  %v3236_v58 = vsel %vm806_vm1, %v1637_v32, %v1630_v62  ;;  %v2266_v54 = vmul.f32 -1.442695, %v3173_v24 }
 0x141   : > { %v2624_v57 = vpop.eup %2623  ;;  %2639 = vrcp.f32 %v1486_v20  ;;  %v1471_v60 = vadd.f32 1.0, %v2622_v48  ;;  %v3239_v34 = vsel %vm806_vm1, %v1693_v44, %v1686_v47  ;;  %v3246_v18 = vadd.f32 %v3213_v63, %v594_v10  ;;  %v1571_v44 = vld [vmem:[%s3159_s29 + $0x58] sm:$0xff] }
 0x142   : > { %v2626_v49 = vpop.eup %2625  ;;  %2641 = vrcp.f32 %v1473_v50  ;;  %v1487_v5 = vadd.f32 1.0, %v2624_v57  ;;  %v1648_v11 = vrot.slane %v1647_v46, 2  ;;  %v2248_v15 = vmul.f32 -1.442695, %v3175_v26  ;;  %v1569_v50 = vld [vmem:[%s3159_s29 + $0x48] sm:$0xff] }
 0x143   : > { %2643 = vrcp.f32 %v1489_v22  ;;  %v1476_v56 = vadd.f32 1.0, %v2626_v49  ;;  %v2418_v16 = vadd.f32 %v3200_v8, %v3231_v31  ;;  %v2264_v42 = vmul.f32 -1.442695, %v3179_v33  ;;  %v1585_v49 = vld [vmem:[%s3159_s29 + $0xc8] sm:$0xff] }
 0x144   : > { %v2628_v9 = vpop.eup %2627  ;;  %2645 = vrcp.f32 %v1471_v60  ;;  %v2251_v24 = vmul.f32 -1.442695, %v3185_v37  ;;  %v2267_v59 = vmul.f32 -1.442695, %v3188_v35  ;;  %v2249_v27 = vmul.f32 -1.442695, %v3190_v14 }
 0x145   : > { %v2630_v17 = vpop.eup %2629  ;;  %v1615_v19 = vmul.f32 %v2628_v9, %v1583_v3  ;;  %2647 = vrcp.f32 %v1487_v5  ;;  %v2265_v28 = vmul.f32 -1.442695, %v3196_v0  ;;  %v1649_v30 = vadd.f32 %v1648_v11, %v1647_v46  ;;  %v1587_v46 = vld [vmem:[%s3159_s29 + $0xd8] sm:$0xff] }
 0x146   : > { %v2632_v63 = vpop.eup %2631  ;;  %v1597_v2 = vmul.f32 %v2630_v17, %v1565_v53  ;;  %2649 = vrcp.f32 %v1476_v56  ;;  %v2292_v1 = vmul.f32 -1.442695, %v2418_v16  ;;  %v3273_v5 = vrot.slane %v3076_v6, %v409_v7 }
 0x147   : > { %v1701_v26 = vadd.f32 %v1615_v19, %v3222_v52  ;;  %v1613_v8 = vmul.f32 %v2632_v63, %v1581_v36  ;;  %2651 = vpow2.f32 %v2266_v54  ;;  %v1584_v52 = vld [vmem:[%s3159_s29 + $0xc0] sm:$0xff]  ;;  %v1650_v20 = vrot.slane %v1649_v30, 1  ;;  %v1574_v36 = vld [vmem:[%s3159_s29 + $0x70] sm:$0xff] }
 0x148   : > { %v2634_v33 = vpop.eup %2633  ;;  %v1638_v37 = vadd.f32 %v1597_v2, %v3225_v12  ;;  %2653 = vpow2.f32 %v2248_v15  ;;  %v2420_v12 = vadd.f32 %v3211_v4, %v3231_v31 }
 0x149   : > { %v2636_v32 = vpop.eup %2635  ;;  %v1702_v35 = vrot.slane %v1701_v26, 4  ;;  %v1694_v14 = vadd.f32 %v1613_v8, %v3227_v51  ;;  %v1602_v39 = vmul.f32 %v2634_v33, %v1570_v23  ;;  %2655 = vpow2.f32 %v2264_v42 }
 0x14a   : > { %v2638_v21 = vpop.eup %2637  ;;  %v1639_v40 = vrot.slane %v1638_v37, 4  ;;  %v1618_v0 = vmul.f32 %v2636_v32, %v1586_v25  ;;  %2657 = vpow2.f32 %v2251_v24  ;;  %v3276_v42 = vmul.f32 -1.442695, %v2420_v12 }
 0x14b   : > { %v2640_v45 = vpop.eup %2639  ;;  %v1703_v38 = vadd.f32 %v1702_v35, %v1701_v26  ;;  %v1695_v41 = vrot.slane %v1694_v14, 4  ;;  %v1600_v62 = vmul.f32 %v2638_v21, %v1568_v61  ;;  %2659 = vpow2.f32 %v2267_v59 }
 0x14c   : > { %v2642_v51 = vpop.eup %2641  ;;  %v1640_v48 = vadd.f32 %v1639_v40, %v1638_v37  ;;  %v1616_v47 = vmul.f32 %v2640_v45, %v1584_v52  ;;  %2661 = vpow2.f32 %v2249_v27  ;;  %v1651_v63 = vadd.f32 %v1650_v20, %v1649_v30 }
 0x14d   : > { %v2644_v22 = vpop.eup %2643  ;;  %v1704_v57 = vrot.slane %v1703_v38, 2  ;;  %v1696_v10 = vadd.f32 %v1695_v41, %v1694_v14  ;;  %v1603_v60 = vmul.f32 %v2642_v51, %v1571_v44  ;;  %2663 = vpow2.f32 %v2265_v28 }
 0x14e   : > { %v2646_v4 = vpop.eup %2645  ;;  %v1641_v31 = vrot.slane %v1640_v48, 2  ;;  %v1619_v3 = vmul.f32 %v2644_v22, %v1587_v46  ;;  %2665 = vpow2.f32 %v2292_v1 }
 0x14f   : > { %v2648_v53 = vpop.eup %2647  ;;  %v1705_v56 = vadd.f32 %v1704_v57, %v1703_v38  ;;  %v1697_v54 = vrot.slane %v1696_v10, 2  ;;  %v1659_v9 = vadd.f32 %v1603_v60, %v1602_v39  ;;  %v1601_v11 = vmul.f32 %v2646_v4, %v1569_v50 }
 0x150   : > { %v2650_v15 = vpop.eup %2649  ;;  %v1642_v16 = vadd.f32 %v1641_v31, %v1640_v48  ;;  %v1715_v17 = vadd.f32 %v1619_v3, %v1618_v0  ;;  %v1617_v19 = vmul.f32 %v2648_v53, %v1585_v49  ;;  %2667 = vtanh.f32 %v3209_v43 }
 0x151   : > { %v2652_v24 = vpop.eup %2651  ;;  %v1698_v2 = vadd.f32 %v1697_v54, %v1696_v10  ;;  %v1660_v23 = vrot.slane %v1659_v9, 4  ;;  %v1652_v55 = vadd.f32 %v1601_v11, %v1600_v62  ;;  %v3278_v26 = vmul.f32 %v2650_v15, %v1574_v36 }
 0x152   : > { %v2654_v59 = vpop.eup %2653  ;;  %v1643_v6 = vrot.slane %v1642_v16, 1  ;;  %v1716_v7 = vrot.slane %v1715_v17, 4  ;;  %v1708_v27 = vadd.f32 %v1617_v19, %v1616_v47  ;;  %v1706_v25 = vrot.slane %v1705_v56, 1 }
 0x153   : > { %v2656_v8 = vpop.eup %2655  ;;  %v1661_v28 = vadd.f32 %v1660_v23, %v1659_v9  ;;  %v1653_v33 = vrot.slane %v1652_v55, 4  ;;  %v1699_v61 = vrot.slane %v1698_v2, 1  ;;  %v1492_v30 = vadd.f32 1.0, %v2652_v24  ;;  %v1572_v24 = vld [vmem:[%s3159_s29 + $0x60] sm:$0xff] }
 0x154   : > { %v2658_v37 = vpop.eup %2657  ;;  %v1717_v1 = vadd.f32 %v1716_v7, %v1715_v17  ;;  %v1709_v32 = vrot.slane %v1708_v27, 4  ;;  %v1644_v14 = vadd.f32 %v1643_v6, %v1642_v16  ;;  %v1474_v21 = vadd.f32 1.0, %v2654_v59  ;;  %v1590_v17 = vld [vmem:[%s3159_s29 + $0xf0] sm:$0xff]  ;;  %v1588_v23 = vld [vmem:[%s3159_s29 + $0xe0] sm:$0xff] }
 0x155   : > { %v2660_v35 = vpop.eup %2659  ;;  %v1662_v39 = vrot.slane %v1661_v28, 2  ;;  %v1654_v52 = vadd.f32 %v1653_v33, %v1652_v55  ;;  %2669 = vrcp.f32 %v1492_v30  ;;  %v1490_v12 = vadd.f32 1.0, %v2656_v8  ;;  %v1589_v30 = vld [vmem:[%s3159_s29 + $0xe8] sm:$0xff] }
 0x156   : > { %v2662_v40 = vpop.eup %2661  ;;  %v1718_v0 = vrot.slane %v1717_v1, 2  ;;  %v1710_v44 = vadd.f32 %v1709_v32, %v1708_v27  ;;  %2671 = vrcp.f32 %v1474_v21  ;;  %v1477_v43 = vadd.f32 1.0, %v2658_v37  ;;  %v1575_v27 = vld [vmem:[%s3159_s29 + $0x78] sm:$0xff]  ;;  %v1573_v37 = vld [vmem:[%s3159_s29 + $0x68] sm:$0xff] }
 0x157   : > { %v2664_v45 = vpop.eup %2663  ;;  %v1663_v38 = vadd.f32 %v1662_v39, %v1661_v28  ;;  %v1655_v41 = vrot.slane %v1654_v52, 2  ;;  %2673 = vrcp.f32 %v1490_v12  ;;  %v1493_v20 = vadd.f32 1.0, %v2660_v35 }
 0x158   : > { %v2666_v62 = vpop.eup %2665  ;;  %v1719_v46 = vadd.f32 %v1718_v0, %v1717_v1  ;;  %v1711_v51 = vrot.slane %v1710_v44, 2  ;;  %v1700_v48 = vadd.f32 %v1699_v61, %v1698_v2  ;;  %2675 = vrcp.f32 %v1477_v43 }
 0x159   : > { %v1656_v47 = vadd.f32 %v1655_v41, %v1654_v52  ;;  %v1475_v50 = vadd.f32 1.0, %v2662_v40  ;;  %v1664_v22 = vrot.slane %v1663_v38, 1  ;;  %2677 = vrcp.f32 %v1493_v20 }
 0x15a   : > { %v1712_v57 = vadd.f32 %v1711_v51, %v1710_v44  ;;  %v1491_v10 = vadd.f32 1.0, %v2664_v45  ;;  %v1720_v60 = vrot.slane %v1719_v46, 1  ;;  %v2040_v4 = vadd.f32 1.0, %v2666_v62  ;;  %v2668_v54 = vpop.eup %2667 }
 0x15b   : > { %v1657_v49 = vrot.slane %v1656_v47, 1  ;;  %2679 = vrcp.f32 %v1475_v50  ;;  %v1707_v31 = vadd.f32 %v1706_v25, %v1705_v56  ;;  %v1753_v53 = vsel %vm808_vm2, %v1644_v14, %v3236_v58 }
 0x15c   : > { %v1713_v3 = vrot.slane %v1712_v57, 1  ;;  %2681 = vrcp.f32 %v1491_v10  ;;  %v1754_v11 = vsel %vm810_vm3, %v1651_v63, %v1753_v53  ;;  %v1760_v36 = vsel %vm808_vm2, %v1700_v48, %v3239_v34 }
 0x15d   : > { %v1658_v9 = vadd.f32 %v1657_v49, %v1656_v47  ;;  %2683 = vrcp.f32 %v2040_v4  ;;  %v1665_v15 = vadd.f32 %v1664_v22, %v1663_v38  ;;  %v1761_v56 = vsel %vm810_vm3, %v1707_v31, %v1760_v36 }
 0x15e   : > { %v1714_v16 = vadd.f32 %v1713_v3, %v1712_v57  ;;  %v1721_v19 = vadd.f32 %v1720_v60, %v1719_v46  ;;  %v2419_v2 = vadd.f32 %v3204_v13, %v3273_v5  ;;  %2685 = vpow2.f32 %v3276_v42  ;;  %v1591_v42 = vld [vmem:[%s3159_s29 + $0xf8] sm:$0xff] }
 0x15f   : > { %v1755_v58 = vsel %vm812_vm4, %v1658_v9, %v1754_v11  ;;  %v2670_v63 = vpop.eup %2669  ;;  %v2421_v59 = vadd.f32 %v3217_v29, %v3273_v5 }
 0x160   : > { %v3295_v34 = vsel %vm814_vm5, %v1665_v15, %v1755_v58  ;;  %v1762_v55 = vsel %vm812_vm4, %v1714_v16, %v1761_v56  ;;  %v2672_v6 = vpop.eup %2671  ;;  %v1622_v7 = vmul.f32 %v2670_v63, %v1590_v17  ;;  %v2294_v61 = vmul.f32 -1.442695, %v2419_v2 }
 0x161   : > { %v3302_v8 = vsel %vm814_vm5, %v1721_v19, %v1762_v55  ;;  %v2674_v13 = vpop.eup %2673  ;;  %v1604_v25 = vmul.f32 %v2672_v6, %v1572_v24  ;;  %v2295_v35 = vmul.f32 -1.442695, %v2421_v59 }
 0x162   : > { %v2676_v28 = vpop.eup %2675  ;;  %v1620_v33 = vmul.f32 %v2674_v13, %v1588_v23  ;;  %2687 = vpow2.f32 %v2294_v61 }
 0x163   : > { %v2678_v1 = vpop.eup %2677  ;;  %v1607_v32 = vmul.f32 %v2676_v28, %v1575_v27  ;;  %2689 = vpow2.f32 %v2295_v35 }
 0x164   : > { %v1623_v39 = vmul.f32 %v2678_v1, %v1591_v42  ;;  %2691 = vtanh.f32 %v3246_v18 }
 0x165   : > { %v2680_v14 = vpop.eup %2679  ;;  %v1673_v5 = vadd.f32 %v1607_v32, %v3278_v26 }
 0x166   : > { %v2682_v29 = vpop.eup %2681  ;;  %v1605_v52 = vmul.f32 %v2680_v14, %v1573_v37  ;;  %v1729_v40 = vadd.f32 %v1623_v39, %v1622_v7 }
 0x167   : > { %v2684_v21 = vpop.eup %2683  ;;  %v1621_v0 = vmul.f32 %v2682_v29, %v1589_v30  ;;  %v1674_v44 = vrot.slane %v1673_v5, 4 }
 0x168   : > { %v1666_v12 = vadd.f32 %v1605_v52, %v1604_v25  ;;  %v2060_v45 = vmul.f32 %v2684_v21, %v2668_v54  ;;  %v2686_v38 = vpop.eup %2685  ;;  %v1730_v41 = vrot.slane %v1729_v40, 4 }
 0x169   : > { %v1722_v43 = vadd.f32 %v1621_v0, %v1620_v33  ;;  %v1675_v62 = vadd.f32 %v1674_v44, %v1673_v5  ;;  %v2041_v51 = vadd.f32 1.0, %v2686_v38 }
 0x16a   : > { %v1667_v46 = vrot.slane %v1666_v12, 4  ;;  %v1731_v20 = vadd.f32 %v1730_v41, %v1729_v40 }
 0x16b   : > { %v1723_v48 = vrot.slane %v1722_v43, 4  ;;  %v1676_v26 = vrot.slane %v1675_v62, 2  ;;  %2693 = vrcp.f32 %v2041_v51 }
 0x16c   : > { %v1668_v47 = vadd.f32 %v1667_v46, %v1666_v12  ;;  %v1732_v50 = vrot.slane %v1731_v20, 2  ;;  %v2688_v31 = vpop.eup %2687 }
 0x16d   : > { %v1724_v22 = vadd.f32 %v1723_v48, %v1722_v43  ;;  %v1677_v10 = vadd.f32 %v1676_v26, %v1675_v62  ;;  %v2690_v54 = vpop.eup %2689  ;;  %v2052_v15 = vadd.f32 1.0, %v2688_v31 }
 0x16e   : > { %v1669_v57 = vrot.slane %v1668_v47, 2  ;;  %v1733_v49 = vadd.f32 %v1732_v50, %v1731_v20  ;;  %v2692_v16 = vpop.eup %2691  ;;  %v2053_v19 = vadd.f32 1.0, %v2690_v54 }
 0x16f   : > { %v1725_v60 = vrot.slane %v1724_v22, 2  ;;  %v1678_v53 = vrot.slane %v1677_v10, 1  ;;  %2695 = vrcp.f32 %v2052_v15 }
 0x170   : > { %v1670_v4 = vadd.f32 %v1669_v57, %v1668_v47  ;;  %v1734_v11 = vrot.slane %v1733_v49, 1  ;;  %2697 = vrcp.f32 %v2053_v19 }
 0x171   : > { %v1726_v3 = vadd.f32 %v1725_v60, %v1724_v22  ;;  %v1679_v17 = vadd.f32 %v1678_v53, %v1677_v10 }
 0x172   : > { %v1671_v9 = vrot.slane %v1670_v4, 1  ;;  %v1735_v2 = vadd.f32 %v1734_v11, %v1733_v49 }
 0x173   : > { %v1727_v36 = vrot.slane %v1726_v3, 1 }
 0x174   : > { %v1672_v18 = vadd.f32 %v1671_v9, %v1670_v4 }
 0x175   : > { %v1728_v56 = vadd.f32 %v1727_v36, %v1726_v3  ;;  %v2694_v24 = vpop.eup %2693 }
 0x176   : > { %v1757_v58 = vsel %vm816_vm6, %v1672_v18, %v3295_v34  ;;  %v2061_v55 = vmul.f32 %v2694_v24, %v2692_v16 }
 0x177   : > { %v1758_v63 = vsel %vm818_vm7, %v1679_v17, %v1757_v58  ;;  %v1764_v23 = vsel %vm816_vm6, %v1728_v56, %v3302_v8 }
 0x178   : > { %v2064_v59 = vadd.f32 %v2060_v45, %v1758_v63  ;;  %v1765_v6 = vsel %vm818_vm7, %v1735_v2, %v1764_v23 }
 0x179   : > { %v2065_v7 = vadd.f32 %v2061_v55, %v1765_v6  ;;  %v2696_v34 = vpop.eup %2695 }
 0x17a   : > { %2699 = vtanh.f32 %v2064_v59  ;;  %2072 = vst [vmem:[%s376_s10 + $0x8] sm:$0xff] %v2064_v59  ;;  %v2698_v27 = vpop.eup %2697 }
 0x17b   : > { %2701 = vtanh.f32 %v2065_v7  ;;  %2073 = vst [vmem:[%s376_s10 + $0x18] sm:$0xff] %v2065_v7 }
 0x184   : > { %v2700_v13 = vpop.eup %2699 }
 0x185   : > { %v2702_v25 = vpop.eup %2701  ;;  %v2068_v42 = vmul.f32 %v2700_v13, %v2696_v34 }
 0x186   : > { %v2069_v28 = vmul.f32 %v2702_v25, %v2698_v27 }
 0x187   : > { %2070 = vst [vmem:[%s376_s10] sm:$0xff] %v2068_v42 }
 0x188   : > { %2071 = vst [vmem:[%s376_s10 + $0x10] sm:$0xff] %v2069_v28 }
 0x189 PF: > { %s17_s26 = sadd.s32 1, %s2725_s26   ;;  %s3336_s24 = smov %s2721_s25 }
 0x18a   : > { %p14_p6 = scmp.ge.s32.totalorder %s17_s26, 6   ;;  %s3337_s25 = smov %s3339_s27 }
 0x18c   :  { %16 = sbr.rel (!%p14_p6) target bundleno = 2 (0x2), region = 92 }

// kernel: treelstm_cell.1
= control target key start
LH: loop header
LB: loop body
LE: loop exit
PB: predicated region body
PF: predicated region fallthrough
CT: control target
= control target key end

     0   :  { %s2771_s24 = smov 0   ;;  %s2773_s25 = smov 0   ;;  %s3328_s0 = inlined_call_operand.vmem [shape: bf16[64,64], index: 0, kind: input, shape index: {}]   ;;  %s3329_s1 = inlined_call_operand.vmem [shape: bf16[64,16,128], index: 1, kind: input, shape index: {}]   ;;  %s3330_s2 = inlined_call_operand.vmem [shape: f32[64,16,128], index: 2, kind: input, shape index: {}]   ;;  %s3331_s3 = inlined_call_operand.vmem [shape: bf16[64,512], index: 3, kind: input, shape index: {}]   ;;  %s3332_s4 = inlined_call_operand.vmem [shape: bf16[128,384], index: 4, kind: input, shape index: {}]   ;;  %s3333_s5 = inlined_call_operand.vmem [shape: bf16[128,128], index: 5, kind: input, shape index: {}]   ;;  %s3334_s6 = inlined_call_operand.vmem [shape: f32[1,512], index: 6, kind: input, shape index: {}]   ;;  %s3335_s7 = inlined_call_operand.vmem [shape: f32[64,256], index: 7, kind: output, shape index: {}]  }
   0x1   :  { %s2775_s26 = smov 0  }
   0x2 LB: > { %s29_s27 = sadd.s32 1, %s2721_s25  ;;  %p2181_p0 = scmp.ge.s32.totalorder %s2725_s26, 1  ;;  %s2725_s26 = sphi %s2775_s26, %s17_s26   ;;  %s2721_s25 = sphi %s2773_s25, %s3337_s25   ;;  %s2717_s24 = sphi %s2771_s24, %s3336_s24  }
   0x3   : > { %p31_p1 = scmp.ge.s32.totalorder %s29_s27, 4  ;;  %p288_p2 = scmp.lt.s32.totalorder %s2725_s26, 5 }
   0x5   : > { %s3339_s27 = smov (%p31_p1, %s29_s27), 0  ;;  %p289_p3 = pnand %p2181_p0, %p288_p2 }
   0x6   : > { %v2454_v0 = vld [vmem:[%s3331_s3 + $0x4] ss:$16 sps:$4 sm:$0xff] (!%p289_p3)   ;;  %s2182_s30 = sshll.u32 (!%p289_p3), %s2717_s24, 1  ;;  %v2456_v1 = vld [vmem:[%s3331_s3 + $0xc] ss:$16 sps:$4 sm:$0xff] (!%p289_p3)   ;;  %v2727_v2 = vmov (!%p289_p3), 0  }
   0x7   : > { %292 = sbr.rel (%p289_p3) target bundleno = 393 (0x189), region = 48  ;;  %587 = vmatprep.mubr.bf16.mxu1 (!%p289_p3), %v2727_v2  ;;  %544 = vmatprep.mubr.bf16.mxu0 (!%p289_p3), %v2727_v2  ;;  %p342_p4 = scmp.lt.s32.totalorder (!%p289_p3), %s2182_s30, 7  ;;  %v2458_v3 = vld [vmem:[%s3331_s3] ss:$16 sps:$4 sm:$0xff] (!%p289_p3)   ;;  %v2459_v4 = vld [vmem:[%s3331_s3 + $0x8] ss:$16 sps:$4 sm:$0xff] (!%p289_p3)  }
   0x8   : > { %512 = vmatprep.subr.bf16.mxu0 (!%p289_p3), %v2454_v0  ;;  %s2184_s14 = sshll.u32 (!%p289_p3), %s2717_s24, 4  ;;  %555 = vmatprep.subr.bf16.mxu1 (!%p289_p3), %v2456_v1  ;;  %v2460_v5 = vld [vmem:[%s3331_s3 + $0x24] ss:$16 sps:$4 sm:$0xff] (!%p289_p3)   ;;  %v2462_v6 = vld [vmem:[%s3331_s3 + $0x2c] ss:$16 sps:$4 sm:$0xff] (!%p289_p3)   ;;  %vm508_vm0 = vcmask (!%p289_p3), 523264  }
   0x9   : > { %513 = vmatpush1.bf16.msra.mxu0 (!%p289_p3), %v2458_v3  ;;  %556 = vmatpush1.bf16.msra.mxu1 (!%p289_p3), %v2459_v4  ;;  %v2464_v7 = vld [vmem:[%s3331_s3 + $0x20] ss:$16 sps:$4 sm:$0xff] (!%p289_p3)   ;;  %v2465_v8 = vld [vmem:[%s3331_s3 + $0x28] ss:$16 sps:$4 sm:$0xff] (!%p289_p3)   ;;  %p349_p5 = scmp.lt.s32.totalorder (!%p289_p3), %s2184_s14, 63  ;;  %vm806_vm1 = vcmask (!%p289_p3), 1041409  }
   0xa   : > { %514 = vmatprep.subr.bf16.mxu0 (!%p289_p3), %v2460_v5  ;;  %557 = vmatprep.subr.bf16.mxu1 (!%p289_p3), %v2462_v6  ;;  %v2466_v9 = vld [vmem:[%s3331_s3 + $0x44] ss:$16 sps:$4 sm:$0xff] (!%p289_p3)   ;;  %v2468_v10 = vld [vmem:[%s3331_s3 + $0x4c] ss:$16 sps:$4 sm:$0xff] (!%p289_p3)   ;;  %v2470_v11 = vld [vmem:[%s3331_s3 + $0x40] ss:$16 sps:$4 sm:$0xff] (!%p289_p3)  }
   0xb   : > { %v2471_v12 = vld [vmem:[%s3331_s3 + $0x48] ss:$16 sps:$4 sm:$0xff] (!%p289_p3)   ;;  %v2472_v13 = vld [vmem:[%s3331_s3 + $0x64] ss:$16 sps:$4 sm:$0xff] (!%p289_p3)   ;;  %v2474_v14 = vld [vmem:[%s3331_s3 + $0x6c] ss:$16 sps:$4 sm:$0xff] (!%p289_p3)  }
   0xc   : > { %v2476_v15 = vld [vmem:[%s3331_s3 + $0x60] ss:$16 sps:$4 sm:$0xff] (!%p289_p3)   ;;  %v2477_v16 = vld [vmem:[%s3331_s3 + $0x68] ss:$16 sps:$4 sm:$0xff] (!%p289_p3)   ;;  %vm808_vm2 = vcmask (!%p289_p3), 1042434   ;;  %vm810_vm3 = vcmask (!%p289_p3), 1043459  }
   0xd   : > { %515 = vmatpush1.bf16.msra.mxu0 (!%p289_p3), %v2464_v7  ;;  %558 = vmatpush1.bf16.msra.mxu1 (!%p289_p3), %v2465_v8  ;;  %v2479_v17 = vld [vmem:[%s3333_s5] sm:$0xff] (!%p289_p3)   ;;  %v2480_v19 = vld [vmem:[%s3333_s5 + $0x8] sm:$0xff] (!%p289_p3)   ;;  %v2481_v21 = vld [vmem:[%s3333_s5 + $0x10] sm:$0xff] (!%p289_p3)   ;;  %vm812_vm4 = vcmask (!%p289_p3), 1044484   ;;  %vm814_vm5 = vcmask (!%p289_p3), 1045509   ;;  %vm816_vm6 = vcmask (!%p289_p3), 1046534  }
   0xe   : > { %s3341_s30 = smov (!%p342_p4, %s2182_s30), 7  ;;  %516 = vmatprep.subr.bf16.mxu0 %v2466_v9  ;;  %559 = vmatprep.subr.bf16.mxu1 %v2468_v10  ;;  %s3343_s14 = smov (!%p349_p5, %s2184_s14), 63  ;;  %v2482_v38 = vld [vmem:[%s3333_s5 + $0x18] sm:$0xff]   ;;  %v2483_v51 = vld [vmem:[%s3333_s5 + $0x20] sm:$0xff]   ;;  %v2484_v63 = vld [vmem:[%s3333_s5 + $0x28] sm:$0xff]   ;;  %vm818_vm7 = vcmask 1047559  }
   0xf   : > { %s2183_s23 = sshll.u32 %s3341_s30, 2  ;;  %s2298_s8 = sshll.u32 %s3343_s14, 3  ;;  %vm2729_vm8 = vmmov 0  }
  0x10   : > { %s345_s18 = scalar_lea.vmem %s3328_s0, %s2183_s23  ;;  %s2858_s11 = scalar_lea.vmem %s3329_s1, %s2298_s8 }
  0x11   : > { %517 = vmatpush1.bf16.msra.mxu0 %v2470_v11  ;;  %560 = vmatpush1.bf16.msra.mxu1 %v2471_v12  ;;  %v2478_v18 = vld [vmem:[%s345_s18] sm:$0xff]   ;;  %v2869_v25 = vld [vmem:[%s2858_s11 + $0x8] sm:$0xff]   ;;  %v2879_v37 = vld [vmem:[%s2858_s11 + $0x10] sm:$0xff]   ;;  %s2299_s28 = sshll.u32 %s3343_s14, 4 }
  0x12   : > { %518 = vmatprep.subr.bf16.mxu0 %v2472_v13  ;;  %561 = vmatprep.subr.bf16.mxu1 %v2474_v14  ;;  %v610_v20 = vld [vmem:[%s2858_s11] sm:$0xff]   ;;  %v648_v28 = vunpack.c.l.bf16 %v2869_v25  ;;  %v2873_v29 = vld [vmem:[%s2858_s11 + $0x48] sm:$0xff]   ;;  %v649_v31 = vunpack.c.h.bf16 %v2869_v25  ;;  %v650_v41 = vunpack.c.l.bf16 %v2879_v37  ;;  %v651_v42 = vunpack.c.h.bf16 %v2879_v37  ;;  %v2887_v47 = vld [vmem:[%s2858_s11 + $0x50] sm:$0xff]   ;;  %s3159_s29 = scalar_lea.vmem %s3330_s2, %s2299_s28 }
  0x13   : > { %v646_v22 = vunpack.c.l.bf16 %v610_v20  ;;  %v647_v23 = vunpack.c.h.bf16 %v610_v20  ;;  %v626_v24 = vld [vmem:[%s2858_s11 + $0x40] sm:$0xff]   ;;  %v664_v32 = vunpack.c.l.bf16 %v2873_v29  ;;  %v665_v34 = vunpack.c.h.bf16 %v2873_v29  ;;  %v2895_v53 = vld [vmem:[%s2858_s11 + $0x18] sm:$0xff]   ;;  %v2485_v11 = vld [vmem:[%s3333_s5 + $0x30] sm:$0xff]  }
  0x14   : > { %v662_v26 = vunpack.c.l.bf16 %v626_v24  ;;  %v663_v27 = vunpack.c.h.bf16 %v626_v24  ;;  %v685_v36 = vadd.f32 %v649_v31, %v648_v28  ;;  %v692_v48 = vadd.f32 %v651_v42, %v650_v41  ;;  %v2900_v56 = vld [vmem:[%s2858_s11 + $0x58] sm:$0xff]   ;;  %v2908_v4 = vld [vmem:[%s2858_s11 + $0x20] sm:$0xff]   ;;  %v2927_v31 = vld [vmem:[%s2858_s11 + $0x68] sm:$0xff]  }
  0x15   : > { %519 = vmatpush1.bf16.msra.mxu0 %v2476_v15  ;;  %562 = vmatpush1.bf16.msra.mxu1 %v2477_v16  ;;  %v678_v30 = vadd.f32 %v647_v23, %v646_v22  ;;  %v741_v40 = vadd.f32 %v665_v34, %v664_v32  ;;  %v666_v49 = vunpack.c.l.bf16 %v2887_v47  ;;  %v667_v50 = vunpack.c.h.bf16 %v2887_v47  ;;  %v2915_v14 = vld [vmem:[%s2858_s11 + $0x60] sm:$0xff]   ;;  %v2934_v41 = vld [vmem:[%s2858_s11 + $0x30] sm:$0xff]  }
  0x16   : > { %2334 = vmatprep.subr.bf16.mxu0 %v2479_v17  ;;  %2402 = vmatprep.subr.bf16.mxu1 %v2479_v17  ;;  %v734_v33 = vadd.f32 %v663_v27, %v662_v26  ;;  %v686_v43 = vrot.slane %v685_v36, 4  ;;  %v652_v54 = vunpack.c.l.bf16 %v2895_v53  ;;  %v653_v55 = vunpack.c.h.bf16 %v2895_v53  ;;  %v2486_v27 = vld [vmem:[%s3333_s5 + $0x38] sm:$0xff]  }
  0x17   : > { %v679_v35 = vrot.slane %v678_v30, 4  ;;  %v742_v46 = vrot.slane %v741_v40, 4  ;;  %v693_v60 = vrot.slane %v692_v48, 4  ;;  %v748_v61 = vadd.f32 %v667_v50, %v666_v49 }
  0x18   : > { %2211 = vmatmul.mubr.msk.bf16.vlgmr.msra.gmra.mrb[0].mxu1 %vm508_vm0, %v2478_v18  ;;  %2210 = vmatmul.mubr.msk.bf16.vlgmr.msra.gmra.mrb[0].mxu0 %vm508_vm0, %v2478_v18  ;;  %v735_v39 = vrot.slane %v734_v33, 4  ;;  %v687_v52 = vadd.f32 %v686_v43, %v685_v36  ;;  %v668_v62 = vunpack.c.l.bf16 %v2900_v56  ;;  %v699_v1 = vadd.f32 %v653_v55, %v652_v54 }
  0x19   : > { %2335 = vmatpush3.bf16.msra.mxu0 %v2479_v17  ;;  %2410 = vmatpush3.bf16.msra.mxu1 %v2479_v17  ;;  %v680_v44 = vadd.f32 %v679_v35, %v678_v30  ;;  %v743_v59 = vadd.f32 %v742_v46, %v741_v40  ;;  %v669_v3 = vunpack.c.h.bf16 %v2900_v56  ;;  %v694_v8 = vadd.f32 %v693_v60, %v692_v48  ;;  %v2493_v48 = vld [vmem:[%s3332_s4 + $0x4] ss:$12 sps:$4 sm:$0xff]  }
  0x1a   : > { %2336 = vmatprep.subr.bf16.mxu0 %v2480_v19  ;;  %2403 = vmatprep.subr.bf16.mxu1 %v2480_v19  ;;  %v736_v45 = vadd.f32 %v735_v39, %v734_v33  ;;  %v688_v0 = vrot.slane %v687_v52, 2  ;;  %v749_v9 = vrot.slane %v748_v61, 4  ;;  %v654_v13 = vunpack.c.l.bf16 %v2908_v4 }
  0x1b   : > { %2350 = vmatprep.mubr.bf16.mxu0 %v610_v20  ;;  %2366 = vmatprep.mubr.bf16.mxu1 %v626_v24  ;;  %v681_v57 = vrot.slane %v680_v44, 2  ;;  %v744_v7 = vrot.slane %v743_v59, 2  ;;  %v755_v10 = vadd.f32 %v669_v3, %v668_v62  ;;  %v700_v15 = vrot.slane %v699_v1, 4 }
  0x1c   : > { %v737_v58 = vrot.slane %v736_v45, 2  ;;  %v689_v12 = vadd.f32 %v688_v0, %v687_v52  ;;  %v655_v17 = vunpack.c.h.bf16 %v2908_v4  ;;  %v695_v22 = vrot.slane %v694_v8, 2  ;;  %v2942_v52 = vld [vmem:[%s2858_s11 + $0x70] sm:$0xff]   ;;  %v2491_v0 = vld [vmem:[%s3332_s4] ss:$12 sps:$4 sm:$0xff]  }
  0x1d   : > { %2337 = vmatpush3.bf16.msra.mxu0 %v2480_v19  ;;  %2411 = vmatpush3.bf16.msra.mxu1 %v2480_v19  ;;  %v682_v5 = vadd.f32 %v681_v57, %v680_v44  ;;  %v756_v16 = vrot.slane %v755_v10, 4  ;;  %v745_v20 = vadd.f32 %v744_v7, %v743_v59  ;;  %v750_v23 = vadd.f32 %v749_v9, %v748_v61  ;;  %v2497_v7 = vld [vmem:[%s3332_s4 + $0x1c] ss:$12 sps:$4 sm:$0xff]  }
  0x1e   : > { %2338 = vmatprep.subr.bf16.mxu0 %v2481_v21  ;;  %2404 = vmatprep.subr.bf16.mxu1 %v2481_v21  ;;  %v738_v6 = vadd.f32 %v737_v58, %v736_v45  ;;  %v706_v24 = vadd.f32 %v655_v17, %v654_v13  ;;  %v670_v26 = vunpack.c.l.bf16 %v2915_v14  ;;  %v690_v28 = vrot.slane %v689_v12, 1 }
  0x1f   : > { %v683_v18 = vrot.slane %v682_v5, 1  ;;  %v671_v30 = vunpack.c.h.bf16 %v2915_v14  ;;  %v701_v32 = vadd.f32 %v700_v15, %v699_v1  ;;  %v757_v33 = vadd.f32 %v756_v16, %v755_v10  ;;  %v2494_v1 = vld [vmem:[%s3332_s4 + $0x8] ss:$12 sps:$4 sm:$0xff]  }
  0x20   : > { %v739_v19 = vrot.slane %v738_v6, 1  ;;  %v707_v34 = vrot.slane %v706_v24, 4  ;;  %v746_v42 = vrot.slane %v745_v20, 1  ;;  %v696_v43 = vadd.f32 %v695_v22, %v694_v8 }
  0x21   : > { %2339 = vmatpush3.bf16.msra.mxu0 %v2481_v21  ;;  %2412 = vmatpush3.bf16.msra.mxu1 %v2481_v21  ;;  %v2919_v21 = vld [vmem:[%s2858_s11 + $0x28] sm:$0xff]   ;;  %v684_v36 = vadd.f32 %v683_v18, %v682_v5  ;;  %v762_v39 = vadd.f32 %v671_v30, %v670_v26  ;;  %v751_v44 = vrot.slane %v750_v23, 2  ;;  %v672_v45 = vunpack.c.l.bf16 %v2927_v31 }
  0x22   : > { %2340 = vmatprep.subr.bf16.mxu0 %v2482_v38  ;;  %2405 = vmatprep.subr.bf16.mxu1 %v2482_v38  ;;  %v656_v35 = vunpack.c.l.bf16 %v2919_v21  ;;  %v657_v40 = vunpack.c.h.bf16 %v2919_v21  ;;  %v691_v46 = vadd.f32 %v690_v28, %v689_v12  ;;  %v702_v54 = vrot.slane %v701_v32, 2  ;;  %v2958_v12 = vld [vmem:[%s2858_s11 + $0x38] sm:$0xff]  }
  0x23   : > { %v763_v49 = vrot.slane %v762_v39, 4  ;;  %v758_v55 = vrot.slane %v757_v33, 2  ;;  %v708_v57 = vadd.f32 %v707_v34, %v706_v24  ;;  %v658_v58 = vunpack.c.l.bf16 %v2934_v41  ;;  %v2498_v24 = vld [vmem:[%s3332_s4 + $0x20] ss:$12 sps:$4 sm:$0xff]  }
  0x24   : > { %v713_v50 = vadd.f32 %v657_v40, %v656_v35  ;;  %v659_v62 = vunpack.c.h.bf16 %v2934_v41  ;;  %v697_v3 = vrot.slane %v696_v43, 1  ;;  %v674_v5 = vunpack.c.l.bf16 %v2942_v52  ;;  %v2979_v35 = vld [vmem:[%s2858_s11 + $0x78] sm:$0xff]   ;;  %s2300_s11 = sshll.u32 %s3341_s30, 4 }
  0x25   : > { %2341 = vmatpush3.bf16.msra.mxu0 %v2482_v38  ;;  %2413 = vmatpush3.bf16.msra.mxu1 %v2482_v38  ;;  %v2930_v38 = vadd.f32 %v739_v19, %v738_v6  ;;  %v764_v59 = vadd.f32 %v763_v49, %v762_v39  ;;  %v2728_v6 = vmov 0.0   ;;  %v752_v8 = vadd.f32 %v751_v44, %v750_v23  ;;  %v2495_v23 = vld [vmem:[%s3332_s4 + $0x18] ss:$12 sps:$4 sm:$0xff]   ;;  %s376_s10 = scalar_lea.vmem %s3335_s7, %s2300_s11 }
  0x26   : > { %2342 = vmatprep.subr.bf16.mxu0 %v2483_v51  ;;  %2406 = vmatprep.subr.bf16.mxu1 %v2483_v51  ;;  %v714_v60 = vrot.slane %v713_v50, 4  ;;  %v807_v13 = vsel %vm806_vm1, %v691_v46, %v684_v36  ;;  %v703_v15 = vadd.f32 %v702_v54, %v701_v32  ;;  %v759_v16 = vadd.f32 %v758_v55, %v757_v33  ;;  %v2505_v32 = vld [vmem:[%s3332_s4 + $0x34] ss:$12 sps:$4 sm:$0xff]   ;;  %v2506_v46 = vld [vmem:[%s3332_s4 + $0x38] ss:$12 sps:$4 sm:$0xff]  }
  0x27   : > { %v675_v17 = vunpack.c.h.bf16 %v2942_v52  ;;  %v709_v18 = vrot.slane %v708_v57, 2  ;;  %v765_v19 = vrot.slane %v764_v59, 2  ;;  %v698_v26 = vadd.f32 %v697_v3, %v696_v43  ;;  %v2507_v3 = vld [vmem:[%s3332_s4 + $0x48] ss:$12 sps:$4 sm:$0xff]  }
  0x28   : > { %v715_v9 = vadd.f32 %v714_v60, %v713_v50  ;;  %v753_v28 = vrot.slane %v752_v8, 1  ;;  %v760_v43 = vrot.slane %v759_v16, 1  ;;  %v677_v49 = vunpack.c.h.bf16 %v2979_v35 }
  0x29   : > { %2343 = vmatpush3.bf16.msra.mxu0 %v2483_v51  ;;  %2414 = vmatpush3.bf16.msra.mxu1 %v2483_v51  ;;  %v673_v51 = vunpack.c.h.bf16 %v2927_v31  ;;  %v710_v44 = vadd.f32 %v709_v18, %v708_v57 }
  0x2a   : > { %2344 = vmatprep.subr.bf16.mxu0 %v2484_v63  ;;  %2407 = vmatprep.subr.bf16.mxu1 %v2484_v63  ;;  %v716_v33 = vrot.slane %v715_v9, 2  ;;  %v754_v50 = vadd.f32 %v753_v28, %v752_v8 }
  0x2b   : > { %v769_v61 = vadd.f32 %v673_v51, %v672_v45  ;;  %v766_v45 = vadd.f32 %v765_v19, %v764_v59  ;;  %v2509_v51 = vld [vmem:[%s3332_s4 + $0x4c] ss:$12 sps:$4 sm:$0xff]  }
  0x2c   : > { %v717_v54 = vadd.f32 %v716_v33, %v715_v9  ;;  %v2522_v33 = vld [vmem:[%s3332_s4 + $0x80] ss:$12 sps:$4 sm:$0xff]  }
  0x2d   : > { %2345 = vmatpush3.bf16.msra.mxu0 %v2484_v63  ;;  %2415 = vmatpush3.bf16.msra.mxu1 %v2484_v63  ;;  %v747_v63 = vadd.f32 %v746_v42, %v745_v20  ;;  %v770_v10 = vrot.slane %v769_v61, 4  ;;  %v704_v42 = vrot.slane %v703_v15, 1 }
  0x2e   : > { %2346 = vmatprep.subr.bf16.mxu0 %v2485_v11  ;;  %2408 = vmatprep.subr.bf16.mxu1 %v2485_v11 }
  0x2f   : > { %v771_v20 = vadd.f32 %v770_v10, %v769_v61  ;;  %v820_v30 = vsel %vm806_vm1, %v747_v63, %v2930_v38  ;;  %v2503_v38 = vld [vmem:[%s3332_s4 + $0x30] ss:$12 sps:$4 sm:$0xff]   ;;  %v809_v61 = vsel %vm808_vm2, %v698_v26, %v807_v13  ;;  %v767_v63 = vrot.slane %v766_v45, 1 }
  0x31   : > { %2347 = vmatpush3.bf16.msra.mxu0 %v2485_v11  ;;  %2416 = vmatpush3.bf16.msra.mxu1 %v2485_v11  ;;  %v720_v11 = vadd.f32 %v659_v62, %v658_v58  ;;  %v772_v36 = vrot.slane %v771_v20, 2  ;;  %v711_v62 = vrot.slane %v710_v44, 1 }
  0x32   : > { %2348 = vmatprep.subr.bf16.mxu0 %v2486_v27  ;;  %2409 = vmatprep.subr.bf16.mxu1 %v2486_v27 }
  0x33   : > { %v721_v22 = vrot.slane %v720_v11, 4  ;;  %v773_v57 = vadd.f32 %v772_v36, %v771_v20  ;;  %v2515_v20 = vld [vmem:[%s3332_s4 + $0x60] ss:$12 sps:$4 sm:$0xff]  }
  0x35   : > { %2349 = vmatpush3.bf16.msra.mxu0 %v2486_v27  ;;  %2417 = vmatpush3.bf16.msra.mxu1 %v2486_v27  ;;  %v776_v27 = vadd.f32 %v675_v17, %v674_v5  ;;  %v722_v34 = vadd.f32 %v721_v22, %v720_v11  ;;  %v2510_v5 = vld [vmem:[%s3332_s4 + $0x50] ss:$12 sps:$4 sm:$0xff]   ;;  %v718_v11 = vrot.slane %v717_v54, 1  ;;  %v774_v13 = vrot.slane %v773_v57, 1 }
  0x36   : > { %1938 = vmatprep.subr.bf16.mxu0 %v2493_v48  ;;  %2382 = vmatprep.subr.bf16.mxu1 %v2728_v6  ;;  %v768_v17 = vadd.f32 %v767_v63, %v766_v45  ;;  %v2527_v45 = vld [vmem:[%s3332_s4 + $0x90] ss:$12 sps:$4 sm:$0xff]  }
  0x37   : > { %v777_v39 = vrot.slane %v776_v27, 4  ;;  %v723_v55 = vrot.slane %v722_v34, 2 }
  0x38   : > { %2351 = vmatmul.mubr.bf16.vlgmr.msra.gmra.mrb[4].mxu0 %v2869_v25  ;;  %2367 = vmatmul.mubr.bf16.vlgmr.msra.gmra.mrb[4].mxu1 %v2873_v29  ;;  %v660_v25 = vunpack.c.l.bf16 %v2958_v12  ;;  %v661_v29 = vunpack.c.h.bf16 %v2958_v12 }
  0x39   : > { %1939 = vmatpush1.bf16.msra.mxu0 %v2491_v0  ;;  %2383 = vmatpush3.bf16.msra.mxu1 %v2494_v1  ;;  %v705_v0 = vadd.f32 %v704_v42, %v703_v15  ;;  %v761_v1 = vadd.f32 %v760_v43, %v759_v16  ;;  %v724_v9 = vadd.f32 %v723_v55, %v722_v34 }
  0x3a   : > { %1940 = vmatprep.subr.bf16.mxu0 %v2497_v7  ;;  %2384 = vmatprep.subr.bf16.mxu1 %v2728_v6  ;;  %v727_v40 = vadd.f32 %v661_v29, %v660_v25  ;;  %v712_v16 = vadd.f32 %v711_v62, %v710_v44  ;;  %v775_v25 = vadd.f32 %v774_v13, %v773_v57 }
  0x3b   : > { %2354 = vmatprep.mubr.bf16.mxu0 %v2879_v37  ;;  %2370 = vmatprep.mubr.bf16.mxu1 %v2887_v47  ;;  %v778_v37 = vadd.f32 %v777_v39, %v776_v27  ;;  %v676_v47 = vunpack.c.l.bf16 %v2979_v35  ;;  %v811_v18 = vsel %vm810_vm3, %v705_v0, %v809_v61  ;;  %v719_v27 = vadd.f32 %v718_v11, %v717_v54 }
  0x3c   : > { %v728_v48 = vrot.slane %v727_v40, 4  ;;  %v813_v28 = vsel %vm812_vm4, %v712_v16, %v811_v18 }
  0x3d   : > { %1941 = vmatpush1.bf16.msra.mxu0 %v2495_v23  ;;  %2385 = vmatpush3.bf16.msra.mxu1 %v2498_v24  ;;  %v779_v58 = vrot.slane %v778_v37, 2  ;;  %v783_v60 = vadd.f32 %v677_v49, %v676_v47  ;;  %v2521_v23 = vld [vmem:[%s3332_s4 + $0x7c] ss:$12 sps:$4 sm:$0xff]   ;;  %v725_v24 = vrot.slane %v724_v9, 1 }
  0x3e   : > { %1942 = vmatprep.subr.bf16.mxu0 %v2505_v32  ;;  %2386 = vmatprep.subr.bf16.mxu1 %v2728_v6  ;;  %v729_v59 = vadd.f32 %v728_v48, %v727_v40  ;;  %v2519_v32 = vld [vmem:[%s3332_s4 + $0x78] ss:$12 sps:$4 sm:$0xff]   ;;  %v815_v40 = vsel %vm814_vm5, %v719_v27, %v813_v28  ;;  %v2534_v48 = vld [vmem:[%s3332_s4 + $0xb0] ss:$12 sps:$4 sm:$0xff]  }
  0x3f   : > { %v784_v8 = vrot.slane %v783_v60, 4  ;;  %v780_v10 = vadd.f32 %v779_v58, %v778_v37  ;;  %v726_v39 = vadd.f32 %v725_v24, %v724_v9  ;;  %v2531_v37 = vld [vmem:[%s3332_s4 + $0xa8] ss:$12 sps:$4 sm:$0xff]  }
  0x40   : > { %2355 = vmatmul.mubr.bf16.gmra.mrb[8].mxu0 %v2895_v53  ;;  %2371 = vmatmul.mubr.bf16.gmra.mrb[8].mxu1 %v2900_v56  ;;  %v730_v7 = vrot.slane %v729_v59, 2  ;;  %v821_v53 = vsel %vm808_vm2, %v754_v50, %v820_v30  ;;  %v2517_v56 = vld [vmem:[%s3332_s4 + $0x64] ss:$12 sps:$4 sm:$0xff]  }
  0x41   : > { %1943 = vmatpush1.bf16.msra.mxu0 %v2503_v38  ;;  %2387 = vmatpush3.bf16.msra.mxu1 %v2506_v46  ;;  %v785_v15 = vadd.f32 %v784_v8, %v783_v60  ;;  %v822_v19 = vsel %vm810_vm3, %v761_v1, %v821_v53  ;;  %v781_v26 = vrot.slane %v780_v10, 1  ;;  %v2530_v38 = vld [vmem:[%s3332_s4 + $0x98] ss:$12 sps:$4 sm:$0xff]  }
  0x42   : > { %1944 = vmatprep.subr.bf16.mxu0 %v2509_v51  ;;  %2388 = vmatprep.subr.bf16.mxu1 %v2728_v6  ;;  %v823_v30 = vsel %vm812_vm4, %v768_v17, %v822_v19 }
  0x43   : > { %2358 = vmatprep.mubr.bf16.mxu0 %v2908_v4  ;;  %2374 = vmatprep.mubr.bf16.mxu1 %v2915_v14  ;;  %v2518_v4 = vld [vmem:[%s3332_s4 + $0x68] ss:$12 sps:$4 sm:$0xff]   ;;  %v731_v14 = vadd.f32 %v730_v7, %v729_v59  ;;  %v786_v22 = vrot.slane %v785_v15, 2  ;;  %v824_v42 = vsel %vm814_vm5, %v775_v25, %v823_v30 }
  0x45   : > { %1945 = vmatpush1.bf16.msra.mxu0 %v2507_v3  ;;  %2389 = vmatpush3.bf16.msra.mxu1 %v2510_v5  ;;  %v787_v29 = vadd.f32 %v786_v22, %v785_v15  ;;  %v732_v34 = vrot.slane %v731_v14, 1 }
  0x46   : > { %1946 = vmatprep.subr.bf16.mxu0 %v2517_v56  ;;  %2390 = vmatprep.subr.bf16.mxu1 %v2728_v6 }
  0x47   : > { %v788_v36 = vrot.slane %v787_v29, 1  ;;  %v733_v43 = vadd.f32 %v732_v34, %v731_v14 }
  0x48   : > { %2359 = vmatmul.mubr.bf16.gmra.mrb[12].mxu0 %v2919_v21  ;;  %2375 = vmatmul.mubr.bf16.gmra.mrb[12].mxu1 %v2927_v31  ;;  %v782_v21 = vadd.f32 %v781_v26, %v780_v10  ;;  %v2529_v31 = vld [vmem:[%s3332_s4 + $0x94] ss:$12 sps:$4 sm:$0xff]  }
  0x49   : > { %1947 = vmatpush1.bf16.msra.mxu0 %v2515_v20  ;;  %2391 = vmatpush3.bf16.msra.mxu1 %v2518_v4  ;;  %v789_v44 = vadd.f32 %v788_v36, %v787_v29 }
  0x4a   : > { %1948 = vmatprep.subr.bf16.mxu0 %v2521_v23  ;;  %2392 = vmatprep.subr.bf16.mxu1 %v2728_v6  ;;  %v825_v46 = vsel %vm816_vm6, %v782_v21, %v824_v42 }
  0x4b   : > { %2362 = vmatprep.mubr.bf16.mxu0 %v2934_v41  ;;  %2378 = vmatprep.mubr.bf16.mxu1 %v2942_v52  ;;  %v2533_v41 = vld [vmem:[%s3332_s4 + $0xac] ss:$12 sps:$4 sm:$0xff]   ;;  %v817_v52 = vsel %vm816_vm6, %v726_v39, %v815_v40  ;;  %v826_v49 = vsel %vm818_vm7, %v789_v44, %v825_v46 }
  0x4c   : > { %v819_v47 = vsel %vm818_vm7, %v733_v43, %v817_v52 }
  0x4d   : > { %1949 = vmatpush1.bf16.msra.mxu0 %v2519_v32  ;;  %2393 = vmatpush3.bf16.msra.mxu1 %v2522_v33 }
  0x4e   : > { %1950 = vmatprep.subr.bf16.mxu0 %v2529_v31  ;;  %2394 = vmatprep.subr.bf16.mxu1 %v2728_v6 }
  0x50   : > { %2363 = vmatmul.mubr.bf16.gmra.mrb[16].mxu0 %v2958_v12  ;;  %2379 = vmatmul.mubr.bf16.gmra.mrb[16].mxu1 %v2979_v35  ;;  %v1777_v12 = vpack.c.bf16 %v826_v49, %v819_v47  ;;  %v403_v35 = vlaneseq }
  0x51   : > { %1951 = vmatpush1.bf16.msra.mxu0 %v2527_v45  ;;  %2395 = vmatpush3.bf16.msra.mxu1 %v2530_v38 }
  0x52   : > { %1952 = vmatprep.subr.bf16.mxu0 %v2533_v41  ;;  %2396 = vmatprep.subr.bf16.mxu1 %v2728_v6  ;;  %v3070_v55 = vshrl.u32 %v403_v35, 7 }
  0x53   : > { %1970 = vmatprep.mubr.bf16.mxu0 %v2727_v2  ;;  %2398 = vmatprep.mubr.msk.bf16.mxu1 %vm2729_vm8, %v2728_v6  ;;  %v2730_v2 = vmov 1966171168   ;;  %v3076_v6 = vld [vmem:[%s3334_s6] sm:$0xf] }
  0x54   : > { %v417_v58 = vsub.s32 3, %v3070_v55  ;;  %v1158_v59 = vunpack.c.l.s4 %v2730_v2  ;;  %v3087_v10 = vsub.s32 0, %v3070_v55  ;;  %v413_v52 = vsub.s32 2, %v3070_v55 }
  0x55   : > { %1953 = vmatpush1.bf16.msra.mxu0 %v2531_v37  ;;  %2397 = vmatpush3.bf16.msra.mxu1 %v2534_v48 }
  0x56   : > { %v418_v60 = vrot.slane %v3076_v6, %v417_v58  ;;  %v1159_v61 = vunpack.c.0.s8 %v1158_v59 }
  0x58   : > { %1971 = vmatmul.mubr.bf16.vlgmr.msra.gmra.mrb[0].mxu0 %v1777_v12  ;;  %2399 = vmatmul.mubr.bf16.vlgmr.msra.gmra.mrb[20].mxu1 %v1777_v12  ;;  %v3080_v63 = vsub.s32 %v1159_v61, %v3070_v55 }
  0xeb   : > { %v3066_v50 = vpop.f32.mrb[0].mxu1 }
  0xec   : > { %v591_v51 = vpop.f32.mrb[1].mxu1 }
  0xed   : > { %v3068_v54 = vpop.f32.mrb[2].mxu1  ;;  %v592_v62 = vadd.f32 %v591_v51, %v418_v60 }
  0xee   : > { %v595_v57 = vpop.f32.mrb[3].mxu1 }
  0xef   : > { %v596_v0 = vadd.f32 %v595_v57, %v418_v60  ;;  %v1163_v1 = vrot.slane %v592_v62, %v3080_v63  ;;  %v1156_v8 = vcombine.high %v592_v62, %v592_v62 }
  0xf1   : > { %v1212_v3 = vrot.slane %v596_v0, %v3080_v63  ;;  %v1171_v5 = vcombine.high %v1163_v1, %v1163_v1  ;;  %v1205_v9 = vcombine.high %v596_v0, %v596_v0  ;;  %v1179_v11 = vrot.slane %v1163_v1, %v3080_v63 }
  0xf2   : > { %v1170_v15 = vrot.slane %v1156_v8, %v3080_v63 }
  0xf3   : > { %v1220_v7 = vcombine.high %v1212_v3, %v1212_v3  ;;  %v1193_v53 = vrot.slane %v1171_v5, %v3080_v63  ;;  %v1228_v13 = vrot.slane %v1212_v3, %v3080_v63  ;;  %v1219_v18 = vrot.slane %v1205_v9, %v3080_v63 }
  0xf4   : > { %v1257_v4 = vrot.slane %v1179_v11, %v3087_v10  ;;  %v1201_v22 = vcombine.high %v1179_v11, %v1179_v11  ;;  %v1172_v29 = vcombine.high %v1170_v15, %v1170_v15  ;;  %v3100_v49 = vrot.slane %v1170_v15, %v3080_v63 }
  0xf5   : > { %v1242_v56 = vrot.slane %v1220_v7, %v3080_v63  ;;  %v1261_v16 = vrot.slane %v1193_v53, %v3087_v10  ;;  %v1289_v14 = vrot.slane %v1228_v13, %v3087_v10  ;;  %v1203_v25 = vcombine.high %v1193_v53, %v1193_v53 }
  0xf6   : > { %v1250_v36 = vcombine.high %v1228_v13, %v1228_v13  ;;  %v1221_v37 = vcombine.high %v1219_v18, %v1219_v18  ;;  %v1265_v47 = vrot.slane %v1201_v22, %v3087_v10  ;;  %v3106_v60 = vrot.slane %v1172_v29, %v3080_v63 }
  0xf7   : > { %v1293_v17 = vrot.slane %v1242_v56, %v3087_v10  ;;  %v1252_v34 = vcombine.high %v1242_v56, %v1242_v56  ;;  %v1269_v35 = vrot.slane %v1203_v25, %v3087_v10  ;;  %v3112_v56 = vrot.slane %v1219_v18, %v3080_v63 }
  0xf8   : > { %v1297_v59 = vrot.slane %v1250_v36, %v3087_v10  ;;  %v3109_v3 = vrot.slane %v1221_v37, %v3080_v63  ;;  %v3121_v18 = vrot.slane %v3076_v6, %v413_v52  ;;  %v1202_v37 = vcombine.high %v3100_v49, %v3100_v49 }
  0xf9   : > { %v1301_v51 = vrot.slane %v1252_v34, %v3087_v10 }
 0x10b   : > { %v2352_v19 = vpop.f32.mrb[4].mxu0  ;;  %v2368_v20 = vpop.f32.mrb[4].mxu1 }
 0x10c   : > { %v1336_v23 = vadd.f32 %v2352_v19, %v1261_v16  ;;  %v1352_v24 = vadd.f32 %v2368_v20, %v1293_v17  ;;  %v1027_v26 = vpop.f32.mrb[5].mxu0  ;;  %v1091_v27 = vpop.f32.mrb[5].mxu1 }
 0x10d   : > { %v1334_v28 = vadd.f32 %v1257_v4, %v1027_v26  ;;  %v1350_v30 = vadd.f32 %v1289_v14, %v1091_v27  ;;  %v2353_v32 = vpop.f32.mrb[6].mxu0  ;;  %v2369_v33 = vpop.f32.mrb[6].mxu1 }
 0x10e   : > { %v2238_v39 = vmul.f32 -1.442695, %v1336_v23  ;;  %v2254_v21 = vmul.f32 -1.442695, %v1352_v24  ;;  %v1337_v31 = vadd.f32 %v2353_v32, %v1261_v16  ;;  %v1353_v40 = vadd.f32 %v2369_v33, %v1293_v17  ;;  %v1030_v42 = vpop.f32.mrb[7].mxu0  ;;  %v1094_v43 = vpop.f32.mrb[7].mxu1 }
 0x10f   : > { %v2236_v44 = vmul.f32 -1.442695, %v1334_v28  ;;  %v2252_v45 = vmul.f32 -1.442695, %v1350_v30  ;;  %v1335_v38 = vadd.f32 %v1257_v4, %v1030_v42  ;;  %v1351_v41 = vadd.f32 %v1289_v14, %v1094_v43 }
 0x110   : > { %2551 = vpow2.f32 %v2238_v39  ;;  %v2239_v46 = vmul.f32 -1.442695, %v1337_v31  ;;  %v2255_v48 = vmul.f32 -1.442695, %v1353_v40  ;;  %v1277_v23 = vrot.slane %v3106_v60, %v3087_v10 }
 0x111   : > { %2553 = vpow2.f32 %v2254_v21  ;;  %v2237_v12 = vmul.f32 -1.442695, %v1335_v38  ;;  %v2253_v57 = vmul.f32 -1.442695, %v1351_v41  ;;  %v1309_v24 = vrot.slane %v3109_v3, %v3087_v10 }
 0x112   : > { %2555 = vpow2.f32 %v2236_v44  ;;  %v1273_v28 = vrot.slane %v3100_v49, %v3087_v10  ;;  %v1305_v30 = vrot.slane %v3112_v56, %v3087_v10 }
 0x113   : > { %2557 = vpow2.f32 %v2252_v45  ;;  %v2356_v58 = vpop.f32.mrb[8].mxu0  ;;  %v2372_v2 = vpop.f32.mrb[8].mxu1 }
 0x114   : > { %2559 = vpow2.f32 %v2239_v46  ;;  %v1340_v61 = vadd.f32 %v2356_v58, %v1269_v35  ;;  %v1356_v62 = vadd.f32 %v2372_v2, %v1301_v51  ;;  %v1043_v0 = vpop.f32.mrb[9].mxu0  ;;  %v1107_v1 = vpop.f32.mrb[9].mxu1  ;;  %v1204_v46 = vcombine.high %v3106_v60, %v3106_v60 }
 0x115   : > { %2561 = vpow2.f32 %v2255_v48  ;;  %v1338_v5 = vadd.f32 %v1265_v47, %v1043_v0  ;;  %v1354_v7 = vadd.f32 %v1297_v59, %v1107_v1  ;;  %v2357_v8 = vpop.f32.mrb[10].mxu0  ;;  %v2373_v53 = vpop.f32.mrb[10].mxu1  ;;  %v3163_v1 = vadd.f32 %v3066_v50, %v3121_v18 }
 0x116   : > { %2563 = vpow2.f32 %v2237_v12  ;;  %v2242_v9 = vmul.f32 -1.442695, %v1340_v61  ;;  %v2258_v11 = vmul.f32 -1.442695, %v1356_v62  ;;  %v1341_v13 = vadd.f32 %v2357_v8, %v1269_v35  ;;  %v1046_v15 = vpop.f32.mrb[11].mxu0  ;;  %v1110_v16 = vpop.f32.mrb[11].mxu1 }
 0x117   : > { %2565 = vpow2.f32 %v2253_v57  ;;  %v2240_v17 = vmul.f32 -1.442695, %v1338_v5  ;;  %v2256_v19 = vmul.f32 -1.442695, %v1354_v7  ;;  %v3114_v20 = vadd.f32 %v2373_v53, %v1301_v51 }
 0x118   : > { %2567 = vpow2.f32 %v2242_v9  ;;  %v2243_v4 = vmul.f32 -1.442695, %v1341_v13  ;;  %v3116_v14 = vadd.f32 %v1265_v47, %v1046_v15  ;;  %v3118_v22 = vadd.f32 %v1297_v59, %v1110_v16 }
 0x119   : > { %2569 = vpow2.f32 %v2258_v11  ;;  %v1253_v35 = vcombine.high %v3109_v3, %v3109_v3  ;;  %v1251_v51 = vcombine.high %v3112_v56, %v3112_v56  ;;  %v1285_v5 = vrot.slane %v1204_v46, %v3087_v10  ;;  %v1576_v46 = vld [vmem:[%s3159_s29 + $0x80] sm:$0xff] }
 0x11a   : > { %v2552_v63 = vpop.eup %2551  ;;  %2571 = vpow2.f32 %v2240_v17  ;;  %v1281_v9 = vrot.slane %v1202_v37, %v3087_v10 }
 0x11b   : > { %v2554_v26 = vpop.eup %2553  ;;  %v1464_v27 = vadd.f32 1.0, %v2552_v63  ;;  %2573 = vpow2.f32 %v2256_v19  ;;  %v2360_v25 = vpop.f32.mrb[12].mxu0  ;;  %v1317_v56 = vrot.slane %v1253_v35, %v3087_v10  ;;  %v1313_v17 = vrot.slane %v1251_v51, %v3087_v10  ;;  %v1578_v63 = vld [vmem:[%s3159_s29 + $0x90] sm:$0xff] }
 0x11c   : > { %v2376_v29 = vpop.f32.mrb[12].mxu1  ;;  %v2556_v32 = vpop.eup %2555  ;;  %v1480_v33 = vadd.f32 1.0, %v2554_v26  ;;  %2575 = vpow2.f32 %v2243_v4  ;;  %v3131_v34 = vadd.f32 %v2360_v25, %v1277_v23  ;;  %v1562_v4 = vld [vmem:[%s3159_s29 + $0x10] sm:$0xff] }
 0x11d   : > { %v3133_v36 = vadd.f32 %v2376_v29, %v1309_v24  ;;  %v1059_v39 = vpop.f32.mrb[13].mxu0  ;;  %v1123_v21 = vpop.f32.mrb[13].mxu1  ;;  %2577 = vrcp.f32 %v1464_v27  ;;  %v1462_v40 = vadd.f32 1.0, %v2556_v32  ;;  %v2259_v32 = vmul.f32 -1.442695, %v3114_v20 }
 0x11e   : > { %v2558_v31 = vpop.eup %2557  ;;  %v3135_v42 = vadd.f32 %v1273_v28, %v1059_v39  ;;  %v3137_v43 = vadd.f32 %v1305_v30, %v1123_v21  ;;  %v2361_v44 = vpop.f32.mrb[14].mxu0  ;;  %2579 = vrcp.f32 %v1480_v33  ;;  %v2246_v20 = vmul.f32 -1.442695, %v3131_v34 }
 0x11f   : > { %v2377_v45 = vpop.f32.mrb[14].mxu1  ;;  %v2560_v38 = vpop.eup %2559  ;;  %v1478_v41 = vadd.f32 1.0, %v2558_v31  ;;  %2581 = vrcp.f32 %v1462_v40  ;;  %v3148_v2 = vadd.f32 %v2361_v44, %v1277_v23  ;;  %v2241_v44 = vmul.f32 -1.442695, %v3116_v14 }
 0x120   : > { %v1062_v52 = vpop.f32.mrb[15].mxu0  ;;  %v2562_v48 = vpop.eup %2561  ;;  %v1465_v47 = vadd.f32 1.0, %v2560_v38  ;;  %v3150_v59 = vadd.f32 %v2377_v45, %v1309_v24  ;;  %v2257_v45 = vmul.f32 -1.442695, %v3118_v22 }
 0x121   : > { %v1126_v12 = vpop.f32.mrb[15].mxu1  ;;  %v2564_v57 = vpop.eup %2563  ;;  %2583 = vrcp.f32 %v1478_v41  ;;  %v1481_v58 = vadd.f32 1.0, %v2562_v48  ;;  %v3152_v61 = vadd.f32 %v1273_v28, %v1062_v52  ;;  %v1560_v28 = vld [vmem:[%s3159_s29] sm:$0xff] }
 0x122   : > { %v2566_v60 = vpop.eup %2565  ;;  %2585 = vrcp.f32 %v1465_v47  ;;  %v1463_v49 = vadd.f32 1.0, %v2564_v57  ;;  %v3154_v62 = vadd.f32 %v1305_v30, %v1126_v12  ;;  %v1563_v12 = vld [vmem:[%s3159_s29 + $0x18] sm:$0xff] }
 0x123   : > { %v2568_v0 = vpop.eup %2567  ;;  %2587 = vrcp.f32 %v1481_v58  ;;  %v1479_v3 = vadd.f32 1.0, %v2566_v60  ;;  %v2364_v53 = vpop.f32.mrb[16].mxu0  ;;  %v1579_v57 = vld [vmem:[%s3159_s29 + $0x98] sm:$0xff]  ;;  %v1561_v58 = vld [vmem:[%s3159_s29 + $0x8] sm:$0xff] }
 0x124   : > { %v2570_v7 = vpop.eup %2569  ;;  %2589 = vrcp.f32 %v1463_v49  ;;  %v1468_v8 = vadd.f32 1.0, %v2568_v0  ;;  %v3168_v50 = vadd.f32 %v2364_v53, %v1285_v5  ;;  %v2380_v15 = vpop.f32.mrb[16].mxu1  ;;  %v1577_v60 = vld [vmem:[%s3159_s29 + $0x88] sm:$0xff]  ;;  %v2262_v49 = vmul.f32 -1.442695, %v3133_v36 }
 0x125   : > { %v2572_v11 = vpop.eup %2571  ;;  %2591 = vrcp.f32 %v1479_v3  ;;  %v1484_v13 = vadd.f32 1.0, %v2570_v7  ;;  %v1075_v16 = vpop.f32.mrb[17].mxu0  ;;  %v3173_v24 = vadd.f32 %v2380_v15, %v1317_v56  ;;  %v2260_v7 = vmul.f32 -1.442695, %v3137_v43 }
 0x126   : > { %v2574_v19 = vpop.eup %2573  ;;  %2593 = vrcp.f32 %v1468_v8  ;;  %v1466_v23 = vadd.f32 1.0, %v2572_v11  ;;  %v3175_v26 = vadd.f32 %v1281_v9, %v1075_v16  ;;  %v1139_v27 = vpop.f32.mrb[17].mxu1  ;;  %v2247_v11 = vmul.f32 -1.442695, %v3148_v2 }
 0x127   : > { %v2365_v25 = vpop.f32.mrb[18].mxu0  ;;  %v2576_v29 = vpop.eup %2575  ;;  %2595 = vrcp.f32 %v1484_v13  ;;  %v1482_v30 = vadd.f32 1.0, %v2574_v19  ;;  %v3179_v33 = vadd.f32 %v1313_v17, %v1139_v27  ;;  %v2263_v36 = vmul.f32 -1.442695, %v3150_v59  ;;  %v1566_v19 = vld [vmem:[%s3159_s29 + $0x30] sm:$0xff] }
 0x128   : > { %v2381_v39 = vpop.f32.mrb[18].mxu1  ;;  %v1078_v21 = vpop.f32.mrb[19].mxu0  ;;  %2597 = vrcp.f32 %v1466_v23  ;;  %v1469_v40 = vadd.f32 1.0, %v2576_v29  ;;  %v3185_v37 = vadd.f32 %v2365_v25, %v1285_v5  ;;  %v2244_v5 = vmul.f32 -1.442695, %v3135_v42  ;;  %v1582_v27 = vld [vmem:[%s3159_s29 + $0xb0] sm:$0xff] }
 0x129   : > { %v2578_v31 = vpop.eup %2577  ;;  %v1142_v38 = vpop.f32.mrb[19].mxu1  ;;  %2599 = vrcp.f32 %v1482_v30  ;;  %v3188_v35 = vadd.f32 %v2381_v39, %v1317_v56  ;;  %v3190_v14 = vadd.f32 %v1281_v9, %v1078_v21  ;;  %v2245_v42 = vmul.f32 -1.442695, %v3152_v61 }
 0x12a   : > { %v2580_v41 = vpop.eup %2579  ;;  %v1594_v52 = vmul.f32 %v2578_v31, %v1562_v4  ;;  %2601 = vrcp.f32 %v1469_v40  ;;  %v3196_v0 = vadd.f32 %v1313_v17, %v1142_v38  ;;  %v2261_v25 = vmul.f32 -1.442695, %v3154_v62 }
 0x12b   : > { %v2582_v48 = vpop.eup %2581  ;;  %v1610_v47 = vmul.f32 %v2580_v41, %v1578_v63  ;;  %2603 = vpow2.f32 %v2259_v32  ;;  %v3200_v8 = vpop.f32.mrb[0].mxu0  ;;  %v1564_v32 = vld [vmem:[%s3159_s29 + $0x20] sm:$0xff]  ;;  %v2250_v39 = vmul.f32 -1.442695, %v3168_v50 }
 0x12c   : > { %v2584_v22 = vpop.eup %2583  ;;  %v1592_v51 = vmul.f32 %v2582_v48, %v1560_v28  ;;  %2605 = vpow2.f32 %v2241_v44  ;;  %v2015_v53 = vpop.f32.mrb[20].mxu1 }
 0x12d   : > { %v2586_v34 = vpop.eup %2585  ;;  %v1608_v3 = vmul.f32 %v2584_v22, %v1576_v46  ;;  %2607 = vpow2.f32 %v2257_v45  ;;  %v3204_v13 = vpop.f32.mrb[1].mxu0  ;;  %v3209_v43 = vadd.f32 %v2015_v53, %v3163_v1  ;;  %v1580_v45 = vld [vmem:[%s3159_s29 + $0xa0] sm:$0xff]  ;;  %v1567_v46 = vld [vmem:[%s3159_s29 + $0x38] sm:$0xff] }
 0x12e   : > { %v2588_v56 = vpop.eup %2587  ;;  %v1595_v9 = vmul.f32 %v2586_v34, %v1563_v12  ;;  %v2400_v15 = vpop.f32.mrb[21].mxu1  ;;  %2609 = vpow2.f32 %v2246_v20 }
 0x12f   : > { %v2590_v16 = vpop.eup %2589  ;;  %v1611_v17 = vmul.f32 %v2588_v56, %v1579_v57  ;;  %v3211_v4 = vpop.f32.mrb[2].mxu0  ;;  %2611 = vpow2.f32 %v2262_v49 }
 0x130   : > { %v3213_v63 = vpop.f32.mrb[22].mxu1  ;;  %v2592_v2 = vpop.eup %2591  ;;  %v1631_v23 = vadd.f32 %v1595_v9, %v1594_v52  ;;  %v1593_v59 = vmul.f32 %v2590_v16, %v1561_v58  ;;  %2613 = vpow2.f32 %v2244_v5 }
 0x131   : > { %v3217_v29 = vpop.f32.mrb[3].mxu0  ;;  %v2401_v28 = vpop.f32.mrb[23].mxu1  ;;  %v1687_v61 = vadd.f32 %v1611_v17, %v1610_v47  ;;  %v1609_v1 = vmul.f32 %v2592_v2, %v1577_v60  ;;  %2615 = vpow2.f32 %v2260_v7 }
 0x132   : > { %v2594_v30 = vpop.eup %2593  ;;  %v1632_v31 = vrot.slane %v1631_v23, 4  ;;  %v1624_v40 = vadd.f32 %v1593_v59, %v1592_v51  ;;  %2617 = vpow2.f32 %v2247_v11 }
 0x133   : > { %v2596_v21 = vpop.eup %2595  ;;  %v1598_v44 = vmul.f32 %v2594_v30, %v1566_v19  ;;  %v1688_v41 = vrot.slane %v1687_v61, 4  ;;  %v1680_v62 = vadd.f32 %v1609_v1, %v1608_v3  ;;  %2619 = vpow2.f32 %v2263_v36 }
 0x134   : > { %v2598_v38 = vpop.eup %2597  ;;  %v3222_v52 = vmul.f32 %v2596_v21, %v1582_v27  ;;  %v1633_v48 = vadd.f32 %v1632_v31, %v1631_v23  ;;  %v1625_v47 = vrot.slane %v1624_v40, 4  ;;  %2621 = vpow2.f32 %v2245_v42 }
 0x135   : > { %v2600_v20 = vpop.eup %2599  ;;  %v3225_v12 = vmul.f32 %v2598_v38, %v1564_v32  ;;  %v1689_v22 = vadd.f32 %v1688_v41, %v1687_v61  ;;  %v1681_v57 = vrot.slane %v1680_v62, 4  ;;  %2623 = vpow2.f32 %v2261_v25 }
 0x136   : > { %v2602_v50 = vpop.eup %2601  ;;  %v3227_v51 = vmul.f32 %v2600_v20, %v1580_v45  ;;  %v1634_v60 = vrot.slane %v1633_v48, 2  ;;  %v1626_v49 = vadd.f32 %v1625_v47, %v1624_v40  ;;  %2625 = vpow2.f32 %v2250_v39 }
 0x137   : > { %v2604_v58 = vpop.eup %2603  ;;  %v1599_v34 = vmul.f32 %v2602_v50, %v1567_v46  ;;  %v1690_v5 = vrot.slane %v1689_v22, 2  ;;  %v1682_v7 = vadd.f32 %v1681_v57, %v1680_v62  ;;  %v3231_v31 = vrot.slane %v3076_v6, %v3087_v10 }
 0x138   : > { %v2606_v3 = vpop.eup %2605  ;;  %v1485_v53 = vadd.f32 1.0, %v2604_v58  ;;  %v1635_v9 = vadd.f32 %v1634_v60, %v1633_v48  ;;  %v1627_v11 = vrot.slane %v1626_v49, 2  ;;  %v594_v10 = vadd.f32 %v3068_v54, %v3121_v18 }
 0x139   : > { %v2608_v56 = vpop.eup %2607  ;;  %v1645_v36 = vadd.f32 %v1599_v34, %v1598_v44  ;;  %v1467_v15 = vadd.f32 1.0, %v2606_v3  ;;  %v1691_v17 = vadd.f32 %v1690_v5, %v1689_v22  ;;  %v1683_v19 = vrot.slane %v1682_v7, 2  ;;  %v1583_v3 = vld [vmem:[%s3159_s29 + $0xb8] sm:$0xff] }
 0x13a   : > { %v2610_v16 = vpop.eup %2609  ;;  %2627 = vrcp.f32 %v1485_v53  ;;  %v1483_v42 = vadd.f32 1.0, %v2608_v56  ;;  %v1636_v23 = vrot.slane %v1635_v9, 1  ;;  %v1628_v59 = vadd.f32 %v1627_v11, %v1626_v49  ;;  %v1565_v53 = vld [vmem:[%s3159_s29 + $0x28] sm:$0xff] }
 0x13b   : > { %v2612_v2 = vpop.eup %2611  ;;  %v1646_v27 = vrot.slane %v1645_v36, 4  ;;  %2629 = vrcp.f32 %v1467_v15  ;;  %v1692_v28 = vrot.slane %v1691_v17, 1  ;;  %v1684_v30 = vadd.f32 %v1683_v19, %v1682_v7 }
 0x13c   : > { %v2614_v25 = vpop.eup %2613  ;;  %2631 = vrcp.f32 %v1483_v42  ;;  %v1472_v61 = vadd.f32 1.0, %v2610_v16  ;;  %v1637_v32 = vadd.f32 %v1636_v23, %v1635_v9  ;;  %v1629_v39 = vrot.slane %v1628_v59, 1  ;;  %v1570_v23 = vld [vmem:[%s3159_s29 + $0x50] sm:$0xff] }
 0x13d   : > { %v2616_v1 = vpop.eup %2615  ;;  %v1488_v21 = vadd.f32 1.0, %v2612_v2  ;;  %v1693_v44 = vadd.f32 %v1692_v28, %v1691_v17  ;;  %v1685_v45 = vrot.slane %v1684_v30, 1  ;;  %v1470_v38 = vadd.f32 1.0, %v2614_v25  ;;  %v1586_v25 = vld [vmem:[%s3159_s29 + $0xd0] sm:$0xff] }
 0x13e   : > { %v2618_v40 = vpop.eup %2617  ;;  %2633 = vrcp.f32 %v1472_v61  ;;  %v1630_v62 = vadd.f32 %v1629_v39, %v1628_v59  ;;  %v1647_v46 = vadd.f32 %v1646_v27, %v1645_v36  ;;  %v1486_v20 = vadd.f32 1.0, %v2616_v1  ;;  %v1581_v36 = vld [vmem:[%s3159_s29 + $0xa8] sm:$0xff]  ;;  %v1568_v61 = vld [vmem:[%s3159_s29 + $0x40] sm:$0xff] }
 0x13f   : > { %v2620_v41 = vpop.eup %2619  ;;  %2635 = vrcp.f32 %v1488_v21  ;;  %v1686_v47 = vadd.f32 %v1685_v45, %v1684_v30  ;;  %v1473_v50 = vadd.f32 1.0, %v2618_v40  ;;  %v409_v7 = vsub.s32 1, %v3070_v55 }
 0x140   : > { %v2622_v48 = vpop.eup %2621  ;;  %2637 = vrcp.f32 %v1470_v38  ;;  %v1489_v22 = vadd.f32 1.0, %v2620_v41  ;;  %v3236_v58 = vsel %vm806_vm1, %v1637_v32, %v1630_v62  ;;  %v2266_v54 = vmul.f32 -1.442695, %v3173_v24 }
 0x141   : > { %v2624_v57 = vpop.eup %2623  ;;  %2639 = vrcp.f32 %v1486_v20  ;;  %v1471_v60 = vadd.f32 1.0, %v2622_v48  ;;  %v3239_v34 = vsel %vm806_vm1, %v1693_v44, %v1686_v47  ;;  %v3246_v18 = vadd.f32 %v3213_v63, %v594_v10  ;;  %v1571_v44 = vld [vmem:[%s3159_s29 + $0x58] sm:$0xff] }
 0x142   : > { %v2626_v49 = vpop.eup %2625  ;;  %2641 = vrcp.f32 %v1473_v50  ;;  %v1487_v5 = vadd.f32 1.0, %v2624_v57  ;;  %v1648_v11 = vrot.slane %v1647_v46, 2  ;;  %v2248_v15 = vmul.f32 -1.442695, %v3175_v26  ;;  %v1569_v50 = vld [vmem:[%s3159_s29 + $0x48] sm:$0xff] }
 0x143   : > { %2643 = vrcp.f32 %v1489_v22  ;;  %v1476_v56 = vadd.f32 1.0, %v2626_v49  ;;  %v2418_v16 = vadd.f32 %v3200_v8, %v3231_v31  ;;  %v2264_v42 = vmul.f32 -1.442695, %v3179_v33  ;;  %v1585_v49 = vld [vmem:[%s3159_s29 + $0xc8] sm:$0xff] }
 0x144   : > { %v2628_v9 = vpop.eup %2627  ;;  %2645 = vrcp.f32 %v1471_v60  ;;  %v2251_v24 = vmul.f32 -1.442695, %v3185_v37  ;;  %v2267_v59 = vmul.f32 -1.442695, %v3188_v35  ;;  %v2249_v27 = vmul.f32 -1.442695, %v3190_v14 }
 0x145   : > { %v2630_v17 = vpop.eup %2629  ;;  %v1615_v19 = vmul.f32 %v2628_v9, %v1583_v3  ;;  %2647 = vrcp.f32 %v1487_v5  ;;  %v2265_v28 = vmul.f32 -1.442695, %v3196_v0  ;;  %v1649_v30 = vadd.f32 %v1648_v11, %v1647_v46  ;;  %v1587_v46 = vld [vmem:[%s3159_s29 + $0xd8] sm:$0xff] }
 0x146   : > { %v2632_v63 = vpop.eup %2631  ;;  %v1597_v2 = vmul.f32 %v2630_v17, %v1565_v53  ;;  %2649 = vrcp.f32 %v1476_v56  ;;  %v2292_v1 = vmul.f32 -1.442695, %v2418_v16  ;;  %v3273_v5 = vrot.slane %v3076_v6, %v409_v7 }
 0x147   : > { %v1701_v26 = vadd.f32 %v1615_v19, %v3222_v52  ;;  %v1613_v8 = vmul.f32 %v2632_v63, %v1581_v36  ;;  %2651 = vpow2.f32 %v2266_v54  ;;  %v1584_v52 = vld [vmem:[%s3159_s29 + $0xc0] sm:$0xff]  ;;  %v1650_v20 = vrot.slane %v1649_v30, 1  ;;  %v1574_v36 = vld [vmem:[%s3159_s29 + $0x70] sm:$0xff] }
 0x148   : > { %v2634_v33 = vpop.eup %2633  ;;  %v1638_v37 = vadd.f32 %v1597_v2, %v3225_v12  ;;  %2653 = vpow2.f32 %v2248_v15  ;;  %v2420_v12 = vadd.f32 %v3211_v4, %v3231_v31 }
 0x149   : > { %v2636_v32 = vpop.eup %2635  ;;  %v1702_v35 = vrot.slane %v1701_v26, 4  ;;  %v1694_v14 = vadd.f32 %v1613_v8, %v3227_v51  ;;  %v1602_v39 = vmul.f32 %v2634_v33, %v1570_v23  ;;  %2655 = vpow2.f32 %v2264_v42 }
 0x14a   : > { %v2638_v21 = vpop.eup %2637  ;;  %v1639_v40 = vrot.slane %v1638_v37, 4  ;;  %v1618_v0 = vmul.f32 %v2636_v32, %v1586_v25  ;;  %2657 = vpow2.f32 %v2251_v24  ;;  %v3276_v42 = vmul.f32 -1.442695, %v2420_v12 }
 0x14b   : > { %v2640_v45 = vpop.eup %2639  ;;  %v1703_v38 = vadd.f32 %v1702_v35, %v1701_v26  ;;  %v1695_v41 = vrot.slane %v1694_v14, 4  ;;  %v1600_v62 = vmul.f32 %v2638_v21, %v1568_v61  ;;  %2659 = vpow2.f32 %v2267_v59 }
 0x14c   : > { %v2642_v51 = vpop.eup %2641  ;;  %v1640_v48 = vadd.f32 %v1639_v40, %v1638_v37  ;;  %v1616_v47 = vmul.f32 %v2640_v45, %v1584_v52  ;;  %2661 = vpow2.f32 %v2249_v27  ;;  %v1651_v63 = vadd.f32 %v1650_v20, %v1649_v30 }
 0x14d   : > { %v2644_v22 = vpop.eup %2643  ;;  %v1704_v57 = vrot.slane %v1703_v38, 2  ;;  %v1696_v10 = vadd.f32 %v1695_v41, %v1694_v14  ;;  %v1603_v60 = vmul.f32 %v2642_v51, %v1571_v44  ;;  %2663 = vpow2.f32 %v2265_v28 }
 0x14e   : > { %v2646_v4 = vpop.eup %2645  ;;  %v1641_v31 = vrot.slane %v1640_v48, 2  ;;  %v1619_v3 = vmul.f32 %v2644_v22, %v1587_v46  ;;  %2665 = vpow2.f32 %v2292_v1 }
 0x14f   : > { %v2648_v53 = vpop.eup %2647  ;;  %v1705_v56 = vadd.f32 %v1704_v57, %v1703_v38  ;;  %v1697_v54 = vrot.slane %v1696_v10, 2  ;;  %v1659_v9 = vadd.f32 %v1603_v60, %v1602_v39  ;;  %v1601_v11 = vmul.f32 %v2646_v4, %v1569_v50 }
 0x150   : > { %v2650_v15 = vpop.eup %2649  ;;  %v1642_v16 = vadd.f32 %v1641_v31, %v1640_v48  ;;  %v1715_v17 = vadd.f32 %v1619_v3, %v1618_v0  ;;  %v1617_v19 = vmul.f32 %v2648_v53, %v1585_v49  ;;  %2667 = vtanh.f32 %v3209_v43 }
 0x151   : > { %v2652_v24 = vpop.eup %2651  ;;  %v1698_v2 = vadd.f32 %v1697_v54, %v1696_v10  ;;  %v1660_v23 = vrot.slane %v1659_v9, 4  ;;  %v1652_v55 = vadd.f32 %v1601_v11, %v1600_v62  ;;  %v3278_v26 = vmul.f32 %v2650_v15, %v1574_v36 }
 0x152   : > { %v2654_v59 = vpop.eup %2653  ;;  %v1643_v6 = vrot.slane %v1642_v16, 1  ;;  %v1716_v7 = vrot.slane %v1715_v17, 4  ;;  %v1708_v27 = vadd.f32 %v1617_v19, %v1616_v47  ;;  %v1706_v25 = vrot.slane %v1705_v56, 1 }
 0x153   : > { %v2656_v8 = vpop.eup %2655  ;;  %v1661_v28 = vadd.f32 %v1660_v23, %v1659_v9  ;;  %v1653_v33 = vrot.slane %v1652_v55, 4  ;;  %v1699_v61 = vrot.slane %v1698_v2, 1  ;;  %v1492_v30 = vadd.f32 1.0, %v2652_v24  ;;  %v1572_v24 = vld [vmem:[%s3159_s29 + $0x60] sm:$0xff] }
 0x154   : > { %v2658_v37 = vpop.eup %2657  ;;  %v1717_v1 = vadd.f32 %v1716_v7, %v1715_v17  ;;  %v1709_v32 = vrot.slane %v1708_v27, 4  ;;  %v1644_v14 = vadd.f32 %v1643_v6, %v1642_v16  ;;  %v1474_v21 = vadd.f32 1.0, %v2654_v59  ;;  %v1590_v17 = vld [vmem:[%s3159_s29 + $0xf0] sm:$0xff]  ;;  %v1588_v23 = vld [vmem:[%s3159_s29 + $0xe0] sm:$0xff] }
 0x155   : > { %v2660_v35 = vpop.eup %2659  ;;  %v1662_v39 = vrot.slane %v1661_v28, 2  ;;  %v1654_v52 = vadd.f32 %v1653_v33, %v1652_v55  ;;  %2669 = vrcp.f32 %v1492_v30  ;;  %v1490_v12 = vadd.f32 1.0, %v2656_v8  ;;  %v1589_v30 = vld [vmem:[%s3159_s29 + $0xe8] sm:$0xff] }
 0x156   : > { %v2662_v40 = vpop.eup %2661  ;;  %v1718_v0 = vrot.slane %v1717_v1, 2  ;;  %v1710_v44 = vadd.f32 %v1709_v32, %v1708_v27  ;;  %2671 = vrcp.f32 %v1474_v21  ;;  %v1477_v43 = vadd.f32 1.0, %v2658_v37  ;;  %v1575_v27 = vld [vmem:[%s3159_s29 + $0x78] sm:$0xff]  ;;  %v1573_v37 = vld [vmem:[%s3159_s29 + $0x68] sm:$0xff] }
 0x157   : > { %v2664_v45 = vpop.eup %2663  ;;  %v1663_v38 = vadd.f32 %v1662_v39, %v1661_v28  ;;  %v1655_v41 = vrot.slane %v1654_v52, 2  ;;  %2673 = vrcp.f32 %v1490_v12  ;;  %v1493_v20 = vadd.f32 1.0, %v2660_v35 }
 0x158   : > { %v2666_v62 = vpop.eup %2665  ;;  %v1719_v46 = vadd.f32 %v1718_v0, %v1717_v1  ;;  %v1711_v51 = vrot.slane %v1710_v44, 2  ;;  %v1700_v48 = vadd.f32 %v1699_v61, %v1698_v2  ;;  %2675 = vrcp.f32 %v1477_v43 }
 0x159   : > { %v1656_v47 = vadd.f32 %v1655_v41, %v1654_v52  ;;  %v1475_v50 = vadd.f32 1.0, %v2662_v40  ;;  %v1664_v22 = vrot.slane %v1663_v38, 1  ;;  %2677 = vrcp.f32 %v1493_v20 }
 0x15a   : > { %v1712_v57 = vadd.f32 %v1711_v51, %v1710_v44  ;;  %v1491_v10 = vadd.f32 1.0, %v2664_v45  ;;  %v1720_v60 = vrot.slane %v1719_v46, 1  ;;  %v2040_v4 = vadd.f32 1.0, %v2666_v62  ;;  %v2668_v54 = vpop.eup %2667 }
 0x15b   : > { %v1657_v49 = vrot.slane %v1656_v47, 1  ;;  %2679 = vrcp.f32 %v1475_v50  ;;  %v1707_v31 = vadd.f32 %v1706_v25, %v1705_v56  ;;  %v1753_v53 = vsel %vm808_vm2, %v1644_v14, %v3236_v58 }
 0x15c   : > { %v1713_v3 = vrot.slane %v1712_v57, 1  ;;  %2681 = vrcp.f32 %v1491_v10  ;;  %v1754_v11 = vsel %vm810_vm3, %v1651_v63, %v1753_v53  ;;  %v1760_v36 = vsel %vm808_vm2, %v1700_v48, %v3239_v34 }
 0x15d   : > { %v1658_v9 = vadd.f32 %v1657_v49, %v1656_v47  ;;  %2683 = vrcp.f32 %v2040_v4  ;;  %v1665_v15 = vadd.f32 %v1664_v22, %v1663_v38  ;;  %v1761_v56 = vsel %vm810_vm3, %v1707_v31, %v1760_v36 }
 0x15e   : > { %v1714_v16 = vadd.f32 %v1713_v3, %v1712_v57  ;;  %v1721_v19 = vadd.f32 %v1720_v60, %v1719_v46  ;;  %v2419_v2 = vadd.f32 %v3204_v13, %v3273_v5  ;;  %2685 = vpow2.f32 %v3276_v42  ;;  %v1591_v42 = vld [vmem:[%s3159_s29 + $0xf8] sm:$0xff] }
 0x15f   : > { %v1755_v58 = vsel %vm812_vm4, %v1658_v9, %v1754_v11  ;;  %v2670_v63 = vpop.eup %2669  ;;  %v2421_v59 = vadd.f32 %v3217_v29, %v3273_v5 }
 0x160   : > { %v3295_v34 = vsel %vm814_vm5, %v1665_v15, %v1755_v58  ;;  %v1762_v55 = vsel %vm812_vm4, %v1714_v16, %v1761_v56  ;;  %v2672_v6 = vpop.eup %2671  ;;  %v1622_v7 = vmul.f32 %v2670_v63, %v1590_v17  ;;  %v2294_v61 = vmul.f32 -1.442695, %v2419_v2 }
 0x161   : > { %v3302_v8 = vsel %vm814_vm5, %v1721_v19, %v1762_v55  ;;  %v2674_v13 = vpop.eup %2673  ;;  %v1604_v25 = vmul.f32 %v2672_v6, %v1572_v24  ;;  %v2295_v35 = vmul.f32 -1.442695, %v2421_v59 }
 0x162   : > { %v2676_v28 = vpop.eup %2675  ;;  %v1620_v33 = vmul.f32 %v2674_v13, %v1588_v23  ;;  %2687 = vpow2.f32 %v2294_v61 }
 0x163   : > { %v2678_v1 = vpop.eup %2677  ;;  %v1607_v32 = vmul.f32 %v2676_v28, %v1575_v27  ;;  %2689 = vpow2.f32 %v2295_v35 }
 0x164   : > { %v1623_v39 = vmul.f32 %v2678_v1, %v1591_v42  ;;  %2691 = vtanh.f32 %v3246_v18 }
 0x165   : > { %v2680_v14 = vpop.eup %2679  ;;  %v1673_v5 = vadd.f32 %v1607_v32, %v3278_v26 }
 0x166   : > { %v2682_v29 = vpop.eup %2681  ;;  %v1605_v52 = vmul.f32 %v2680_v14, %v1573_v37  ;;  %v1729_v40 = vadd.f32 %v1623_v39, %v1622_v7 }
 0x167   : > { %v2684_v21 = vpop.eup %2683  ;;  %v1621_v0 = vmul.f32 %v2682_v29, %v1589_v30  ;;  %v1674_v44 = vrot.slane %v1673_v5, 4 }
 0x168   : > { %v1666_v12 = vadd.f32 %v1605_v52, %v1604_v25  ;;  %v2060_v45 = vmul.f32 %v2684_v21, %v2668_v54  ;;  %v2686_v38 = vpop.eup %2685  ;;  %v1730_v41 = vrot.slane %v1729_v40, 4 }
 0x169   : > { %v1722_v43 = vadd.f32 %v1621_v0, %v1620_v33  ;;  %v1675_v62 = vadd.f32 %v1674_v44, %v1673_v5  ;;  %v2041_v51 = vadd.f32 1.0, %v2686_v38 }
 0x16a   : > { %v1667_v46 = vrot.slane %v1666_v12, 4  ;;  %v1731_v20 = vadd.f32 %v1730_v41, %v1729_v40 }
 0x16b   : > { %v1723_v48 = vrot.slane %v1722_v43, 4  ;;  %v1676_v26 = vrot.slane %v1675_v62, 2  ;;  %2693 = vrcp.f32 %v2041_v51 }
 0x16c   : > { %v1668_v47 = vadd.f32 %v1667_v46, %v1666_v12  ;;  %v1732_v50 = vrot.slane %v1731_v20, 2  ;;  %v2688_v31 = vpop.eup %2687 }
 0x16d   : > { %v1724_v22 = vadd.f32 %v1723_v48, %v1722_v43  ;;  %v1677_v10 = vadd.f32 %v1676_v26, %v1675_v62  ;;  %v2690_v54 = vpop.eup %2689  ;;  %v2052_v15 = vadd.f32 1.0, %v2688_v31 }
 0x16e   : > { %v1669_v57 = vrot.slane %v1668_v47, 2  ;;  %v1733_v49 = vadd.f32 %v1732_v50, %v1731_v20  ;;  %v2692_v16 = vpop.eup %2691  ;;  %v2053_v19 = vadd.f32 1.0, %v2690_v54 }
 0x16f   : > { %v1725_v60 = vrot.slane %v1724_v22, 2  ;;  %v1678_v53 = vrot.slane %v1677_v10, 1  ;;  %2695 = vrcp.f32 %v2052_v15 }
 0x170   : > { %v1670_v4 = vadd.f32 %v1669_v57, %v1668_v47  ;;  %v1734_v11 = vrot.slane %v1733_v49, 1  ;;  %2697 = vrcp.f32 %v2053_v19 }
 0x171   : > { %v1726_v3 = vadd.f32 %v1725_v60, %v1724_v22  ;;  %v1679_v17 = vadd.f32 %v1678_v53, %v1677_v10 }
 0x172   : > { %v1671_v9 = vrot.slane %v1670_v4, 1  ;;  %v1735_v2 = vadd.f32 %v1734_v11, %v1733_v49 }
 0x173   : > { %v1727_v36 = vrot.slane %v1726_v3, 1 }
 0x174   : > { %v1672_v18 = vadd.f32 %v1671_v9, %v1670_v4 }
 0x175   : > { %v1728_v56 = vadd.f32 %v1727_v36, %v1726_v3  ;;  %v2694_v24 = vpop.eup %2693 }
 0x176   : > { %v1757_v58 = vsel %vm816_vm6, %v1672_v18, %v3295_v34  ;;  %v2061_v55 = vmul.f32 %v2694_v24, %v2692_v16 }
 0x177   : > { %v1758_v63 = vsel %vm818_vm7, %v1679_v17, %v1757_v58  ;;  %v1764_v23 = vsel %vm816_vm6, %v1728_v56, %v3302_v8 }
 0x178   : > { %v2064_v59 = vadd.f32 %v2060_v45, %v1758_v63  ;;  %v1765_v6 = vsel %vm818_vm7, %v1735_v2, %v1764_v23 }
 0x179   : > { %v2065_v7 = vadd.f32 %v2061_v55, %v1765_v6  ;;  %v2696_v34 = vpop.eup %2695 }
 0x17a   : > { %2699 = vtanh.f32 %v2064_v59  ;;  %2072 = vst [vmem:[%s376_s10 + $0x8] sm:$0xff] %v2064_v59  ;;  %v2698_v27 = vpop.eup %2697 }
 0x17b   : > { %2701 = vtanh.f32 %v2065_v7  ;;  %2073 = vst [vmem:[%s376_s10 + $0x18] sm:$0xff] %v2065_v7 }
 0x184   : > { %v2700_v13 = vpop.eup %2699 }
 0x185   : > { %v2702_v25 = vpop.eup %2701  ;;  %v2068_v42 = vmul.f32 %v2700_v13, %v2696_v34 }
 0x186   : > { %v2069_v28 = vmul.f32 %v2702_v25, %v2698_v27 }
 0x187   : > { %2070 = vst [vmem:[%s376_s10] sm:$0xff] %v2068_v42 }
 0x188   : > { %2071 = vst [vmem:[%s376_s10 + $0x10] sm:$0xff] %v2069_v28 }
 0x189 PF: > { %s17_s26 = sadd.s32 1, %s2725_s26   ;;  %s3336_s24 = smov %s2721_s25 }
 0x18a   : > { %p14_p6 = scmp.ge.s32.totalorder %s17_s26, 6   ;;  %s3337_s25 = smov %s3339_s27 }
 0x18c   :  { %16 = sbr.rel (!%p14_p6) target bundleno = 2 (0x2), region = 92 }

</bundles_post_ra>
